<compile_context>
chip_gen: v7x
topology: tpu7x:2x2x1
jax: 0.10.0
libtpu: 0.0.40
codegen_flags: <defaults>
</compile_context>

<pallas_src>
import math

import jax
import jax.numpy as jnp
from jax.experimental import pallas as pl
from jax.experimental.pallas import tpu as pltpu


# ----------------------------------------------------------------------------
# Shared math helpers (usable both inside kernels and in the pure-JAX reference)
# ----------------------------------------------------------------------------
def _layer_norm(v, g, b, eps=1e-5):
    mu = jnp.mean(v, axis=-1, keepdims=True)
    d = v - mu
    var = jnp.mean(d * d, axis=-1, keepdims=True)
    return d * jax.lax.rsqrt(var + eps) * g + b


def _gelu(v):
    # TODO(synk): PyTorch nn.GELU default is the exact erf form; we use the tanh
    # approximation (Mosaic-safe EUP tanh, max abs err ~1e-3 vs erf).
    return jax.nn.gelu(v, approximate=True)


# ----------------------------------------------------------------------------
# In-kernel building blocks
# ----------------------------------------------------------------------------
def _attention_core(xq, xkv, wq, bq, wk, bk, wv, bv, wo, bo, n_heads, dk, dv):
    """AttentionLayer forward on one (Lq, dm) query block and (S, dm) kv block.

    Heads are processed by statically slicing the weight *refs*; the output
    projection is accumulated per head, so no reshape/transpose/concat of
    activations happens inside the kernel.
    """
    scale = 1.0 / math.sqrt(dk)
    lq = xq.shape[0]
    d_out = wo.shape[1]
    acc = jnp.zeros((lq, d_out), jnp.float32)
    for h in range(n_heads):
        ks = slice(h * dk, (h + 1) * dk)
        vs = slice(h * dv, (h + 1) * dv)
        qh = (jnp.dot(xq, wq[:, ks], preferred_element_type=jnp.float32)
              + bq[:, ks]) * scale
        kh = jnp.dot(xkv, wk[:, ks], preferred_element_type=jnp.float32) + bk[:, ks]
        vh = jnp.dot(xkv, wv[:, vs], preferred_element_type=jnp.float32) + bv[:, vs]
        # scores = q @ k^T via dot_general (no explicit transpose op)
        s = jax.lax.dot_general(qh, kh, (((1,), (1,)), ((), ())),
                                preferred_element_type=jnp.float32)
        s = s - jnp.max(s, axis=-1, keepdims=True)
        p = jnp.exp(s)
        a = p / jnp.sum(p, axis=-1, keepdims=True)           # softmax over S
        oh = jnp.dot(a, vh, preferred_element_type=jnp.float32)
        acc = acc + jnp.dot(oh, wo[vs, :], preferred_element_type=jnp.float32)
    return acc + bo[...]


def _post_core(x, y, g1, b1, w1, c1, w2, c2, g2, b2):
    """residual + LayerNorm + MLP(GELU) + residual + LayerNorm (dropout = identity)."""
    z = _layer_norm(x + y, g1[...], b1[...])
    h = _gelu(jnp.dot(z, w1[...], preferred_element_type=jnp.float32) + c1[...])
    z = _layer_norm(z + jnp.dot(h, w2[...], preferred_element_type=jnp.float32) + c2[...],
                    g2[...], b2[...])
    return z


# ----------------------------------------------------------------------------
# Kernel bodies
# ----------------------------------------------------------------------------
def _make_time_kernel(n_heads, dk, dv):
    def kernel(x_ref, wq, bq, wk, bk, wv, bv, wo, bo,
               g1, b1, w1, c1, w2, c2, g2, b2, o_ref):
        x = x_ref[0, 0].astype(jnp.float32)                     # (L, dm)
        y = _attention_core(x, x, wq, bq, wk, bk, wv, bv, wo, bo, n_heads, dk, dv)
        o_ref[0, 0] = _post_core(x, y, g1, b1, w1, c1, w2, c2, g2, b2).astype(o_ref.dtype)
    return kernel


def _make_sender_kernel(n_heads, dk, dv):
    def kernel(q_ref, kv_ref, wq, bq, wk, bk, wv, bv, wo, bo, o_ref):
        xq = q_ref[0].astype(jnp.float32)                       # (factor, dm)  (router row)
        xkv = kv_ref[0, 0].astype(jnp.float32)                  # (D, dm)
        o_ref[0, 0] = _attention_core(xq, xkv, wq, bq, wk, bk, wv, bv, wo, bo,
                                      n_heads, dk, dv).astype(o_ref.dtype)
    return kernel


def _make_receiver_kernel(n_heads, dk, dv):
    def kernel(q_ref, kv_ref, wq, bq, wk, bk, wv, bv, wo, bo,
               g3, b3, w1, c1, w2, c2, g4, b4, o_ref):
        xq = q_ref[0, 0].astype(jnp.float32)                    # (D, dm)  (also residual)
        xkv = kv_ref[0, 0].astype(jnp.float32)                  # (factor, dm)
        y = _attention_core(xq, xkv, wq, bq, wk, bk, wv, bv, wo, bo, n_heads, dk, dv)
        o_ref[0, 0] = _post_core(xq, y, g3, b3, w1, c1, w2, c2, g4, b4).astype(o_ref.dtype)
    return kernel


# ----------------------------------------------------------------------------
# pallas_call wrappers
# ----------------------------------------------------------------------------
def _p2(a):
    return a.reshape(1, -1) if a.ndim == 1 else a


def _const_spec(arr):
    nd = arr.ndim
    return pl.BlockSpec(arr.shape, lambda i, j: (0,) * nd)      # resident across the grid


def _attn_weight_list(p):
    return [p["wq"], _p2(p["bq"]), p["wk"], _p2(p["bk"]),
            p["wv"], _p2(p["bv"]), p["wo"], _p2(p["bo"])]


def _post_weight_list(ln_a, mlp, ln_b):
    return [_p2(ln_a["g"]), _p2(ln_a["b"]),
            mlp["w1"], _p2(mlp["b1"]), mlp["w2"], _p2(mlp["b2"]),
            _p2(ln_b["g"]), _p2(ln_b["b"])]


_PARALLEL2 = pltpu.CompilerParams(dimension_semantics=("parallel", "parallel"))


def time_stage(x, params, n_heads):
    B, D, L, dm = x.shape
    ta = params["time"]
    dk = ta["wq"].shape[1] // n_heads
    dv = ta["wv"].shape[1] // n_heads
    weights = _attn_weight_list(ta) + _post_weight_list(params["ln1"], params["mlp1"],
                                                        params["ln2"])
    blk = pl.BlockSpec((1, 1, L, dm), lambda i, j: (i, j, 0, 0))
    return pl.pallas_call(
        _make_time_kernel(n_heads, dk, dv),
        out_shape=jax.ShapeDtypeStruct((B, D, L, dm), x.dtype),
        grid=(B, D),
        in_specs=[blk] + [_const_spec(w) for w in weights],
        out_specs=blk,
        compiler_params=_PARALLEL2,
    )(x, *weights)


def dim_sender_stage(router, dim_send, params, n_heads):
    B, L, D, dm = dim_send.shape
    factor = router.shape[1]
    ds = params["sender"]
    dk = ds["wq"].shape[1] // n_heads
    dv = ds["wv"].shape[1] // n_heads
    weights = _attn_weight_list(ds)
    return pl.pallas_call(
        _make_sender_kernel(n_heads, dk, dv),
        out_shape=jax.ShapeDtypeStruct((B, L, factor, dm), dim_send.dtype),
        grid=(B, L),
        in_specs=[pl.BlockSpec((1, factor, dm), lambda i, j: (j, 0, 0)),      # router[seg]
                  pl.BlockSpec((1, 1, D, dm), lambda i, j: (i, j, 0, 0))]
                 + [_const_spec(w) for w in weights],
        out_specs=pl.BlockSpec((1, 1, factor, dm), lambda i, j: (i, j, 0, 0)),
        compiler_params=_PARALLEL2,
    )(router, dim_send, *weights)


def dim_receiver_stage(dim_send, dim_buffer, params, n_heads):
    B, L, D, dm = dim_send.shape
    factor = dim_buffer.shape[2]
    dr = params["receiver"]
    dk = dr["wq"].shape[1] // n_heads
    dv = dr["wv"].shape[1] // n_heads
    weights = _attn_weight_list(dr) + _post_weight_list(params["ln3"], params["mlp2"],
                                                        params["ln4"])
    return pl.pallas_call(
        _make_receiver_kernel(n_heads, dk, dv),
        out_shape=jax.ShapeDtypeStruct((B, L, D, dm), dim_send.dtype),
        grid=(B, L),
        in_specs=[pl.BlockSpec((1, 1, D, dm), lambda i, j: (i, j, 0, 0)),
                  pl.BlockSpec((1, 1, factor, dm), lambda i, j: (i, j, 0, 0))]
                 + [_const_spec(w) for w in weights],
        out_specs=pl.BlockSpec((1, 1, D, dm), lambda i, j: (i, j, 0, 0)),
        compiler_params=_PARALLEL2,
    )(dim_send, dim_buffer, *weights)


def two_stage_attention_layer(params, x, *, n_heads):
    """x: (batch, ts_d, seg_num, d_model) -> same shape."""
    dim_in = time_stage(x, params, n_heads)                 # (B, D, L, dm)
    dim_send = jnp.transpose(dim_in, (0, 2, 1, 3))          # (B, L, D, dm) -- one wrapper pass
    dim_buffer = dim_sender_stage(params["router"], dim_send, params, n_heads)
    dim_enc = dim_receiver_stage(dim_send, dim_buffer, params, n_heads)   # (B, L, D, dm)
    return jnp.transpose(dim_enc, (0, 2, 1, 3))             # (B, D, L, dm)


# ----------------------------------------------------------------------------
# Pure-JAX reference (mirrors the PyTorch forward; dropout = identity)
# ----------------------------------------------------------------------------
def _ref_attention(p, xq, xkv, H):
    N, Lq, dm = xq.shape
    S = xkv.shape[1]
    q = xq @ p["wq"] + p["bq"]
    k = xkv @ p["wk"] + p["bk"]
    v = xkv @ p["wv"] + p["bv"]
    dk = q.shape[-1] // H
    dv = v.shape[-1] // H
    q = q.reshape(N, Lq, H, dk)
    k = k.reshape(N, S, H, dk)
    v = v.reshape(N, S, H, dv)
    scale = 1.0 / math.sqrt(dk)
    scores = jnp.einsum("blhe,bshe->bhls", q, k)
    a = jax.nn.softmax(scale * scores, axis=-1)
    out = jnp.einsum("bhls,bshd->blhd", a, v).reshape(N, Lq, H * dv)
    return out @ p["wo"] + p["bo"]


def _ref_mlp(v, m):
    return _gelu(v @ m["w1"] + m["b1"]) @ m["w2"] + m["b2"]


def reference(params, x, n_heads):
    B, D, L, dm = x.shape
    time_in = x.reshape(B * D, L, dm)
    time_enc = _ref_attention(params["time"], time_in, time_in, n_heads)
    dim_in = _layer_norm(time_in + time_enc, params["ln1"]["g"], params["ln1"]["b"])
    dim_in = _layer_norm(dim_in + _ref_mlp(dim_in, params["mlp1"]),
                         params["ln2"]["g"], params["ln2"]["b"])
    dim_send = dim_in.reshape(B, D, L, dm).transpose(0, 2, 1, 3).reshape(B * L, D, dm)
    batch_router = jnp.tile(params["router"][None], (B, 1, 1, 1)).reshape(B * L, -1, dm)
    dim_buffer = _ref_attention(params["sender"], batch_router, dim_send, n_heads)
    dim_receive = _ref_attention(params["receiver"], dim_send, dim_buffer, n_heads)
    dim_enc = _layer_norm(dim_send + dim_receive, params["ln3"]["g"], params["ln3"]["b"])
    dim_enc = _layer_norm(dim_enc + _ref_mlp(dim_enc, params["mlp2"]),
                          params["ln4"]["g"], params["ln4"]["b"])
    return dim_enc.reshape(B, L, D, dm).transpose(0, 2, 1, 3)


# ----------------------------------------------------------------------------
if __name__ == "__main__":
    # Small, module-consistent shapes: x is [batch, ts_d, seg_num, d_model].
    B, D, L = 2, 4, 6
    d_model, n_heads, factor = 32, 4, 3
    d_ff = 4 * d_model
    dk = dv = d_model // n_heads

    key = jax.random.PRNGKey(0)
    keys = iter(jax.random.split(key, 64))

    def nrm(shape, s=0.05):
        return s * jax.random.normal(next(keys), shape, jnp.float32)

    def attn_params():
        return {"wq": nrm((d_model, n_heads * dk)), "bq": nrm((n_heads * dk,), 0.01),
                "wk": nrm((d_model, n_heads * dk)), "bk": nrm((n_heads * dk,), 0.01),
                "wv": nrm((d_model, n_heads * dv)), "bv": nrm((n_heads * dv,), 0.01),
                "wo": nrm((n_heads * dv, d_model)), "bo": nrm((d_model,), 0.01)}

    def ln_params():
        return {"g": jnp.ones((d_model,), jnp.float32), "b": jnp.zeros((d_model,), jnp.float32)}

    def mlp_params():
        return {"w1": nrm((d_model, d_ff)), "b1": nrm((d_ff,), 0.01),
                "w2": nrm((d_ff, d_model)), "b2": nrm((d_model,), 0.01)}

    params = {
        "time": attn_params(), "sender": attn_params(), "receiver": attn_params(),
        "router": nrm((L, factor, d_model), 1.0),
        "ln1": ln_params(), "ln2": ln_params(), "ln3": ln_params(), "ln4": ln_params(),
        "mlp1": mlp_params(), "mlp2": mlp_params(),
    }

    x = jax.random.normal(next(keys), (B, D, L, d_model), jnp.float32)

    run = jax.jit(lambda p, xx: two_stage_attention_layer(p, xx, n_heads=n_heads))
    out = run(params, x)
    jax.block_until_ready(out)

    ref = reference(params, x, n_heads)

    assert out.shape == (B, D, L, d_model)
    max_err = float(jnp.max(jnp.abs(out - ref)))
    assert jnp.allclose(out, ref, atol=2e-4, rtol=2e-4), f"max abs err = {max_err}"
    print("KERNEL_OK")
</pallas_src>

<mosaic_0001>
module attributes {stable_mosaic.version = 11 : i64} {
  func.func @kernel(%arg0: i32, %arg1: i32, %arg2: memref<1x1x6x32xf32, #tpu.memory_space<vmem>>, %arg3: memref<32x32xf32, #tpu.memory_space<vmem>>, %arg4: memref<1x32xf32, #tpu.memory_space<vmem>>, %arg5: memref<32x32xf32, #tpu.memory_space<vmem>>, %arg6: memref<1x32xf32, #tpu.memory_space<vmem>>, %arg7: memref<32x32xf32, #tpu.memory_space<vmem>>, %arg8: memref<1x32xf32, #tpu.memory_space<vmem>>, %arg9: memref<32x32xf32, #tpu.memory_space<vmem>>, %arg10: memref<1x32xf32, #tpu.memory_space<vmem>>, %arg11: memref<1x32xf32, #tpu.memory_space<vmem>>, %arg12: memref<1x32xf32, #tpu.memory_space<vmem>>, %arg13: memref<32x128xf32, #tpu.memory_space<vmem>>, %arg14: memref<1x128xf32, #tpu.memory_space<vmem>>, %arg15: memref<128x32xf32, #tpu.memory_space<vmem>>, %arg16: memref<1x32xf32, #tpu.memory_space<vmem>>, %arg17: memref<1x32xf32, #tpu.memory_space<vmem>>, %arg18: memref<1x32xf32, #tpu.memory_space<vmem>>, %arg19: memref<1x1x6x32xf32, #tpu.memory_space<vmem>>) attributes {dimension_semantics = [#tpu.dimension_semantics<parallel>, #tpu.dimension_semantics<parallel>], iteration_bounds = array<i64: 2, 4>, scalar_prefetch = 0 : i64, scratch_operands = 0 : i64, tpu.core_type = #tpu.core_type<tc>, window_params = [{transform_indices = @transform_0, window_bounds = array<i64: 1, 1, 6, 32>}, {pipeline_mode = #tpu.pipeline_mode<synchronous>, transform_indices = @transform_1, window_bounds = array<i64: 32, 32>}, {pipeline_mode = #tpu.pipeline_mode<synchronous>, transform_indices = @transform_2, window_bounds = array<i64: 1, 32>}, {pipeline_mode = #tpu.pipeline_mode<synchronous>, transform_indices = @transform_3, window_bounds = array<i64: 32, 32>}, {pipeline_mode = #tpu.pipeline_mode<synchronous>, transform_indices = @transform_4, window_bounds = array<i64: 1, 32>}, {pipeline_mode = #tpu.pipeline_mode<synchronous>, transform_indices = @transform_5, window_bounds = array<i64: 32, 32>}, {pipeline_mode = #tpu.pipeline_mode<synchronous>, transform_indices = @transform_6, window_bounds = array<i64: 1, 32>}, {pipeline_mode = #tpu.pipeline_mode<synchronous>, transform_indices = @transform_7, window_bounds = array<i64: 32, 32>}, {pipeline_mode = #tpu.pipeline_mode<synchronous>, transform_indices = @transform_8, window_bounds = array<i64: 1, 32>}, {pipeline_mode = #tpu.pipeline_mode<synchronous>, transform_indices = @transform_9, window_bounds = array<i64: 1, 32>}, {pipeline_mode = #tpu.pipeline_mode<synchronous>, transform_indices = @transform_10, window_bounds = array<i64: 1, 32>}, {pipeline_mode = #tpu.pipeline_mode<synchronous>, transform_indices = @transform_11, window_bounds = array<i64: 32, 128>}, {pipeline_mode = #tpu.pipeline_mode<synchronous>, transform_indices = @transform_12, window_bounds = array<i64: 1, 128>}, {pipeline_mode = #tpu.pipeline_mode<synchronous>, transform_indices = @transform_13, window_bounds = array<i64: 128, 32>}, {pipeline_mode = #tpu.pipeline_mode<synchronous>, transform_indices = @transform_14, window_bounds = array<i64: 1, 32>}, {pipeline_mode = #tpu.pipeline_mode<synchronous>, transform_indices = @transform_15, window_bounds = array<i64: 1, 32>}, {pipeline_mode = #tpu.pipeline_mode<synchronous>, transform_indices = @transform_16, window_bounds = array<i64: 1, 32>}, {transform_indices = @transform_17, window_bounds = array<i64: 1, 1, 6, 32>}]} {
    %c0 = arith.constant 0 : index
    %c0_0 = arith.constant 0 : index
    %c0_1 = arith.constant 0 : index
    %c0_2 = arith.constant 0 : index
    %0 = vector.load %arg2[%c0, %c0_0, %c0_1, %c0_2] : memref<1x1x6x32xf32, #tpu.memory_space<vmem>>, vector<1x1x6x32xf32>
    %1 = vector.shape_cast %0 : vector<1x1x6x32xf32> to vector<6x32xf32>
    %cst = arith.constant 0.000000e+00 : f32
    %2 = vector.broadcast %cst : f32 to vector<6x32xf32>
    %c0_3 = arith.constant 0 : index
    %c0_4 = arith.constant 0 : index
    %3 = vector.load %arg3[%c0_3, %c0_4] : memref<32x32xf32, #tpu.memory_space<vmem>>, vector<32x8xf32>
    %cst_5 = arith.constant dense<0.000000e+00> : vector<6x8xf32>
    %4 = tpu.matmul %1, %3, %cst_5 {dimension_numbers = #tpu.dot_dimension_numbers<[1], [0], [0], [1], [0, 0, 1, 1], [], []>} : vector<6x32xf32>, vector<32x8xf32>, vector<6x8xf32> -> vector<6x8xf32>
    %c0_6 = arith.constant 0 : index
    %c0_7 = arith.constant 0 : index
    %5 = vector.load %arg4[%c0_6, %c0_7] : memref<1x32xf32, #tpu.memory_space<vmem>>, vector<1x8xf32>
    %6 = vector.broadcast %5 : vector<1x8xf32> to vector<6x8xf32>
    %7 = arith.addf %4, %6 : vector<6x8xf32>
    %cst_8 = arith.constant 0.353553385 : f32
    %8 = vector.broadcast %cst_8 : f32 to vector<6x8xf32>
    %9 = arith.mulf %7, %8 : vector<6x8xf32>
    %c0_9 = arith.constant 0 : index
    %c0_10 = arith.constant 0 : index
    %10 = vector.load %arg5[%c0_9, %c0_10] : memref<32x32xf32, #tpu.memory_space<vmem>>, vector<32x8xf32>
    %cst_11 = arith.constant dense<0.000000e+00> : vector<6x8xf32>
    %11 = tpu.matmul %1, %10, %cst_11 {dimension_numbers = #tpu.dot_dimension_numbers<[1], [0], [0], [1], [0, 0, 1, 1], [], []>} : vector<6x32xf32>, vector<32x8xf32>, vector<6x8xf32> -> vector<6x8xf32>
    %c0_12 = arith.constant 0 : index
    %c0_13 = arith.constant 0 : index
    %12 = vector.load %arg6[%c0_12, %c0_13] : memref<1x32xf32, #tpu.memory_space<vmem>>, vector<1x8xf32>
    %13 = vector.broadcast %12 : vector<1x8xf32> to vector<6x8xf32>
    %14 = arith.addf %11, %13 : vector<6x8xf32>
    %c0_14 = arith.constant 0 : index
    %c0_15 = arith.constant 0 : index
    %15 = vector.load %arg7[%c0_14, %c0_15] : memref<32x32xf32, #tpu.memory_space<vmem>>, vector<32x8xf32>
    %cst_16 = arith.constant dense<0.000000e+00> : vector<6x8xf32>
    %16 = tpu.matmul %1, %15, %cst_16 {dimension_numbers = #tpu.dot_dimension_numbers<[1], [0], [0], [1], [0, 0, 1, 1], [], []>} : vector<6x32xf32>, vector<32x8xf32>, vector<6x8xf32> -> vector<6x8xf32>
    %c0_17 = arith.constant 0 : index
    %c0_18 = arith.constant 0 : index
    %17 = vector.load %arg8[%c0_17, %c0_18] : memref<1x32xf32, #tpu.memory_space<vmem>>, vector<1x8xf32>
    %18 = vector.broadcast %17 : vector<1x8xf32> to vector<6x8xf32>
    %19 = arith.addf %16, %18 : vector<6x8xf32>
    %cst_19 = arith.constant dense<0.000000e+00> : vector<6x6xf32>
    %20 = tpu.matmul %9, %14, %cst_19 {dimension_numbers = #tpu.dot_dimension_numbers<[1], [1], [0], [0], [0, 0, 1, 0], [], []>} : vector<6x8xf32>, vector<6x8xf32>, vector<6x6xf32> -> vector<6x6xf32>
    %cst_20 = arith.constant dense<0xFF800000> : vector<6xf32>
    %21 = vector.multi_reduction <maximumf>, %20, %cst_20 [1] : vector<6x6xf32> to vector<6xf32>
    %22 = vector.shape_cast %21 : vector<6xf32> to vector<6x1xf32>
    %23 = vector.broadcast %22 : vector<6x1xf32> to vector<6x6xf32>
    %24 = arith.subf %20, %23 : vector<6x6xf32>
    %25 = math.exp %24 : vector<6x6xf32>
    %cst_21 = arith.constant dense<0.000000e+00> : vector<6xf32>
    %26 = vector.multi_reduction <add>, %25, %cst_21 [1] : vector<6x6xf32> to vector<6xf32>
    %27 = vector.shape_cast %26 : vector<6xf32> to vector<6x1xf32>
    %28 = vector.broadcast %27 : vector<6x1xf32> to vector<6x6xf32>
    %29 = arith.divf %25, %28 : vector<6x6xf32>
    %cst_22 = arith.constant dense<0.000000e+00> : vector<6x8xf32>
    %30 = tpu.matmul %29, %19, %cst_22 {dimension_numbers = #tpu.dot_dimension_numbers<[1], [0], [0], [1], [0, 0, 1, 1], [], []>} : vector<6x6xf32>, vector<6x8xf32>, vector<6x8xf32> -> vector<6x8xf32>
    %c0_23 = arith.constant 0 : index
    %c0_24 = arith.constant 0 : index
    %31 = vector.load %arg9[%c0_23, %c0_24] : memref<32x32xf32, #tpu.memory_space<vmem>>, vector<8x32xf32>
    %cst_25 = arith.constant dense<0.000000e+00> : vector<6x32xf32>
    %32 = tpu.matmul %30, %31, %cst_25 {dimension_numbers = #tpu.dot_dimension_numbers<[1], [0], [0], [1], [0, 0, 1, 1], [], []>} : vector<6x8xf32>, vector<8x32xf32>, vector<6x32xf32> -> vector<6x32xf32>
    %33 = arith.addf %2, %32 : vector<6x32xf32>
    %c0_26 = arith.constant 0 : index
    %c8 = arith.constant 8 : index
    %34 = vector.load %arg3[%c0_26, %c8] : memref<32x32xf32, #tpu.memory_space<vmem>>, vector<32x8xf32>
    %cst_27 = arith.constant dense<0.000000e+00> : vector<6x8xf32>
    %35 = tpu.matmul %1, %34, %cst_27 {dimension_numbers = #tpu.dot_dimension_numbers<[1], [0], [0], [1], [0, 0, 1, 1], [], []>} : vector<6x32xf32>, vector<32x8xf32>, vector<6x8xf32> -> vector<6x8xf32>
    %c0_28 = arith.constant 0 : index
    %c8_29 = arith.constant 8 : index
    %36 = vector.load %arg4[%c0_28, %c8_29] : memref<1x32xf32, #tpu.memory_space<vmem>>, vector<1x8xf32>
    %37 = vector.broadcast %36 : vector<1x8xf32> to vector<6x8xf32>
    %38 = arith.addf %35, %37 : vector<6x8xf32>
    %cst_30 = arith.constant 0.353553385 : f32
    %39 = vector.broadcast %cst_30 : f32 to vector<6x8xf32>
    %40 = arith.mulf %38, %39 : vector<6x8xf32>
    %c0_31 = arith.constant 0 : index
    %c8_32 = arith.constant 8 : index
    %41 = vector.load %arg5[%c0_31, %c8_32] : memref<32x32xf32, #tpu.memory_space<vmem>>, vector<32x8xf32>
    %cst_33 = arith.constant dense<0.000000e+00> : vector<6x8xf32>
    %42 = tpu.matmul %1, %41, %cst_33 {dimension_numbers = #tpu.dot_dimension_numbers<[1], [0], [0], [1], [0, 0, 1, 1], [], []>} : vector<6x32xf32>, vector<32x8xf32>, vector<6x8xf32> -> vector<6x8xf32>
    %c0_34 = arith.constant 0 : index
    %c8_35 = arith.constant 8 : index
    %43 = vector.load %arg6[%c0_34, %c8_35] : memref<1x32xf32, #tpu.memory_space<vmem>>, vector<1x8xf32>
    %44 = vector.broadcast %43 : vector<1x8xf32> to vector<6x8xf32>
    %45 = arith.addf %42, %44 : vector<6x8xf32>
    %c0_36 = arith.constant 0 : index
    %c8_37 = arith.constant 8 : index
    %46 = vector.load %arg7[%c0_36, %c8_37] : memref<32x32xf32, #tpu.memory_space<vmem>>, vector<32x8xf32>
    %cst_38 = arith.constant dense<0.000000e+00> : vector<6x8xf32>
    %47 = tpu.matmul %1, %46, %cst_38 {dimension_numbers = #tpu.dot_dimension_numbers<[1], [0], [0], [1], [0, 0, 1, 1], [], []>} : vector<6x32xf32>, vector<32x8xf32>, vector<6x8xf32> -> vector<6x8xf32>
    %c0_39 = arith.constant 0 : index
    %c8_40 = arith.constant 8 : index
    %48 = vector.load %arg8[%c0_39, %c8_40] : memref<1x32xf32, #tpu.memory_space<vmem>>, vector<1x8xf32>
    %49 = vector.broadcast %48 : vector<1x8xf32> to vector<6x8xf32>
    %50 = arith.addf %47, %49 : vector<6x8xf32>
    %cst_41 = arith.constant dense<0.000000e+00> : vector<6x6xf32>
    %51 = tpu.matmul %40, %45, %cst_41 {dimension_numbers = #tpu.dot_dimension_numbers<[1], [1], [0], [0], [0, 0, 1, 0], [], []>} : vector<6x8xf32>, vector<6x8xf32>, vector<6x6xf32> -> vector<6x6xf32>
    %cst_42 = arith.constant dense<0xFF800000> : vector<6xf32>
    %52 = vector.multi_reduction <maximumf>, %51, %cst_42 [1] : vector<6x6xf32> to vector<6xf32>
    %53 = vector.shape_cast %52 : vector<6xf32> to vector<6x1xf32>
    %54 = vector.broadcast %53 : vector<6x1xf32> to vector<6x6xf32>
    %55 = arith.subf %51, %54 : vector<6x6xf32>
    %56 = math.exp %55 : vector<6x6xf32>
    %cst_43 = arith.constant dense<0.000000e+00> : vector<6xf32>
    %57 = vector.multi_reduction <add>, %56, %cst_43 [1] : vector<6x6xf32> to vector<6xf32>
    %58 = vector.shape_cast %57 : vector<6xf32> to vector<6x1xf32>
    %59 = vector.broadcast %58 : vector<6x1xf32> to vector<6x6xf32>
    %60 = arith.divf %56, %59 : vector<6x6xf32>
    %cst_44 = arith.constant dense<0.000000e+00> : vector<6x8xf32>
    %61 = tpu.matmul %60, %50, %cst_44 {dimension_numbers = #tpu.dot_dimension_numbers<[1], [0], [0], [1], [0, 0, 1, 1], [], []>} : vector<6x6xf32>, vector<6x8xf32>, vector<6x8xf32> -> vector<6x8xf32>
    %c8_45 = arith.constant 8 : index
    %c0_46 = arith.constant 0 : index
    %62 = vector.load %arg9[%c8_45, %c0_46] : memref<32x32xf32, #tpu.memory_space<vmem>>, vector<8x32xf32>
    %cst_47 = arith.constant dense<0.000000e+00> : vector<6x32xf32>
    %63 = tpu.matmul %61, %62, %cst_47 {dimension_numbers = #tpu.dot_dimension_numbers<[1], [0], [0], [1], [0, 0, 1, 1], [], []>} : vector<6x8xf32>, vector<8x32xf32>, vector<6x32xf32> -> vector<6x32xf32>
    %64 = arith.addf %33, %63 : vector<6x32xf32>
    %c0_48 = arith.constant 0 : index
    %c16 = arith.constant 16 : index
    %65 = vector.load %arg3[%c0_48, %c16] : memref<32x32xf32, #tpu.memory_space<vmem>>, vector<32x8xf32>
    %cst_49 = arith.constant dense<0.000000e+00> : vector<6x8xf32>
    %66 = tpu.matmul %1, %65, %cst_49 {dimension_numbers = #tpu.dot_dimension_numbers<[1], [0], [0], [1], [0, 0, 1, 1], [], []>} : vector<6x32xf32>, vector<32x8xf32>, vector<6x8xf32> -> vector<6x8xf32>
    %c0_50 = arith.constant 0 : index
    %c16_51 = arith.constant 16 : index
    %67 = vector.load %arg4[%c0_50, %c16_51] : memref<1x32xf32, #tpu.memory_space<vmem>>, vector<1x8xf32>
    %68 = vector.broadcast %67 : vector<1x8xf32> to vector<6x8xf32>
    %69 = arith.addf %66, %68 : vector<6x8xf32>
    %cst_52 = arith.constant 0.353553385 : f32
    %70 = vector.broadcast %cst_52 : f32 to vector<6x8xf32>
    %71 = arith.mulf %69, %70 : vector<6x8xf32>
    %c0_53 = arith.constant 0 : index
    %c16_54 = arith.constant 16 : index
    %72 = vector.load %arg5[%c0_53, %c16_54] : memref<32x32xf32, #tpu.memory_space<vmem>>, vector<32x8xf32>
    %cst_55 = arith.constant dense<0.000000e+00> : vector<6x8xf32>
    %73 = tpu.matmul %1, %72, %cst_55 {dimension_numbers = #tpu.dot_dimension_numbers<[1], [0], [0], [1], [0, 0, 1, 1], [], []>} : vector<6x32xf32>, vector<32x8xf32>, vector<6x8xf32> -> vector<6x8xf32>
    %c0_56 = arith.constant 0 : index
    %c16_57 = arith.constant 16 : index
    %74 = vector.load %arg6[%c0_56, %c16_57] : memref<1x32xf32, #tpu.memory_space<vmem>>, vector<1x8xf32>
    %75 = vector.broadcast %74 : vector<1x8xf32> to vector<6x8xf32>
    %76 = arith.addf %73, %75 : vector<6x8xf32>
    %c0_58 = arith.constant 0 : index
    %c16_59 = arith.constant 16 : index
    %77 = vector.load %arg7[%c0_58, %c16_59] : memref<32x32xf32, #tpu.memory_space<vmem>>, vector<32x8xf32>
    %cst_60 = arith.constant dense<0.000000e+00> : vector<6x8xf32>
    %78 = tpu.matmul %1, %77, %cst_60 {dimension_numbers = #tpu.dot_dimension_numbers<[1], [0], [0], [1], [0, 0, 1, 1], [], []>} : vector<6x32xf32>, vector<32x8xf32>, vector<6x8xf32> -> vector<6x8xf32>
    %c0_61 = arith.constant 0 : index
    %c16_62 = arith.constant 16 : index
    %79 = vector.load %arg8[%c0_61, %c16_62] : memref<1x32xf32, #tpu.memory_space<vmem>>, vector<1x8xf32>
    %80 = vector.broadcast %79 : vector<1x8xf32> to vector<6x8xf32>
    %81 = arith.addf %78, %80 : vector<6x8xf32>
    %cst_63 = arith.constant dense<0.000000e+00> : vector<6x6xf32>
    %82 = tpu.matmul %71, %76, %cst_63 {dimension_numbers = #tpu.dot_dimension_numbers<[1], [1], [0], [0], [0, 0, 1, 0], [], []>} : vector<6x8xf32>, vector<6x8xf32>, vector<6x6xf32> -> vector<6x6xf32>
    %cst_64 = arith.constant dense<0xFF800000> : vector<6xf32>
    %83 = vector.multi_reduction <maximumf>, %82, %cst_64 [1] : vector<6x6xf32> to vector<6xf32>
    %84 = vector.shape_cast %83 : vector<6xf32> to vector<6x1xf32>
    %85 = vector.broadcast %84 : vector<6x1xf32> to vector<6x6xf32>
    %86 = arith.subf %82, %85 : vector<6x6xf32>
    %87 = math.exp %86 : vector<6x6xf32>
    %cst_65 = arith.constant dense<0.000000e+00> : vector<6xf32>
    %88 = vector.multi_reduction <add>, %87, %cst_65 [1] : vector<6x6xf32> to vector<6xf32>
    %89 = vector.shape_cast %88 : vector<6xf32> to vector<6x1xf32>
    %90 = vector.broadcast %89 : vector<6x1xf32> to vector<6x6xf32>
    %91 = arith.divf %87, %90 : vector<6x6xf32>
    %cst_66 = arith.constant dense<0.000000e+00> : vector<6x8xf32>
    %92 = tpu.matmul %91, %81, %cst_66 {dimension_numbers = #tpu.dot_dimension_numbers<[1], [0], [0], [1], [0, 0, 1, 1], [], []>} : vector<6x6xf32>, vector<6x8xf32>, vector<6x8xf32> -> vector<6x8xf32>
    %c16_67 = arith.constant 16 : index
    %c0_68 = arith.constant 0 : index
    %93 = vector.load %arg9[%c16_67, %c0_68] : memref<32x32xf32, #tpu.memory_space<vmem>>, vector<8x32xf32>
    %cst_69 = arith.constant dense<0.000000e+00> : vector<6x32xf32>
    %94 = tpu.matmul %92, %93, %cst_69 {dimension_numbers = #tpu.dot_dimension_numbers<[1], [0], [0], [1], [0, 0, 1, 1], [], []>} : vector<6x8xf32>, vector<8x32xf32>, vector<6x32xf32> -> vector<6x32xf32>
    %95 = arith.addf %64, %94 : vector<6x32xf32>
    %c0_70 = arith.constant 0 : index
    %c24 = arith.constant 24 : index
    %96 = vector.load %arg3[%c0_70, %c24] : memref<32x32xf32, #tpu.memory_space<vmem>>, vector<32x8xf32>
    %cst_71 = arith.constant dense<0.000000e+00> : vector<6x8xf32>
    %97 = tpu.matmul %1, %96, %cst_71 {dimension_numbers = #tpu.dot_dimension_numbers<[1], [0], [0], [1], [0, 0, 1, 1], [], []>} : vector<6x32xf32>, vector<32x8xf32>, vector<6x8xf32> -> vector<6x8xf32>
    %c0_72 = arith.constant 0 : index
    %c24_73 = arith.constant 24 : index
    %98 = vector.load %arg4[%c0_72, %c24_73] : memref<1x32xf32, #tpu.memory_space<vmem>>, vector<1x8xf32>
    %99 = vector.broadcast %98 : vector<1x8xf32> to vector<6x8xf32>
    %100 = arith.addf %97, %99 : vector<6x8xf32>
    %cst_74 = arith.constant 0.353553385 : f32
    %101 = vector.broadcast %cst_74 : f32 to vector<6x8xf32>
    %102 = arith.mulf %100, %101 : vector<6x8xf32>
    %c0_75 = arith.constant 0 : index
    %c24_76 = arith.constant 24 : index
    %103 = vector.load %arg5[%c0_75, %c24_76] : memref<32x32xf32, #tpu.memory_space<vmem>>, vector<32x8xf32>
    %cst_77 = arith.constant dense<0.000000e+00> : vector<6x8xf32>
    %104 = tpu.matmul %1, %103, %cst_77 {dimension_numbers = #tpu.dot_dimension_numbers<[1], [0], [0], [1], [0, 0, 1, 1], [], []>} : vector<6x32xf32>, vector<32x8xf32>, vector<6x8xf32> -> vector<6x8xf32>
    %c0_78 = arith.constant 0 : index
    %c24_79 = arith.constant 24 : index
    %105 = vector.load %arg6[%c0_78, %c24_79] : memref<1x32xf32, #tpu.memory_space<vmem>>, vector<1x8xf32>
    %106 = vector.broadcast %105 : vector<1x8xf32> to vector<6x8xf32>
    %107 = arith.addf %104, %106 : vector<6x8xf32>
    %c0_80 = arith.constant 0 : index
    %c24_81 = arith.constant 24 : index
    %108 = vector.load %arg7[%c0_80, %c24_81] : memref<32x32xf32, #tpu.memory_space<vmem>>, vector<32x8xf32>
    %cst_82 = arith.constant dense<0.000000e+00> : vector<6x8xf32>
    %109 = tpu.matmul %1, %108, %cst_82 {dimension_numbers = #tpu.dot_dimension_numbers<[1], [0], [0], [1], [0, 0, 1, 1], [], []>} : vector<6x32xf32>, vector<32x8xf32>, vector<6x8xf32> -> vector<6x8xf32>
    %c0_83 = arith.constant 0 : index
    %c24_84 = arith.constant 24 : index
    %110 = vector.load %arg8[%c0_83, %c24_84] : memref<1x32xf32, #tpu.memory_space<vmem>>, vector<1x8xf32>
    %111 = vector.broadcast %110 : vector<1x8xf32> to vector<6x8xf32>
    %112 = arith.addf %109, %111 : vector<6x8xf32>
    %cst_85 = arith.constant dense<0.000000e+00> : vector<6x6xf32>
    %113 = tpu.matmul %102, %107, %cst_85 {dimension_numbers = #tpu.dot_dimension_numbers<[1], [1], [0], [0], [0, 0, 1, 0], [], []>} : vector<6x8xf32>, vector<6x8xf32>, vector<6x6xf32> -> vector<6x6xf32>
    %cst_86 = arith.constant dense<0xFF800000> : vector<6xf32>
    %114 = vector.multi_reduction <maximumf>, %113, %cst_86 [1] : vector<6x6xf32> to vector<6xf32>
    %115 = vector.shape_cast %114 : vector<6xf32> to vector<6x1xf32>
    %116 = vector.broadcast %115 : vector<6x1xf32> to vector<6x6xf32>
    %117 = arith.subf %113, %116 : vector<6x6xf32>
    %118 = math.exp %117 : vector<6x6xf32>
    %cst_87 = arith.constant dense<0.000000e+00> : vector<6xf32>
    %119 = vector.multi_reduction <add>, %118, %cst_87 [1] : vector<6x6xf32> to vector<6xf32>
    %120 = vector.shape_cast %119 : vector<6xf32> to vector<6x1xf32>
    %121 = vector.broadcast %120 : vector<6x1xf32> to vector<6x6xf32>
    %122 = arith.divf %118, %121 : vector<6x6xf32>
    %cst_88 = arith.constant dense<0.000000e+00> : vector<6x8xf32>
    %123 = tpu.matmul %122, %112, %cst_88 {dimension_numbers = #tpu.dot_dimension_numbers<[1], [0], [0], [1], [0, 0, 1, 1], [], []>} : vector<6x6xf32>, vector<6x8xf32>, vector<6x8xf32> -> vector<6x8xf32>
    %c24_89 = arith.constant 24 : index
    %c0_90 = arith.constant 0 : index
    %124 = vector.load %arg9[%c24_89, %c0_90] : memref<32x32xf32, #tpu.memory_space<vmem>>, vector<8x32xf32>
    %cst_91 = arith.constant dense<0.000000e+00> : vector<6x32xf32>
    %125 = tpu.matmul %123, %124, %cst_91 {dimension_numbers = #tpu.dot_dimension_numbers<[1], [0], [0], [1], [0, 0, 1, 1], [], []>} : vector<6x8xf32>, vector<8x32xf32>, vector<6x32xf32> -> vector<6x32xf32>
    %126 = arith.addf %95, %125 : vector<6x32xf32>
    %c0_92 = arith.constant 0 : index
    %c0_93 = arith.constant 0 : index
    %127 = vector.load %arg10[%c0_92, %c0_93] : memref<1x32xf32, #tpu.memory_space<vmem>>, vector<1x32xf32>
    %128 = vector.broadcast %127 : vector<1x32xf32> to vector<6x32xf32>
    %129 = arith.addf %126, %128 : vector<6x32xf32>
    %130 = arith.addf %1, %129 : vector<6x32xf32>
    %c0_94 = arith.constant 0 : index
    %c0_95 = arith.constant 0 : index
    %131 = vector.load %arg11[%c0_94, %c0_95] : memref<1x32xf32, #tpu.memory_space<vmem>>, vector<1x32xf32>
    %c0_96 = arith.constant 0 : index
    %c0_97 = arith.constant 0 : index
    %132 = vector.load %arg12[%c0_96, %c0_97] : memref<1x32xf32, #tpu.memory_space<vmem>>, vector<1x32xf32>
    %cst_98 = arith.constant dense<0.000000e+00> : vector<6xf32>
    %133 = vector.multi_reduction <add>, %130, %cst_98 [1] : vector<6x32xf32> to vector<6xf32>
    %134 = vector.shape_cast %133 : vector<6xf32> to vector<6x1xf32>
    %cst_99 = arith.constant 3.200000e+01 : f32
    %135 = vector.broadcast %cst_99 : f32 to vector<6x1xf32>
    %136 = arith.divf %134, %135 : vector<6x1xf32>
    %137 = vector.broadcast %136 : vector<6x1xf32> to vector<6x32xf32>
    %138 = arith.subf %130, %137 : vector<6x32xf32>
    %139 = arith.mulf %138, %138 : vector<6x32xf32>
    %cst_100 = arith.constant dense<0.000000e+00> : vector<6xf32>
    %140 = vector.multi_reduction <add>, %139, %cst_100 [1] : vector<6x32xf32> to vector<6xf32>
    %141 = vector.shape_cast %140 : vector<6xf32> to vector<6x1xf32>
    %cst_101 = arith.constant 3.200000e+01 : f32
    %142 = vector.broadcast %cst_101 : f32 to vector<6x1xf32>
    %143 = arith.divf %141, %142 : vector<6x1xf32>
    %cst_102 = arith.constant 9.99999974E-6 : f32
    %144 = vector.broadcast %cst_102 : f32 to vector<6x1xf32>
    %145 = arith.addf %143, %144 : vector<6x1xf32>
    %146 = math.rsqrt %145 : vector<6x1xf32>
    %147 = vector.broadcast %146 : vector<6x1xf32> to vector<6x32xf32>
    %148 = arith.mulf %138, %147 : vector<6x32xf32>
    %149 = vector.broadcast %131 : vector<1x32xf32> to vector<6x32xf32>
    %150 = arith.mulf %148, %149 : vector<6x32xf32>
    %151 = vector.broadcast %132 : vector<1x32xf32> to vector<6x32xf32>
    %152 = arith.addf %150, %151 : vector<6x32xf32>
    %c0_103 = arith.constant 0 : index
    %c0_104 = arith.constant 0 : index
    %153 = vector.load %arg13[%c0_103, %c0_104] : memref<32x128xf32, #tpu.memory_space<vmem>>, vector<32x128xf32>
    %cst_105 = arith.constant dense<0.000000e+00> : vector<6x128xf32>
    %154 = tpu.matmul %152, %153, %cst_105 {dimension_numbers = #tpu.dot_dimension_numbers<[1], [0], [0], [1], [0, 0, 1, 1], [], []>} : vector<6x32xf32>, vector<32x128xf32>, vector<6x128xf32> -> vector<6x128xf32>
    %c0_106 = arith.constant 0 : index
    %c0_107 = arith.constant 0 : index
    %155 = vector.load %arg14[%c0_106, %c0_107] : memref<1x128xf32, #tpu.memory_space<vmem>>, vector<1x128xf32>
    %156 = vector.broadcast %155 : vector<1x128xf32> to vector<6x128xf32>
    %157 = arith.addf %154, %156 : vector<6x128xf32>
    %158 = arith.mulf %157, %157 : vector<6x128xf32>
    %159 = arith.mulf %157, %158 : vector<6x128xf32>
    %cst_108 = arith.constant 4.471500e-02 : f32
    %160 = vector.broadcast %cst_108 : f32 to vector<6x128xf32>
    %161 = arith.mulf %160, %159 : vector<6x128xf32>
    %162 = arith.addf %157, %161 : vector<6x128xf32>
    %cst_109 = arith.constant 0.797884583 : f32
    %163 = vector.broadcast %cst_109 : f32 to vector<6x128xf32>
    %164 = arith.mulf %163, %162 : vector<6x128xf32>
    %165 = math.tanh %164 : vector<6x128xf32>
    %cst_110 = arith.constant 1.000000e+00 : f32
    %166 = vector.broadcast %cst_110 : f32 to vector<6x128xf32>
    %167 = arith.addf %166, %165 : vector<6x128xf32>
    %cst_111 = arith.constant 5.000000e-01 : f32
    %168 = vector.broadcast %cst_111 : f32 to vector<6x128xf32>
    %169 = arith.mulf %168, %167 : vector<6x128xf32>
    %170 = arith.mulf %157, %169 : vector<6x128xf32>
    %c0_112 = arith.constant 0 : index
    %c0_113 = arith.constant 0 : index
    %171 = vector.load %arg15[%c0_112, %c0_113] : memref<128x32xf32, #tpu.memory_space<vmem>>, vector<128x32xf32>
    %cst_114 = arith.constant dense<0.000000e+00> : vector<6x32xf32>
    %172 = tpu.matmul %170, %171, %cst_114 {dimension_numbers = #tpu.dot_dimension_numbers<[1], [0], [0], [1], [0, 0, 1, 1], [], []>} : vector<6x128xf32>, vector<128x32xf32>, vector<6x32xf32> -> vector<6x32xf32>
    %173 = arith.addf %152, %172 : vector<6x32xf32>
    %c0_115 = arith.constant 0 : index
    %c0_116 = arith.constant 0 : index
    %174 = vector.load %arg16[%c0_115, %c0_116] : memref<1x32xf32, #tpu.memory_space<vmem>>, vector<1x32xf32>
    %175 = vector.broadcast %174 : vector<1x32xf32> to vector<6x32xf32>
    %176 = arith.addf %173, %175 : vector<6x32xf32>
    %c0_117 = arith.constant 0 : index
    %c0_118 = arith.constant 0 : index
    %177 = vector.load %arg17[%c0_117, %c0_118] : memref<1x32xf32, #tpu.memory_space<vmem>>, vector<1x32xf32>
    %c0_119 = arith.constant 0 : index
    %c0_120 = arith.constant 0 : index
    %178 = vector.load %arg18[%c0_119, %c0_120] : memref<1x32xf32, #tpu.memory_space<vmem>>, vector<1x32xf32>
    %cst_121 = arith.constant dense<0.000000e+00> : vector<6xf32>
    %179 = vector.multi_reduction <add>, %176, %cst_121 [1] : vector<6x32xf32> to vector<6xf32>
    %180 = vector.shape_cast %179 : vector<6xf32> to vector<6x1xf32>
    %cst_122 = arith.constant 3.200000e+01 : f32
    %181 = vector.broadcast %cst_122 : f32 to vector<6x1xf32>
    %182 = arith.divf %180, %181 : vector<6x1xf32>
    %183 = vector.broadcast %182 : vector<6x1xf32> to vector<6x32xf32>
    %184 = arith.subf %176, %183 : vector<6x32xf32>
    %185 = arith.mulf %184, %184 : vector<6x32xf32>
    %cst_123 = arith.constant dense<0.000000e+00> : vector<6xf32>
    %186 = vector.multi_reduction <add>, %185, %cst_123 [1] : vector<6x32xf32> to vector<6xf32>
    %187 = vector.shape_cast %186 : vector<6xf32> to vector<6x1xf32>
    %cst_124 = arith.constant 3.200000e+01 : f32
    %188 = vector.broadcast %cst_124 : f32 to vector<6x1xf32>
    %189 = arith.divf %187, %188 : vector<6x1xf32>
    %cst_125 = arith.constant 9.99999974E-6 : f32
    %190 = vector.broadcast %cst_125 : f32 to vector<6x1xf32>
    %191 = arith.addf %189, %190 : vector<6x1xf32>
    %192 = math.rsqrt %191 : vector<6x1xf32>
    %193 = vector.broadcast %192 : vector<6x1xf32> to vector<6x32xf32>
    %194 = arith.mulf %184, %193 : vector<6x32xf32>
    %195 = vector.broadcast %177 : vector<1x32xf32> to vector<6x32xf32>
    %196 = arith.mulf %194, %195 : vector<6x32xf32>
    %197 = vector.broadcast %178 : vector<1x32xf32> to vector<6x32xf32>
    %198 = arith.addf %196, %197 : vector<6x32xf32>
    %c0_126 = arith.constant 0 : index
    %c0_127 = arith.constant 0 : index
    %c0_128 = arith.constant 0 : index
    %c0_129 = arith.constant 0 : index
    %199 = vector.load %arg19[%c0_126, %c0_127, %c0_128, %c0_129] : memref<1x1x6x32xf32, #tpu.memory_space<vmem>>, vector<1x1x6x32xf32>
    %200 = vector.shape_cast %199 : vector<1x1x6x32xf32> to vector<6x32xf32>
    %201 = vector.shape_cast %198 : vector<6x32xf32> to vector<1x1x6x32xf32>
    tpu.vector_store %arg19[%c0_126, %c0_127, %c0_128, %c0_129], %201 {strides = array<i32>} : memref<1x1x6x32xf32, #tpu.memory_space<vmem>>, vector<1x1x6x32xf32>,
    return
  }
  func.func @transform_0(%arg0: i32, %arg1: i32) -> (i32, i32, i32, i32) {
    %c0_i32 = arith.constant 0 : i32
    %c0_i32_0 = arith.constant 0 : i32
    %c0_i32_1 = arith.constant 0 : i32
    return %arg0, %arg1, %c0_i32, %c0_i32_0 : i32, i32, i32, i32
  }
  func.func @transform_1(%arg0: i32, %arg1: i32) -> (i32, i32) {
    %c0_i32 = arith.constant 0 : i32
    %c0_i32_0 = arith.constant 0 : i32
    %c0_i32_1 = arith.constant 0 : i32
    return %c0_i32, %c0_i32_0 : i32, i32
  }
  func.func @transform_2(%arg0: i32, %arg1: i32) -> (i32, i32) {
    %c0_i32 = arith.constant 0 : i32
    %c0_i32_0 = arith.constant 0 : i32
    %c0_i32_1 = arith.constant 0 : i32
    return %c0_i32, %c0_i32_0 : i32, i32
  }
  func.func @transform_3(%arg0: i32, %arg1: i32) -> (i32, i32) {
    %c0_i32 = arith.constant 0 : i32
    %c0_i32_0 = arith.constant 0 : i32
    %c0_i32_1 = arith.constant 0 : i32
    return %c0_i32, %c0_i32_0 : i32, i32
  }
  func.func @transform_4(%arg0: i32, %arg1: i32) -> (i32, i32) {
    %c0_i32 = arith.constant 0 : i32
    %c0_i32_0 = arith.constant 0 : i32
    %c0_i32_1 = arith.constant 0 : i32
    return %c0_i32, %c0_i32_0 : i32, i32
  }
  func.func @transform_5(%arg0: i32, %arg1: i32) -> (i32, i32) {
    %c0_i32 = arith.constant 0 : i32
    %c0_i32_0 = arith.constant 0 : i32
    %c0_i32_1 = arith.constant 0 : i32
    return %c0_i32, %c0_i32_0 : i32, i32
  }
  func.func @transform_6(%arg0: i32, %arg1: i32) -> (i32, i32) {
    %c0_i32 = arith.constant 0 : i32
    %c0_i32_0 = arith.constant 0 : i32
    %c0_i32_1 = arith.constant 0 : i32
    return %c0_i32, %c0_i32_0 : i32, i32
  }
  func.func @transform_7(%arg0: i32, %arg1: i32) -> (i32, i32) {
    %c0_i32 = arith.constant 0 : i32
    %c0_i32_0 = arith.constant 0 : i32
    %c0_i32_1 = arith.constant 0 : i32
    return %c0_i32, %c0_i32_0 : i32, i32
  }
  func.func @transform_8(%arg0: i32, %arg1: i32) -> (i32, i32) {
    %c0_i32 = arith.constant 0 : i32
    %c0_i32_0 = arith.constant 0 : i32
    %c0_i32_1 = arith.constant 0 : i32
    return %c0_i32, %c0_i32_0 : i32, i32
  }
  func.func @transform_9(%arg0: i32, %arg1: i32) -> (i32, i32) {
    %c0_i32 = arith.constant 0 : i32
    %c0_i32_0 = arith.constant 0 : i32
    %c0_i32_1 = arith.constant 0 : i32
    return %c0_i32, %c0_i32_0 : i32, i32
  }
  func.func @transform_10(%arg0: i32, %arg1: i32) -> (i32, i32) {
    %c0_i32 = arith.constant 0 : i32
    %c0_i32_0 = arith.constant 0 : i32
    %c0_i32_1 = arith.constant 0 : i32
    return %c0_i32, %c0_i32_0 : i32, i32
  }
  func.func @transform_11(%arg0: i32, %arg1: i32) -> (i32, i32) {
    %c0_i32 = arith.constant 0 : i32
    %c0_i32_0 = arith.constant 0 : i32
    %c0_i32_1 = arith.constant 0 : i32
    return %c0_i32, %c0_i32_0 : i32, i32
  }
  func.func @transform_12(%arg0: i32, %arg1: i32) -> (i32, i32) {
    %c0_i32 = arith.constant 0 : i32
    %c0_i32_0 = arith.constant 0 : i32
    %c0_i32_1 = arith.constant 0 : i32
    return %c0_i32, %c0_i32_0 : i32, i32
  }
  func.func @transform_13(%arg0: i32, %arg1: i32) -> (i32, i32) {
    %c0_i32 = arith.constant 0 : i32
    %c0_i32_0 = arith.constant 0 : i32
    %c0_i32_1 = arith.constant 0 : i32
    return %c0_i32, %c0_i32_0 : i32, i32
  }
  func.func @transform_14(%arg0: i32, %arg1: i32) -> (i32, i32) {
    %c0_i32 = arith.constant 0 : i32
    %c0_i32_0 = arith.constant 0 : i32
    %c0_i32_1 = arith.constant 0 : i32
    return %c0_i32, %c0_i32_0 : i32, i32
  }
  func.func @transform_15(%arg0: i32, %arg1: i32) -> (i32, i32) {
    %c0_i32 = arith.constant 0 : i32
    %c0_i32_0 = arith.constant 0 : i32
    %c0_i32_1 = arith.constant 0 : i32
    return %c0_i32, %c0_i32_0 : i32, i32
  }
  func.func @transform_16(%arg0: i32, %arg1: i32) -> (i32, i32) {
    %c0_i32 = arith.constant 0 : i32
    %c0_i32_0 = arith.constant 0 : i32
    %c0_i32_1 = arith.constant 0 : i32
    return %c0_i32, %c0_i32_0 : i32, i32
  }
  func.func @transform_17(%arg0: i32, %arg1: i32) -> (i32, i32, i32, i32) {
    %c0_i32 = arith.constant 0 : i32
    %c0_i32_0 = arith.constant 0 : i32
    %c0_i32_1 = arith.constant 0 : i32
    return %arg0, %arg1, %c0_i32, %c0_i32_0 : i32, i32, i32, i32
  }
}

module attributes {stable_mosaic.version = 11 : i64} {
  func.func @kernel(%arg0: i32, %arg1: i32, %arg2: memref<1x3x32xf32, #tpu.memory_space<vmem>>, %arg3: memref<1x1x4x32xf32, #tpu.memory_space<vmem>>, %arg4: memref<32x32xf32, #tpu.memory_space<vmem>>, %arg5: memref<1x32xf32, #tpu.memory_space<vmem>>, %arg6: memref<32x32xf32, #tpu.memory_space<vmem>>, %arg7: memref<1x32xf32, #tpu.memory_space<vmem>>, %arg8: memref<32x32xf32, #tpu.memory_space<vmem>>, %arg9: memref<1x32xf32, #tpu.memory_space<vmem>>, %arg10: memref<32x32xf32, #tpu.memory_space<vmem>>, %arg11: memref<1x32xf32, #tpu.memory_space<vmem>>, %arg12: memref<1x1x3x32xf32, #tpu.memory_space<vmem>>) attributes {dimension_semantics = [#tpu.dimension_semantics<parallel>, #tpu.dimension_semantics<parallel>], iteration_bounds = array<i64: 2, 6>, scalar_prefetch = 0 : i64, scratch_operands = 0 : i64, tpu.core_type = #tpu.core_type<tc>, window_params = [{transform_indices = @transform_0, window_bounds = array<i64: 1, 3, 32>}, {transform_indices = @transform_1, window_bounds = array<i64: 1, 1, 4, 32>}, {pipeline_mode = #tpu.pipeline_mode<synchronous>, transform_indices = @transform_2, window_bounds = array<i64: 32, 32>}, {pipeline_mode = #tpu.pipeline_mode<synchronous>, transform_indices = @transform_3, window_bounds = array<i64: 1, 32>}, {pipeline_mode = #tpu.pipeline_mode<synchronous>, transform_indices = @transform_4, window_bounds = array<i64: 32, 32>}, {pipeline_mode = #tpu.pipeline_mode<synchronous>, transform_indices = @transform_5, window_bounds = array<i64: 1, 32>}, {pipeline_mode = #tpu.pipeline_mode<synchronous>, transform_indices = @transform_6, window_bounds = array<i64: 32, 32>}, {pipeline_mode = #tpu.pipeline_mode<synchronous>, transform_indices = @transform_7, window_bounds = array<i64: 1, 32>}, {pipeline_mode = #tpu.pipeline_mode<synchronous>, transform_indices = @transform_8, window_bounds = array<i64: 32, 32>}, {pipeline_mode = #tpu.pipeline_mode<synchronous>, transform_indices = @transform_9, window_bounds = array<i64: 1, 32>}, {transform_indices = @transform_10, window_bounds = array<i64: 1, 1, 3, 32>}]} {
    %c0 = arith.constant 0 : index
    %c0_0 = arith.constant 0 : index
    %c0_1 = arith.constant 0 : index
    %0 = vector.load %arg2[%c0, %c0_0, %c0_1] : memref<1x3x32xf32, #tpu.memory_space<vmem>>, vector<1x3x32xf32>
    %1 = vector.shape_cast %0 : vector<1x3x32xf32> to vector<3x32xf32>
    %c0_2 = arith.constant 0 : index
    %c0_3 = arith.constant 0 : index
    %c0_4 = arith.constant 0 : index
    %c0_5 = arith.constant 0 : index
    %2 = vector.load %arg3[%c0_2, %c0_3, %c0_4, %c0_5] : memref<1x1x4x32xf32, #tpu.memory_space<vmem>>, vector<1x1x4x32xf32>
    %3 = vector.shape_cast %2 : vector<1x1x4x32xf32> to vector<4x32xf32>
    %cst = arith.constant 0.000000e+00 : f32
    %4 = vector.broadcast %cst : f32 to vector<3x32xf32>
    %c0_6 = arith.constant 0 : index
    %c0_7 = arith.constant 0 : index
    %5 = vector.load %arg4[%c0_6, %c0_7] : memref<32x32xf32, #tpu.memory_space<vmem>>, vector<32x8xf32>
    %cst_8 = arith.constant dense<0.000000e+00> : vector<3x8xf32>
    %6 = tpu.matmul %1, %5, %cst_8 {dimension_numbers = #tpu.dot_dimension_numbers<[1], [0], [0], [1], [0, 0, 1, 1], [], []>} : vector<3x32xf32>, vector<32x8xf32>, vector<3x8xf32> -> vector<3x8xf32>
    %c0_9 = arith.constant 0 : index
    %c0_10 = arith.constant 0 : index
    %7 = vector.load %arg5[%c0_9, %c0_10] : memref<1x32xf32, #tpu.memory_space<vmem>>, vector<1x8xf32>
    %8 = vector.broadcast %7 : vector<1x8xf32> to vector<3x8xf32>
    %9 = arith.addf %6, %8 : vector<3x8xf32>
    %cst_11 = arith.constant 0.353553385 : f32
    %10 = vector.broadcast %cst_11 : f32 to vector<3x8xf32>
    %11 = arith.mulf %9, %10 : vector<3x8xf32>
    %c0_12 = arith.constant 0 : index
    %c0_13 = arith.constant 0 : index
    %12 = vector.load %arg6[%c0_12, %c0_13] : memref<32x32xf32, #tpu.memory_space<vmem>>, vector<32x8xf32>
    %cst_14 = arith.constant dense<0.000000e+00> : vector<4x8xf32>
    %13 = tpu.matmul %3, %12, %cst_14 {dimension_numbers = #tpu.dot_dimension_numbers<[1], [0], [0], [1], [0, 0, 1, 1], [], []>} : vector<4x32xf32>, vector<32x8xf32>, vector<4x8xf32> -> vector<4x8xf32>
    %c0_15 = arith.constant 0 : index
    %c0_16 = arith.constant 0 : index
    %14 = vector.load %arg7[%c0_15, %c0_16] : memref<1x32xf32, #tpu.memory_space<vmem>>, vector<1x8xf32>
    %15 = vector.broadcast %14 : vector<1x8xf32> to vector<4x8xf32>
    %16 = arith.addf %13, %15 : vector<4x8xf32>
    %c0_17 = arith.constant 0 : index
    %c0_18 = arith.constant 0 : index
    %17 = vector.load %arg8[%c0_17, %c0_18] : memref<32x32xf32, #tpu.memory_space<vmem>>, vector<32x8xf32>
    %cst_19 = arith.constant dense<0.000000e+00> : vector<4x8xf32>
    %18 = tpu.matmul %3, %17, %cst_19 {dimension_numbers = #tpu.dot_dimension_numbers<[1], [0], [0], [1], [0, 0, 1, 1], [], []>} : vector<4x32xf32>, vector<32x8xf32>, vector<4x8xf32> -> vector<4x8xf32>
    %c0_20 = arith.constant 0 : index
    %c0_21 = arith.constant 0 : index
    %19 = vector.load %arg9[%c0_20, %c0_21] : memref<1x32xf32, #tpu.memory_space<vmem>>, vector<1x8xf32>
    %20 = vector.broadcast %19 : vector<1x8xf32> to vector<4x8xf32>
    %21 = arith.addf %18, %20 : vector<4x8xf32>
    %cst_22 = arith.constant dense<0.000000e+00> : vector<3x4xf32>
    %22 = tpu.matmul %11, %16, %cst_22 {dimension_numbers = #tpu.dot_dimension_numbers<[1], [1], [0], [0], [0, 0, 1, 0], [], []>} : vector<3x8xf32>, vector<4x8xf32>, vector<3x4xf32> -> vector<3x4xf32>
    %cst_23 = arith.constant dense<0xFF800000> : vector<3xf32>
    %23 = vector.multi_reduction <maximumf>, %22, %cst_23 [1] : vector<3x4xf32> to vector<3xf32>
    %24 = vector.shape_cast %23 : vector<3xf32> to vector<3x1xf32>
    %25 = vector.broadcast %24 : vector<3x1xf32> to vector<3x4xf32>
    %26 = arith.subf %22, %25 : vector<3x4xf32>
    %27 = math.exp %26 : vector<3x4xf32>
    %cst_24 = arith.constant dense<0.000000e+00> : vector<3xf32>
    %28 = vector.multi_reduction <add>, %27, %cst_24 [1] : vector<3x4xf32> to vector<3xf32>
    %29 = vector.shape_cast %28 : vector<3xf32> to vector<3x1xf32>
    %30 = vector.broadcast %29 : vector<3x1xf32> to vector<3x4xf32>
    %31 = arith.divf %27, %30 : vector<3x4xf32>
    %cst_25 = arith.constant dense<0.000000e+00> : vector<3x8xf32>
    %32 = tpu.matmul %31, %21, %cst_25 {dimension_numbers = #tpu.dot_dimension_numbers<[1], [0], [0], [1], [0, 0, 1, 1], [], []>} : vector<3x4xf32>, vector<4x8xf32>, vector<3x8xf32> -> vector<3x8xf32>
    %c0_26 = arith.constant 0 : index
    %c0_27 = arith.constant 0 : index
    %33 = vector.load %arg10[%c0_26, %c0_27] : memref<32x32xf32, #tpu.memory_space<vmem>>, vector<8x32xf32>
    %cst_28 = arith.constant dense<0.000000e+00> : vector<3x32xf32>
    %34 = tpu.matmul %32, %33, %cst_28 {dimension_numbers = #tpu.dot_dimension_numbers<[1], [0], [0], [1], [0, 0, 1, 1], [], []>} : vector<3x8xf32>, vector<8x32xf32>, vector<3x32xf32> -> vector<3x32xf32>
    %35 = arith.addf %4, %34 : vector<3x32xf32>
    %c0_29 = arith.constant 0 : index
    %c8 = arith.constant 8 : index
    %36 = vector.load %arg4[%c0_29, %c8] : memref<32x32xf32, #tpu.memory_space<vmem>>, vector<32x8xf32>
    %cst_30 = arith.constant dense<0.000000e+00> : vector<3x8xf32>
    %37 = tpu.matmul %1, %36, %cst_30 {dimension_numbers = #tpu.dot_dimension_numbers<[1], [0], [0], [1], [0, 0, 1, 1], [], []>} : vector<3x32xf32>, vector<32x8xf32>, vector<3x8xf32> -> vector<3x8xf32>
    %c0_31 = arith.constant 0 : index
    %c8_32 = arith.constant 8 : index
    %38 = vector.load %arg5[%c0_31, %c8_32] : memref<1x32xf32, #tpu.memory_space<vmem>>, vector<1x8xf32>
    %39 = vector.broadcast %38 : vector<1x8xf32> to vector<3x8xf32>
    %40 = arith.addf %37, %39 : vector<3x8xf32>
    %cst_33 = arith.constant 0.353553385 : f32
    %41 = vector.broadcast %cst_33 : f32 to vector<3x8xf32>
    %42 = arith.mulf %40, %41 : vector<3x8xf32>
    %c0_34 = arith.constant 0 : index
    %c8_35 = arith.constant 8 : index
    %43 = vector.load %arg6[%c0_34, %c8_35] : memref<32x32xf32, #tpu.memory_space<vmem>>, vector<32x8xf32>
    %cst_36 = arith.constant dense<0.000000e+00> : vector<4x8xf32>
    %44 = tpu.matmul %3, %43, %cst_36 {dimension_numbers = #tpu.dot_dimension_numbers<[1], [0], [0], [1], [0, 0, 1, 1], [], []>} : vector<4x32xf32>, vector<32x8xf32>, vector<4x8xf32> -> vector<4x8xf32>
    %c0_37 = arith.constant 0 : index
    %c8_38 = arith.constant 8 : index
    %45 = vector.load %arg7[%c0_37, %c8_38] : memref<1x32xf32, #tpu.memory_space<vmem>>, vector<1x8xf32>
    %46 = vector.broadcast %45 : vector<1x8xf32> to vector<4x8xf32>
    %47 = arith.addf %44, %46 : vector<4x8xf32>
    %c0_39 = arith.constant 0 : index
    %c8_40 = arith.constant 8 : index
    %48 = vector.load %arg8[%c0_39, %c8_40] : memref<32x32xf32, #tpu.memory_space<vmem>>, vector<32x8xf32>
    %cst_41 = arith.constant dense<0.000000e+00> : vector<4x8xf32>
    %49 = tpu.matmul %3, %48, %cst_41 {dimension_numbers = #tpu.dot_dimension_numbers<[1], [0], [0], [1], [0, 0, 1, 1], [], []>} : vector<4x32xf32>, vector<32x8xf32>, vector<4x8xf32> -> vector<4x8xf32>
    %c0_42 = arith.constant 0 : index
    %c8_43 = arith.constant 8 : index
    %50 = vector.load %arg9[%c0_42, %c8_43] : memref<1x32xf32, #tpu.memory_space<vmem>>, vector<1x8xf32>
    %51 = vector.broadcast %50 : vector<1x8xf32> to vector<4x8xf32>
    %52 = arith.addf %49, %51 : vector<4x8xf32>
    %cst_44 = arith.constant dense<0.000000e+00> : vector<3x4xf32>
    %53 = tpu.matmul %42, %47, %cst_44 {dimension_numbers = #tpu.dot_dimension_numbers<[1], [1], [0], [0], [0, 0, 1, 0], [], []>} : vector<3x8xf32>, vector<4x8xf32>, vector<3x4xf32> -> vector<3x4xf32>
    %cst_45 = arith.constant dense<0xFF800000> : vector<3xf32>
    %54 = vector.multi_reduction <maximumf>, %53, %cst_45 [1] : vector<3x4xf32> to vector<3xf32>
    %55 = vector.shape_cast %54 : vector<3xf32> to vector<3x1xf32>
    %56 = vector.broadcast %55 : vector<3x1xf32> to vector<3x4xf32>
    %57 = arith.subf %53, %56 : vector<3x4xf32>
    %58 = math.exp %57 : vector<3x4xf32>
    %cst_46 = arith.constant dense<0.000000e+00> : vector<3xf32>
    %59 = vector.multi_reduction <add>, %58, %cst_46 [1] : vector<3x4xf32> to vector<3xf32>
    %60 = vector.shape_cast %59 : vector<3xf32> to vector<3x1xf32>
    %61 = vector.broadcast %60 : vector<3x1xf32> to vector<3x4xf32>
    %62 = arith.divf %58, %61 : vector<3x4xf32>
    %cst_47 = arith.constant dense<0.000000e+00> : vector<3x8xf32>
    %63 = tpu.matmul %62, %52, %cst_47 {dimension_numbers = #tpu.dot_dimension_numbers<[1], [0], [0], [1], [0, 0, 1, 1], [], []>} : vector<3x4xf32>, vector<4x8xf32>, vector<3x8xf32> -> vector<3x8xf32>
    %c8_48 = arith.constant 8 : index
    %c0_49 = arith.constant 0 : index
    %64 = vector.load %arg10[%c8_48, %c0_49] : memref<32x32xf32, #tpu.memory_space<vmem>>, vector<8x32xf32>
    %cst_50 = arith.constant dense<0.000000e+00> : vector<3x32xf32>
    %65 = tpu.matmul %63, %64, %cst_50 {dimension_numbers = #tpu.dot_dimension_numbers<[1], [0], [0], [1], [0, 0, 1, 1], [], []>} : vector<3x8xf32>, vector<8x32xf32>, vector<3x32xf32> -> vector<3x32xf32>
    %66 = arith.addf %35, %65 : vector<3x32xf32>
    %c0_51 = arith.constant 0 : index
    %c16 = arith.constant 16 : index
    %67 = vector.load %arg4[%c0_51, %c16] : memref<32x32xf32, #tpu.memory_space<vmem>>, vector<32x8xf32>
    %cst_52 = arith.constant dense<0.000000e+00> : vector<3x8xf32>
    %68 = tpu.matmul %1, %67, %cst_52 {dimension_numbers = #tpu.dot_dimension_numbers<[1], [0], [0], [1], [0, 0, 1, 1], [], []>} : vector<3x32xf32>, vector<32x8xf32>, vector<3x8xf32> -> vector<3x8xf32>
    %c0_53 = arith.constant 0 : index
    %c16_54 = arith.constant 16 : index
    %69 = vector.load %arg5[%c0_53, %c16_54] : memref<1x32xf32, #tpu.memory_space<vmem>>, vector<1x8xf32>
    %70 = vector.broadcast %69 : vector<1x8xf32> to vector<3x8xf32>
    %71 = arith.addf %68, %70 : vector<3x8xf32>
    %cst_55 = arith.constant 0.353553385 : f32
    %72 = vector.broadcast %cst_55 : f32 to vector<3x8xf32>
    %73 = arith.mulf %71, %72 : vector<3x8xf32>
    %c0_56 = arith.constant 0 : index
    %c16_57 = arith.constant 16 : index
    %74 = vector.load %arg6[%c0_56, %c16_57] : memref<32x32xf32, #tpu.memory_space<vmem>>, vector<32x8xf32>
    %cst_58 = arith.constant dense<0.000000e+00> : vector<4x8xf32>
    %75 = tpu.matmul %3, %74, %cst_58 {dimension_numbers = #tpu.dot_dimension_numbers<[1], [0], [0], [1], [0, 0, 1, 1], [], []>} : vector<4x32xf32>, vector<32x8xf32>, vector<4x8xf32> -> vector<4x8xf32>
    %c0_59 = arith.constant 0 : index
    %c16_60 = arith.constant 16 : index
    %76 = vector.load %arg7[%c0_59, %c16_60] : memref<1x32xf32, #tpu.memory_space<vmem>>, vector<1x8xf32>
    %77 = vector.broadcast %76 : vector<1x8xf32> to vector<4x8xf32>
    %78 = arith.addf %75, %77 : vector<4x8xf32>
    %c0_61 = arith.constant 0 : index
    %c16_62 = arith.constant 16 : index
    %79 = vector.load %arg8[%c0_61, %c16_62] : memref<32x32xf32, #tpu.memory_space<vmem>>, vector<32x8xf32>
    %cst_63 = arith.constant dense<0.000000e+00> : vector<4x8xf32>
    %80 = tpu.matmul %3, %79, %cst_63 {dimension_numbers = #tpu.dot_dimension_numbers<[1], [0], [0], [1], [0, 0, 1, 1], [], []>} : vector<4x32xf32>, vector<32x8xf32>, vector<4x8xf32> -> vector<4x8xf32>
    %c0_64 = arith.constant 0 : index
    %c16_65 = arith.constant 16 : index
    %81 = vector.load %arg9[%c0_64, %c16_65] : memref<1x32xf32, #tpu.memory_space<vmem>>, vector<1x8xf32>
    %82 = vector.broadcast %81 : vector<1x8xf32> to vector<4x8xf32>
    %83 = arith.addf %80, %82 : vector<4x8xf32>
    %cst_66 = arith.constant dense<0.000000e+00> : vector<3x4xf32>
    %84 = tpu.matmul %73, %78, %cst_66 {dimension_numbers = #tpu.dot_dimension_numbers<[1], [1], [0], [0], [0, 0, 1, 0], [], []>} : vector<3x8xf32>, vector<4x8xf32>, vector<3x4xf32> -> vector<3x4xf32>
    %cst_67 = arith.constant dense<0xFF800000> : vector<3xf32>
    %85 = vector.multi_reduction <maximumf>, %84, %cst_67 [1] : vector<3x4xf32> to vector<3xf32>
    %86 = vector.shape_cast %85 : vector<3xf32> to vector<3x1xf32>
    %87 = vector.broadcast %86 : vector<3x1xf32> to vector<3x4xf32>
    %88 = arith.subf %84, %87 : vector<3x4xf32>
    %89 = math.exp %88 : vector<3x4xf32>
    %cst_68 = arith.constant dense<0.000000e+00> : vector<3xf32>
    %90 = vector.multi_reduction <add>, %89, %cst_68 [1] : vector<3x4xf32> to vector<3xf32>
    %91 = vector.shape_cast %90 : vector<3xf32> to vector<3x1xf32>
    %92 = vector.broadcast %91 : vector<3x1xf32> to vector<3x4xf32>
    %93 = arith.divf %89, %92 : vector<3x4xf32>
    %cst_69 = arith.constant dense<0.000000e+00> : vector<3x8xf32>
    %94 = tpu.matmul %93, %83, %cst_69 {dimension_numbers = #tpu.dot_dimension_numbers<[1], [0], [0], [1], [0, 0, 1, 1], [], []>} : vector<3x4xf32>, vector<4x8xf32>, vector<3x8xf32> -> vector<3x8xf32>
    %c16_70 = arith.constant 16 : index
    %c0_71 = arith.constant 0 : index
    %95 = vector.load %arg10[%c16_70, %c0_71] : memref<32x32xf32, #tpu.memory_space<vmem>>, vector<8x32xf32>
    %cst_72 = arith.constant dense<0.000000e+00> : vector<3x32xf32>
    %96 = tpu.matmul %94, %95, %cst_72 {dimension_numbers = #tpu.dot_dimension_numbers<[1], [0], [0], [1], [0, 0, 1, 1], [], []>} : vector<3x8xf32>, vector<8x32xf32>, vector<3x32xf32> -> vector<3x32xf32>
    %97 = arith.addf %66, %96 : vector<3x32xf32>
    %c0_73 = arith.constant 0 : index
    %c24 = arith.constant 24 : index
    %98 = vector.load %arg4[%c0_73, %c24] : memref<32x32xf32, #tpu.memory_space<vmem>>, vector<32x8xf32>
    %cst_74 = arith.constant dense<0.000000e+00> : vector<3x8xf32>
    %99 = tpu.matmul %1, %98, %cst_74 {dimension_numbers = #tpu.dot_dimension_numbers<[1], [0], [0], [1], [0, 0, 1, 1], [], []>} : vector<3x32xf32>, vector<32x8xf32>, vector<3x8xf32> -> vector<3x8xf32>
    %c0_75 = arith.constant 0 : index
    %c24_76 = arith.constant 24 : index
    %100 = vector.load %arg5[%c0_75, %c24_76] : memref<1x32xf32, #tpu.memory_space<vmem>>, vector<1x8xf32>
    %101 = vector.broadcast %100 : vector<1x8xf32> to vector<3x8xf32>
    %102 = arith.addf %99, %101 : vector<3x8xf32>
    %cst_77 = arith.constant 0.353553385 : f32
    %103 = vector.broadcast %cst_77 : f32 to vector<3x8xf32>
    %104 = arith.mulf %102, %103 : vector<3x8xf32>
    %c0_78 = arith.constant 0 : index
    %c24_79 = arith.constant 24 : index
    %105 = vector.load %arg6[%c0_78, %c24_79] : memref<32x32xf32, #tpu.memory_space<vmem>>, vector<32x8xf32>
    %cst_80 = arith.constant dense<0.000000e+00> : vector<4x8xf32>
    %106 = tpu.matmul %3, %105, %cst_80 {dimension_numbers = #tpu.dot_dimension_numbers<[1], [0], [0], [1], [0, 0, 1, 1], [], []>} : vector<4x32xf32>, vector<32x8xf32>, vector<4x8xf32> -> vector<4x8xf32>
    %c0_81 = arith.constant 0 : index
    %c24_82 = arith.constant 24 : index
    %107 = vector.load %arg7[%c0_81, %c24_82] : memref<1x32xf32, #tpu.memory_space<vmem>>, vector<1x8xf32>
    %108 = vector.broadcast %107 : vector<1x8xf32> to vector<4x8xf32>
    %109 = arith.addf %106, %108 : vector<4x8xf32>
    %c0_83 = arith.constant 0 : index
    %c24_84 = arith.constant 24 : index
    %110 = vector.load %arg8[%c0_83, %c24_84] : memref<32x32xf32, #tpu.memory_space<vmem>>, vector<32x8xf32>
    %cst_85 = arith.constant dense<0.000000e+00> : vector<4x8xf32>
    %111 = tpu.matmul %3, %110, %cst_85 {dimension_numbers = #tpu.dot_dimension_numbers<[1], [0], [0], [1], [0, 0, 1, 1], [], []>} : vector<4x32xf32>, vector<32x8xf32>, vector<4x8xf32> -> vector<4x8xf32>
    %c0_86 = arith.constant 0 : index
    %c24_87 = arith.constant 24 : index
    %112 = vector.load %arg9[%c0_86, %c24_87] : memref<1x32xf32, #tpu.memory_space<vmem>>, vector<1x8xf32>
    %113 = vector.broadcast %112 : vector<1x8xf32> to vector<4x8xf32>
    %114 = arith.addf %111, %113 : vector<4x8xf32>
    %cst_88 = arith.constant dense<0.000000e+00> : vector<3x4xf32>
    %115 = tpu.matmul %104, %109, %cst_88 {dimension_numbers = #tpu.dot_dimension_numbers<[1], [1], [0], [0], [0, 0, 1, 0], [], []>} : vector<3x8xf32>, vector<4x8xf32>, vector<3x4xf32> -> vector<3x4xf32>
    %cst_89 = arith.constant dense<0xFF800000> : vector<3xf32>
    %116 = vector.multi_reduction <maximumf>, %115, %cst_89 [1] : vector<3x4xf32> to vector<3xf32>
    %117 = vector.shape_cast %116 : vector<3xf32> to vector<3x1xf32>
    %118 = vector.broadcast %117 : vector<3x1xf32> to vector<3x4xf32>
    %119 = arith.subf %115, %118 : vector<3x4xf32>
    %120 = math.exp %119 : vector<3x4xf32>
    %cst_90 = arith.constant dense<0.000000e+00> : vector<3xf32>
    %121 = vector.multi_reduction <add>, %120, %cst_90 [1] : vector<3x4xf32> to vector<3xf32>
    %122 = vector.shape_cast %121 : vector<3xf32> to vector<3x1xf32>
    %123 = vector.broadcast %122 : vector<3x1xf32> to vector<3x4xf32>
    %124 = arith.divf %120, %123 : vector<3x4xf32>
    %cst_91 = arith.constant dense<0.000000e+00> : vector<3x8xf32>
    %125 = tpu.matmul %124, %114, %cst_91 {dimension_numbers = #tpu.dot_dimension_numbers<[1], [0], [0], [1], [0, 0, 1, 1], [], []>} : vector<3x4xf32>, vector<4x8xf32>, vector<3x8xf32> -> vector<3x8xf32>
    %c24_92 = arith.constant 24 : index
    %c0_93 = arith.constant 0 : index
    %126 = vector.load %arg10[%c24_92, %c0_93] : memref<32x32xf32, #tpu.memory_space<vmem>>, vector<8x32xf32>
    %cst_94 = arith.constant dense<0.000000e+00> : vector<3x32xf32>
    %127 = tpu.matmul %125, %126, %cst_94 {dimension_numbers = #tpu.dot_dimension_numbers<[1], [0], [0], [1], [0, 0, 1, 1], [], []>} : vector<3x8xf32>, vector<8x32xf32>, vector<3x32xf32> -> vector<3x32xf32>
    %128 = arith.addf %97, %127 : vector<3x32xf32>
    %c0_95 = arith.constant 0 : index
    %c0_96 = arith.constant 0 : index
    %129 = vector.load %arg11[%c0_95, %c0_96] : memref<1x32xf32, #tpu.memory_space<vmem>>, vector<1x32xf32>
    %130 = vector.broadcast %129 : vector<1x32xf32> to vector<3x32xf32>
    %131 = arith.addf %128, %130 : vector<3x32xf32>
    %c0_97 = arith.constant 0 : index
    %c0_98 = arith.constant 0 : index
    %c0_99 = arith.constant 0 : index
    %c0_100 = arith.constant 0 : index
    %132 = vector.load %arg12[%c0_97, %c0_98, %c0_99, %c0_100] : memref<1x1x3x32xf32, #tpu.memory_space<vmem>>, vector<1x1x3x32xf32>
    %133 = vector.shape_cast %132 : vector<1x1x3x32xf32> to vector<3x32xf32>
    %134 = vector.shape_cast %131 : vector<3x32xf32> to vector<1x1x3x32xf32>
    tpu.vector_store %arg12[%c0_97, %c0_98, %c0_99, %c0_100], %134 {strides = array<i32>} : memref<1x1x3x32xf32, #tpu.memory_space<vmem>>, vector<1x1x3x32xf32>,
    return
  }
  func.func @transform_0(%arg0: i32, %arg1: i32) -> (i32, i32, i32) {
    %c0_i32 = arith.constant 0 : i32
    %c0_i32_0 = arith.constant 0 : i32
    %c0_i32_1 = arith.constant 0 : i32
    return %arg1, %c0_i32, %c0_i32_0 : i32, i32, i32
  }
  func.func @transform_1(%arg0: i32, %arg1: i32) -> (i32, i32, i32, i32) {
    %c0_i32 = arith.constant 0 : i32
    %c0_i32_0 = arith.constant 0 : i32
    %c0_i32_1 = arith.constant 0 : i32
    return %arg0, %arg1, %c0_i32, %c0_i32_0 : i32, i32, i32, i32
  }
  func.func @transform_2(%arg0: i32, %arg1: i32) -> (i32, i32) {
    %c0_i32 = arith.constant 0 : i32
    %c0_i32_0 = arith.constant 0 : i32
    %c0_i32_1 = arith.constant 0 : i32
    return %c0_i32, %c0_i32_0 : i32, i32
  }
  func.func @transform_3(%arg0: i32, %arg1: i32) -> (i32, i32) {
    %c0_i32 = arith.constant 0 : i32
    %c0_i32_0 = arith.constant 0 : i32
    %c0_i32_1 = arith.constant 0 : i32
    return %c0_i32, %c0_i32_0 : i32, i32
  }
  func.func @transform_4(%arg0: i32, %arg1: i32) -> (i32, i32) {
    %c0_i32 = arith.constant 0 : i32
    %c0_i32_0 = arith.constant 0 : i32
    %c0_i32_1 = arith.constant 0 : i32
    return %c0_i32, %c0_i32_0 : i32, i32
  }
  func.func @transform_5(%arg0: i32, %arg1: i32) -> (i32, i32) {
    %c0_i32 = arith.constant 0 : i32
    %c0_i32_0 = arith.constant 0 : i32
    %c0_i32_1 = arith.constant 0 : i32
    return %c0_i32, %c0_i32_0 : i32, i32
  }
  func.func @transform_6(%arg0: i32, %arg1: i32) -> (i32, i32) {
    %c0_i32 = arith.constant 0 : i32
    %c0_i32_0 = arith.constant 0 : i32
    %c0_i32_1 = arith.constant 0 : i32
    return %c0_i32, %c0_i32_0 : i32, i32
  }
  func.func @transform_7(%arg0: i32, %arg1: i32) -> (i32, i32) {
    %c0_i32 = arith.constant 0 : i32
    %c0_i32_0 = arith.constant 0 : i32
    %c0_i32_1 = arith.constant 0 : i32
    return %c0_i32, %c0_i32_0 : i32, i32
  }
  func.func @transform_8(%arg0: i32, %arg1: i32) -> (i32, i32) {
    %c0_i32 = arith.constant 0 : i32
    %c0_i32_0 = arith.constant 0 : i32
    %c0_i32_1 = arith.constant 0 : i32
    return %c0_i32, %c0_i32_0 : i32, i32
  }
  func.func @transform_9(%arg0: i32, %arg1: i32) -> (i32, i32) {
    %c0_i32 = arith.constant 0 : i32
    %c0_i32_0 = arith.constant 0 : i32
    %c0_i32_1 = arith.constant 0 : i32
    return %c0_i32, %c0_i32_0 : i32, i32
  }
  func.func @transform_10(%arg0: i32, %arg1: i32) -> (i32, i32, i32, i32) {
    %c0_i32 = arith.constant 0 : i32
    %c0_i32_0 = arith.constant 0 : i32
    %c0_i32_1 = arith.constant 0 : i32
    return %arg0, %arg1, %c0_i32, %c0_i32_0 : i32, i32, i32, i32
  }
}

module attributes {stable_mosaic.version = 11 : i64} {
  func.func @kernel(%arg0: i32, %arg1: i32, %arg2: memref<1x1x4x32xf32, #tpu.memory_space<vmem>>, %arg3: memref<1x1x3x32xf32, #tpu.memory_space<vmem>>, %arg4: memref<32x32xf32, #tpu.memory_space<vmem>>, %arg5: memref<1x32xf32, #tpu.memory_space<vmem>>, %arg6: memref<32x32xf32, #tpu.memory_space<vmem>>, %arg7: memref<1x32xf32, #tpu.memory_space<vmem>>, %arg8: memref<32x32xf32, #tpu.memory_space<vmem>>, %arg9: memref<1x32xf32, #tpu.memory_space<vmem>>, %arg10: memref<32x32xf32, #tpu.memory_space<vmem>>, %arg11: memref<1x32xf32, #tpu.memory_space<vmem>>, %arg12: memref<1x32xf32, #tpu.memory_space<vmem>>, %arg13: memref<1x32xf32, #tpu.memory_space<vmem>>, %arg14: memref<32x128xf32, #tpu.memory_space<vmem>>, %arg15: memref<1x128xf32, #tpu.memory_space<vmem>>, %arg16: memref<128x32xf32, #tpu.memory_space<vmem>>, %arg17: memref<1x32xf32, #tpu.memory_space<vmem>>, %arg18: memref<1x32xf32, #tpu.memory_space<vmem>>, %arg19: memref<1x32xf32, #tpu.memory_space<vmem>>, %arg20: memref<1x1x4x32xf32, #tpu.memory_space<vmem>>) attributes {dimension_semantics = [#tpu.dimension_semantics<parallel>, #tpu.dimension_semantics<parallel>], iteration_bounds = array<i64: 2, 6>, scalar_prefetch = 0 : i64, scratch_operands = 0 : i64, tpu.core_type = #tpu.core_type<tc>, window_params = [{transform_indices = @transform_0, window_bounds = array<i64: 1, 1, 4, 32>}, {transform_indices = @transform_1, window_bounds = array<i64: 1, 1, 3, 32>}, {pipeline_mode = #tpu.pipeline_mode<synchronous>, transform_indices = @transform_2, window_bounds = array<i64: 32, 32>}, {pipeline_mode = #tpu.pipeline_mode<synchronous>, transform_indices = @transform_3, window_bounds = array<i64: 1, 32>}, {pipeline_mode = #tpu.pipeline_mode<synchronous>, transform_indices = @transform_4, window_bounds = array<i64: 32, 32>}, {pipeline_mode = #tpu.pipeline_mode<synchronous>, transform_indices = @transform_5, window_bounds = array<i64: 1, 32>}, {pipeline_mode = #tpu.pipeline_mode<synchronous>, transform_indices = @transform_6, window_bounds = array<i64: 32, 32>}, {pipeline_mode = #tpu.pipeline_mode<synchronous>, transform_indices = @transform_7, window_bounds = array<i64: 1, 32>}, {pipeline_mode = #tpu.pipeline_mode<synchronous>, transform_indices = @transform_8, window_bounds = array<i64: 32, 32>}, {pipeline_mode = #tpu.pipeline_mode<synchronous>, transform_indices = @transform_9, window_bounds = array<i64: 1, 32>}, {pipeline_mode = #tpu.pipeline_mode<synchronous>, transform_indices = @transform_10, window_bounds = array<i64: 1, 32>}, {pipeline_mode = #tpu.pipeline_mode<synchronous>, transform_indices = @transform_11, window_bounds = array<i64: 1, 32>}, {pipeline_mode = #tpu.pipeline_mode<synchronous>, transform_indices = @transform_12, window_bounds = array<i64: 32, 128>}, {pipeline_mode = #tpu.pipeline_mode<synchronous>, transform_indices = @transform_13, window_bounds = array<i64: 1, 128>}, {pipeline_mode = #tpu.pipeline_mode<synchronous>, transform_indices = @transform_14, window_bounds = array<i64: 128, 32>}, {pipeline_mode = #tpu.pipeline_mode<synchronous>, transform_indices = @transform_15, window_bounds = array<i64: 1, 32>}, {pipeline_mode = #tpu.pipeline_mode<synchronous>, transform_indices = @transform_16, window_bounds = array<i64: 1, 32>}, {pipeline_mode = #tpu.pipeline_mode<synchronous>, transform_indices = @transform_17, window_bounds = array<i64: 1, 32>}, {transform_indices = @transform_18, window_bounds = array<i64: 1, 1, 4, 32>}]} {
    %c0 = arith.constant 0 : index
    %c0_0 = arith.constant 0 : index
    %c0_1 = arith.constant 0 : index
    %c0_2 = arith.constant 0 : index
    %0 = vector.load %arg2[%c0, %c0_0, %c0_1, %c0_2] : memref<1x1x4x32xf32, #tpu.memory_space<vmem>>, vector<1x1x4x32xf32>
    %1 = vector.shape_cast %0 : vector<1x1x4x32xf32> to vector<4x32xf32>
    %c0_3 = arith.constant 0 : index
    %c0_4 = arith.constant 0 : index
    %c0_5 = arith.constant 0 : index
    %c0_6 = arith.constant 0 : index
    %2 = vector.load %arg3[%c0_3, %c0_4, %c0_5, %c0_6] : memref<1x1x3x32xf32, #tpu.memory_space<vmem>>, vector<1x1x3x32xf32>
    %3 = vector.shape_cast %2 : vector<1x1x3x32xf32> to vector<3x32xf32>
    %cst = arith.constant 0.000000e+00 : f32
    %4 = vector.broadcast %cst : f32 to vector<4x32xf32>
    %c0_7 = arith.constant 0 : index
    %c0_8 = arith.constant 0 : index
    %5 = vector.load %arg4[%c0_7, %c0_8] : memref<32x32xf32, #tpu.memory_space<vmem>>, vector<32x8xf32>
    %cst_9 = arith.constant dense<0.000000e+00> : vector<4x8xf32>
    %6 = tpu.matmul %1, %5, %cst_9 {dimension_numbers = #tpu.dot_dimension_numbers<[1], [0], [0], [1], [0, 0, 1, 1], [], []>} : vector<4x32xf32>, vector<32x8xf32>, vector<4x8xf32> -> vector<4x8xf32>
    %c0_10 = arith.constant 0 : index
    %c0_11 = arith.constant 0 : index
    %7 = vector.load %arg5[%c0_10, %c0_11] : memref<1x32xf32, #tpu.memory_space<vmem>>, vector<1x8xf32>
    %8 = vector.broadcast %7 : vector<1x8xf32> to vector<4x8xf32>
    %9 = arith.addf %6, %8 : vector<4x8xf32>
    %cst_12 = arith.constant 0.353553385 : f32
    %10 = vector.broadcast %cst_12 : f32 to vector<4x8xf32>
    %11 = arith.mulf %9, %10 : vector<4x8xf32>
    %c0_13 = arith.constant 0 : index
    %c0_14 = arith.constant 0 : index
    %12 = vector.load %arg6[%c0_13, %c0_14] : memref<32x32xf32, #tpu.memory_space<vmem>>, vector<32x8xf32>
    %cst_15 = arith.constant dense<0.000000e+00> : vector<3x8xf32>
    %13 = tpu.matmul %3, %12, %cst_15 {dimension_numbers = #tpu.dot_dimension_numbers<[1], [0], [0], [1], [0, 0, 1, 1], [], []>} : vector<3x32xf32>, vector<32x8xf32>, vector<3x8xf32> -> vector<3x8xf32>
    %c0_16 = arith.constant 0 : index
    %c0_17 = arith.constant 0 : index
    %14 = vector.load %arg7[%c0_16, %c0_17] : memref<1x32xf32, #tpu.memory_space<vmem>>, vector<1x8xf32>
    %15 = vector.broadcast %14 : vector<1x8xf32> to vector<3x8xf32>
    %16 = arith.addf %13, %15 : vector<3x8xf32>
    %c0_18 = arith.constant 0 : index
    %c0_19 = arith.constant 0 : index
    %17 = vector.load %arg8[%c0_18, %c0_19] : memref<32x32xf32, #tpu.memory_space<vmem>>, vector<32x8xf32>
    %cst_20 = arith.constant dense<0.000000e+00> : vector<3x8xf32>
    %18 = tpu.matmul %3, %17, %cst_20 {dimension_numbers = #tpu.dot_dimension_numbers<[1], [0], [0], [1], [0, 0, 1, 1], [], []>} : vector<3x32xf32>, vector<32x8xf32>, vector<3x8xf32> -> vector<3x8xf32>
    %c0_21 = arith.constant 0 : index
    %c0_22 = arith.constant 0 : index
    %19 = vector.load %arg9[%c0_21, %c0_22] : memref<1x32xf32, #tpu.memory_space<vmem>>, vector<1x8xf32>
    %20 = vector.broadcast %19 : vector<1x8xf32> to vector<3x8xf32>
    %21 = arith.addf %18, %20 : vector<3x8xf32>
    %cst_23 = arith.constant dense<0.000000e+00> : vector<4x3xf32>
    %22 = tpu.matmul %11, %16, %cst_23 {dimension_numbers = #tpu.dot_dimension_numbers<[1], [1], [0], [0], [0, 0, 1, 0], [], []>} : vector<4x8xf32>, vector<3x8xf32>, vector<4x3xf32> -> vector<4x3xf32>
    %cst_24 = arith.constant dense<0xFF800000> : vector<4xf32>
    %23 = vector.multi_reduction <maximumf>, %22, %cst_24 [1] : vector<4x3xf32> to vector<4xf32>
    %24 = vector.shape_cast %23 : vector<4xf32> to vector<4x1xf32>
    %25 = vector.broadcast %24 : vector<4x1xf32> to vector<4x3xf32>
    %26 = arith.subf %22, %25 : vector<4x3xf32>
    %27 = math.exp %26 : vector<4x3xf32>
    %cst_25 = arith.constant dense<0.000000e+00> : vector<4xf32>
    %28 = vector.multi_reduction <add>, %27, %cst_25 [1] : vector<4x3xf32> to vector<4xf32>
    %29 = vector.shape_cast %28 : vector<4xf32> to vector<4x1xf32>
    %30 = vector.broadcast %29 : vector<4x1xf32> to vector<4x3xf32>
    %31 = arith.divf %27, %30 : vector<4x3xf32>
    %cst_26 = arith.constant dense<0.000000e+00> : vector<4x8xf32>
    %32 = tpu.matmul %31, %21, %cst_26 {dimension_numbers = #tpu.dot_dimension_numbers<[1], [0], [0], [1], [0, 0, 1, 1], [], []>} : vector<4x3xf32>, vector<3x8xf32>, vector<4x8xf32> -> vector<4x8xf32>
    %c0_27 = arith.constant 0 : index
    %c0_28 = arith.constant 0 : index
    %33 = vector.load %arg10[%c0_27, %c0_28] : memref<32x32xf32, #tpu.memory_space<vmem>>, vector<8x32xf32>
    %cst_29 = arith.constant dense<0.000000e+00> : vector<4x32xf32>
    %34 = tpu.matmul %32, %33, %cst_29 {dimension_numbers = #tpu.dot_dimension_numbers<[1], [0], [0], [1], [0, 0, 1, 1], [], []>} : vector<4x8xf32>, vector<8x32xf32>, vector<4x32xf32> -> vector<4x32xf32>
    %35 = arith.addf %4, %34 : vector<4x32xf32>
    %c0_30 = arith.constant 0 : index
    %c8 = arith.constant 8 : index
    %36 = vector.load %arg4[%c0_30, %c8] : memref<32x32xf32, #tpu.memory_space<vmem>>, vector<32x8xf32>
    %cst_31 = arith.constant dense<0.000000e+00> : vector<4x8xf32>
    %37 = tpu.matmul %1, %36, %cst_31 {dimension_numbers = #tpu.dot_dimension_numbers<[1], [0], [0], [1], [0, 0, 1, 1], [], []>} : vector<4x32xf32>, vector<32x8xf32>, vector<4x8xf32> -> vector<4x8xf32>
    %c0_32 = arith.constant 0 : index
    %c8_33 = arith.constant 8 : index
    %38 = vector.load %arg5[%c0_32, %c8_33] : memref<1x32xf32, #tpu.memory_space<vmem>>, vector<1x8xf32>
    %39 = vector.broadcast %38 : vector<1x8xf32> to vector<4x8xf32>
    %40 = arith.addf %37, %39 : vector<4x8xf32>
    %cst_34 = arith.constant 0.353553385 : f32
    %41 = vector.broadcast %cst_34 : f32 to vector<4x8xf32>
    %42 = arith.mulf %40, %41 : vector<4x8xf32>
    %c0_35 = arith.constant 0 : index
    %c8_36 = arith.constant 8 : index
    %43 = vector.load %arg6[%c0_35, %c8_36] : memref<32x32xf32, #tpu.memory_space<vmem>>, vector<32x8xf32>
    %cst_37 = arith.constant dense<0.000000e+00> : vector<3x8xf32>
    %44 = tpu.matmul %3, %43, %cst_37 {dimension_numbers = #tpu.dot_dimension_numbers<[1], [0], [0], [1], [0, 0, 1, 1], [], []>} : vector<3x32xf32>, vector<32x8xf32>, vector<3x8xf32> -> vector<3x8xf32>
    %c0_38 = arith.constant 0 : index
    %c8_39 = arith.constant 8 : index
    %45 = vector.load %arg7[%c0_38, %c8_39] : memref<1x32xf32, #tpu.memory_space<vmem>>, vector<1x8xf32>
    %46 = vector.broadcast %45 : vector<1x8xf32> to vector<3x8xf32>
    %47 = arith.addf %44, %46 : vector<3x8xf32>
    %c0_40 = arith.constant 0 : index
    %c8_41 = arith.constant 8 : index
    %48 = vector.load %arg8[%c0_40, %c8_41] : memref<32x32xf32, #tpu.memory_space<vmem>>, vector<32x8xf32>
    %cst_42 = arith.constant dense<0.000000e+00> : vector<3x8xf32>
    %49 = tpu.matmul %3, %48, %cst_42 {dimension_numbers = #tpu.dot_dimension_numbers<[1], [0], [0], [1], [0, 0, 1, 1], [], []>} : vector<3x32xf32>, vector<32x8xf32>, vector<3x8xf32> -> vector<3x8xf32>
    %c0_43 = arith.constant 0 : index
    %c8_44 = arith.constant 8 : index
    %50 = vector.load %arg9[%c0_43, %c8_44] : memref<1x32xf32, #tpu.memory_space<vmem>>, vector<1x8xf32>
    %51 = vector.broadcast %50 : vector<1x8xf32> to vector<3x8xf32>
    %52 = arith.addf %49, %51 : vector<3x8xf32>
    %cst_45 = arith.constant dense<0.000000e+00> : vector<4x3xf32>
    %53 = tpu.matmul %42, %47, %cst_45 {dimension_numbers = #tpu.dot_dimension_numbers<[1], [1], [0], [0], [0, 0, 1, 0], [], []>} : vector<4x8xf32>, vector<3x8xf32>, vector<4x3xf32> -> vector<4x3xf32>
    %cst_46 = arith.constant dense<0xFF800000> : vector<4xf32>
    %54 = vector.multi_reduction <maximumf>, %53, %cst_46 [1] : vector<4x3xf32> to vector<4xf32>
    %55 = vector.shape_cast %54 : vector<4xf32> to vector<4x1xf32>
    %56 = vector.broadcast %55 : vector<4x1xf32> to vector<4x3xf32>
    %57 = arith.subf %53, %56 : vector<4x3xf32>
    %58 = math.exp %57 : vector<4x3xf32>
    %cst_47 = arith.constant dense<0.000000e+00> : vector<4xf32>
    %59 = vector.multi_reduction <add>, %58, %cst_47 [1] : vector<4x3xf32> to vector<4xf32>
    %60 = vector.shape_cast %59 : vector<4xf32> to vector<4x1xf32>
    %61 = vector.broadcast %60 : vector<4x1xf32> to vector<4x3xf32>
    %62 = arith.divf %58, %61 : vector<4x3xf32>
    %cst_48 = arith.constant dense<0.000000e+00> : vector<4x8xf32>
    %63 = tpu.matmul %62, %52, %cst_48 {dimension_numbers = #tpu.dot_dimension_numbers<[1], [0], [0], [1], [0, 0, 1, 1], [], []>} : vector<4x3xf32>, vector<3x8xf32>, vector<4x8xf32> -> vector<4x8xf32>
    %c8_49 = arith.constant 8 : index
    %c0_50 = arith.constant 0 : index
    %64 = vector.load %arg10[%c8_49, %c0_50] : memref<32x32xf32, #tpu.memory_space<vmem>>, vector<8x32xf32>
    %cst_51 = arith.constant dense<0.000000e+00> : vector<4x32xf32>
    %65 = tpu.matmul %63, %64, %cst_51 {dimension_numbers = #tpu.dot_dimension_numbers<[1], [0], [0], [1], [0, 0, 1, 1], [], []>} : vector<4x8xf32>, vector<8x32xf32>, vector<4x32xf32> -> vector<4x32xf32>
    %66 = arith.addf %35, %65 : vector<4x32xf32>
    %c0_52 = arith.constant 0 : index
    %c16 = arith.constant 16 : index
    %67 = vector.load %arg4[%c0_52, %c16] : memref<32x32xf32, #tpu.memory_space<vmem>>, vector<32x8xf32>
    %cst_53 = arith.constant dense<0.000000e+00> : vector<4x8xf32>
    %68 = tpu.matmul %1, %67, %cst_53 {dimension_numbers = #tpu.dot_dimension_numbers<[1], [0], [0], [1], [0, 0, 1, 1], [], []>} : vector<4x32xf32>, vector<32x8xf32>, vector<4x8xf32> -> vector<4x8xf32>
    %c0_54 = arith.constant 0 : index
    %c16_55 = arith.constant 16 : index
    %69 = vector.load %arg5[%c0_54, %c16_55] : memref<1x32xf32, #tpu.memory_space<vmem>>, vector<1x8xf32>
    %70 = vector.broadcast %69 : vector<1x8xf32> to vector<4x8xf32>
    %71 = arith.addf %68, %70 : vector<4x8xf32>
    %cst_56 = arith.constant 0.353553385 : f32
    %72 = vector.broadcast %cst_56 : f32 to vector<4x8xf32>
    %73 = arith.mulf %71, %72 : vector<4x8xf32>
    %c0_57 = arith.constant 0 : index
    %c16_58 = arith.constant 16 : index
    %74 = vector.load %arg6[%c0_57, %c16_58] : memref<32x32xf32, #tpu.memory_space<vmem>>, vector<32x8xf32>
    %cst_59 = arith.constant dense<0.000000e+00> : vector<3x8xf32>
    %75 = tpu.matmul %3, %74, %cst_59 {dimension_numbers = #tpu.dot_dimension_numbers<[1], [0], [0], [1], [0, 0, 1, 1], [], []>} : vector<3x32xf32>, vector<32x8xf32>, vector<3x8xf32> -> vector<3x8xf32>
    %c0_60 = arith.constant 0 : index
    %c16_61 = arith.constant 16 : index
    %76 = vector.load %arg7[%c0_60, %c16_61] : memref<1x32xf32, #tpu.memory_space<vmem>>, vector<1x8xf32>
    %77 = vector.broadcast %76 : vector<1x8xf32> to vector<3x8xf32>
    %78 = arith.addf %75, %77 : vector<3x8xf32>
    %c0_62 = arith.constant 0 : index
    %c16_63 = arith.constant 16 : index
    %79 = vector.load %arg8[%c0_62, %c16_63] : memref<32x32xf32, #tpu.memory_space<vmem>>, vector<32x8xf32>
    %cst_64 = arith.constant dense<0.000000e+00> : vector<3x8xf32>
    %80 = tpu.matmul %3, %79, %cst_64 {dimension_numbers = #tpu.dot_dimension_numbers<[1], [0], [0], [1], [0, 0, 1, 1], [], []>} : vector<3x32xf32>, vector<32x8xf32>, vector<3x8xf32> -> vector<3x8xf32>
    %c0_65 = arith.constant 0 : index
    %c16_66 = arith.constant 16 : index
    %81 = vector.load %arg9[%c0_65, %c16_66] : memref<1x32xf32, #tpu.memory_space<vmem>>, vector<1x8xf32>
    %82 = vector.broadcast %81 : vector<1x8xf32> to vector<3x8xf32>
    %83 = arith.addf %80, %82 : vector<3x8xf32>
    %cst_67 = arith.constant dense<0.000000e+00> : vector<4x3xf32>
    %84 = tpu.matmul %73, %78, %cst_67 {dimension_numbers = #tpu.dot_dimension_numbers<[1], [1], [0], [0], [0, 0, 1, 0], [], []>} : vector<4x8xf32>, vector<3x8xf32>, vector<4x3xf32> -> vector<4x3xf32>
    %cst_68 = arith.constant dense<0xFF800000> : vector<4xf32>
    %85 = vector.multi_reduction <maximumf>, %84, %cst_68 [1] : vector<4x3xf32> to vector<4xf32>
    %86 = vector.shape_cast %85 : vector<4xf32> to vector<4x1xf32>
    %87 = vector.broadcast %86 : vector<4x1xf32> to vector<4x3xf32>
    %88 = arith.subf %84, %87 : vector<4x3xf32>
    %89 = math.exp %88 : vector<4x3xf32>
    %cst_69 = arith.constant dense<0.000000e+00> : vector<4xf32>
    %90 = vector.multi_reduction <add>, %89, %cst_69 [1] : vector<4x3xf32> to vector<4xf32>
    %91 = vector.shape_cast %90 : vector<4xf32> to vector<4x1xf32>
    %92 = vector.broadcast %91 : vector<4x1xf32> to vector<4x3xf32>
    %93 = arith.divf %89, %92 : vector<4x3xf32>
    %cst_70 = arith.constant dense<0.000000e+00> : vector<4x8xf32>
    %94 = tpu.matmul %93, %83, %cst_70 {dimension_numbers = #tpu.dot_dimension_numbers<[1], [0], [0], [1], [0, 0, 1, 1], [], []>} : vector<4x3xf32>, vector<3x8xf32>, vector<4x8xf32> -> vector<4x8xf32>
    %c16_71 = arith.constant 16 : index
    %c0_72 = arith.constant 0 : index
    %95 = vector.load %arg10[%c16_71, %c0_72] : memref<32x32xf32, #tpu.memory_space<vmem>>, vector<8x32xf32>
    %cst_73 = arith.constant dense<0.000000e+00> : vector<4x32xf32>
    %96 = tpu.matmul %94, %95, %cst_73 {dimension_numbers = #tpu.dot_dimension_numbers<[1], [0], [0], [1], [0, 0, 1, 1], [], []>} : vector<4x8xf32>, vector<8x32xf32>, vector<4x32xf32> -> vector<4x32xf32>
    %97 = arith.addf %66, %96 : vector<4x32xf32>
    %c0_74 = arith.constant 0 : index
    %c24 = arith.constant 24 : index
    %98 = vector.load %arg4[%c0_74, %c24] : memref<32x32xf32, #tpu.memory_space<vmem>>, vector<32x8xf32>
    %cst_75 = arith.constant dense<0.000000e+00> : vector<4x8xf32>
    %99 = tpu.matmul %1, %98, %cst_75 {dimension_numbers = #tpu.dot_dimension_numbers<[1], [0], [0], [1], [0, 0, 1, 1], [], []>} : vector<4x32xf32>, vector<32x8xf32>, vector<4x8xf32> -> vector<4x8xf32>
    %c0_76 = arith.constant 0 : index
    %c24_77 = arith.constant 24 : index
    %100 = vector.load %arg5[%c0_76, %c24_77] : memref<1x32xf32, #tpu.memory_space<vmem>>, vector<1x8xf32>
    %101 = vector.broadcast %100 : vector<1x8xf32> to vector<4x8xf32>
    %102 = arith.addf %99, %101 : vector<4x8xf32>
    %cst_78 = arith.constant 0.353553385 : f32
    %103 = vector.broadcast %cst_78 : f32 to vector<4x8xf32>
    %104 = arith.mulf %102, %103 : vector<4x8xf32>
    %c0_79 = arith.constant 0 : index
    %c24_80 = arith.constant 24 : index
    %105 = vector.load %arg6[%c0_79, %c24_80] : memref<32x32xf32, #tpu.memory_space<vmem>>, vector<32x8xf32>
    %cst_81 = arith.constant dense<0.000000e+00> : vector<3x8xf32>
    %106 = tpu.matmul %3, %105, %cst_81 {dimension_numbers = #tpu.dot_dimension_numbers<[1], [0], [0], [1], [0, 0, 1, 1], [], []>} : vector<3x32xf32>, vector<32x8xf32>, vector<3x8xf32> -> vector<3x8xf32>
    %c0_82 = arith.constant 0 : index
    %c24_83 = arith.constant 24 : index
    %107 = vector.load %arg7[%c0_82, %c24_83] : memref<1x32xf32, #tpu.memory_space<vmem>>, vector<1x8xf32>
    %108 = vector.broadcast %107 : vector<1x8xf32> to vector<3x8xf32>
    %109 = arith.addf %106, %108 : vector<3x8xf32>
    %c0_84 = arith.constant 0 : index
    %c24_85 = arith.constant 24 : index
    %110 = vector.load %arg8[%c0_84, %c24_85] : memref<32x32xf32, #tpu.memory_space<vmem>>, vector<32x8xf32>
    %cst_86 = arith.constant dense<0.000000e+00> : vector<3x8xf32>
    %111 = tpu.matmul %3, %110, %cst_86 {dimension_numbers = #tpu.dot_dimension_numbers<[1], [0], [0], [1], [0, 0, 1, 1], [], []>} : vector<3x32xf32>, vector<32x8xf32>, vector<3x8xf32> -> vector<3x8xf32>
    %c0_87 = arith.constant 0 : index
    %c24_88 = arith.constant 24 : index
    %112 = vector.load %arg9[%c0_87, %c24_88] : memref<1x32xf32, #tpu.memory_space<vmem>>, vector<1x8xf32>
    %113 = vector.broadcast %112 : vector<1x8xf32> to vector<3x8xf32>
    %114 = arith.addf %111, %113 : vector<3x8xf32>
    %cst_89 = arith.constant dense<0.000000e+00> : vector<4x3xf32>
    %115 = tpu.matmul %104, %109, %cst_89 {dimension_numbers = #tpu.dot_dimension_numbers<[1], [1], [0], [0], [0, 0, 1, 0], [], []>} : vector<4x8xf32>, vector<3x8xf32>, vector<4x3xf32> -> vector<4x3xf32>
    %cst_90 = arith.constant dense<0xFF800000> : vector<4xf32>
    %116 = vector.multi_reduction <maximumf>, %115, %cst_90 [1] : vector<4x3xf32> to vector<4xf32>
    %117 = vector.shape_cast %116 : vector<4xf32> to vector<4x1xf32>
    %118 = vector.broadcast %117 : vector<4x1xf32> to vector<4x3xf32>
    %119 = arith.subf %115, %118 : vector<4x3xf32>
    %120 = math.exp %119 : vector<4x3xf32>
    %cst_91 = arith.constant dense<0.000000e+00> : vector<4xf32>
    %121 = vector.multi_reduction <add>, %120, %cst_91 [1] : vector<4x3xf32> to vector<4xf32>
    %122 = vector.shape_cast %121 : vector<4xf32> to vector<4x1xf32>
    %123 = vector.broadcast %122 : vector<4x1xf32> to vector<4x3xf32>
    %124 = arith.divf %120, %123 : vector<4x3xf32>
    %cst_92 = arith.constant dense<0.000000e+00> : vector<4x8xf32>
    %125 = tpu.matmul %124, %114, %cst_92 {dimension_numbers = #tpu.dot_dimension_numbers<[1], [0], [0], [1], [0, 0, 1, 1], [], []>} : vector<4x3xf32>, vector<3x8xf32>, vector<4x8xf32> -> vector<4x8xf32>
    %c24_93 = arith.constant 24 : index
    %c0_94 = arith.constant 0 : index
    %126 = vector.load %arg10[%c24_93, %c0_94] : memref<32x32xf32, #tpu.memory_space<vmem>>, vector<8x32xf32>
    %cst_95 = arith.constant dense<0.000000e+00> : vector<4x32xf32>
    %127 = tpu.matmul %125, %126, %cst_95 {dimension_numbers = #tpu.dot_dimension_numbers<[1], [0], [0], [1], [0, 0, 1, 1], [], []>} : vector<4x8xf32>, vector<8x32xf32>, vector<4x32xf32> -> vector<4x32xf32>
    %128 = arith.addf %97, %127 : vector<4x32xf32>
    %c0_96 = arith.constant 0 : index
    %c0_97 = arith.constant 0 : index
    %129 = vector.load %arg11[%c0_96, %c0_97] : memref<1x32xf32, #tpu.memory_space<vmem>>, vector<1x32xf32>
    %130 = vector.broadcast %129 : vector<1x32xf32> to vector<4x32xf32>
    %131 = arith.addf %128, %130 : vector<4x32xf32>
    %132 = arith.addf %1, %131 : vector<4x32xf32>
    %c0_98 = arith.constant 0 : index
    %c0_99 = arith.constant 0 : index
    %133 = vector.load %arg12[%c0_98, %c0_99] : memref<1x32xf32, #tpu.memory_space<vmem>>, vector<1x32xf32>
    %c0_100 = arith.constant 0 : index
    %c0_101 = arith.constant 0 : index
    %134 = vector.load %arg13[%c0_100, %c0_101] : memref<1x32xf32, #tpu.memory_space<vmem>>, vector<1x32xf32>
    %cst_102 = arith.constant dense<0.000000e+00> : vector<4xf32>
    %135 = vector.multi_reduction <add>, %132, %cst_102 [1] : vector<4x32xf32> to vector<4xf32>
    %136 = vector.shape_cast %135 : vector<4xf32> to vector<4x1xf32>
    %cst_103 = arith.constant 3.200000e+01 : f32
    %137 = vector.broadcast %cst_103 : f32 to vector<4x1xf32>
    %138 = arith.divf %136, %137 : vector<4x1xf32>
    %139 = vector.broadcast %138 : vector<4x1xf32> to vector<4x32xf32>
    %140 = arith.subf %132, %139 : vector<4x32xf32>
    %141 = arith.mulf %140, %140 : vector<4x32xf32>
    %cst_104 = arith.constant dense<0.000000e+00> : vector<4xf32>
    %142 = vector.multi_reduction <add>, %141, %cst_104 [1] : vector<4x32xf32> to vector<4xf32>
    %143 = vector.shape_cast %142 : vector<4xf32> to vector<4x1xf32>
    %cst_105 = arith.constant 3.200000e+01 : f32
    %144 = vector.broadcast %cst_105 : f32 to vector<4x1xf32>
    %145 = arith.divf %143, %144 : vector<4x1xf32>
    %cst_106 = arith.constant 9.99999974E-6 : f32
    %146 = vector.broadcast %cst_106 : f32 to vector<4x1xf32>
    %147 = arith.addf %145, %146 : vector<4x1xf32>
    %148 = math.rsqrt %147 : vector<4x1xf32>
    %149 = vector.broadcast %148 : vector<4x1xf32> to vector<4x32xf32>
    %150 = arith.mulf %140, %149 : vector<4x32xf32>
    %151 = vector.broadcast %133 : vector<1x32xf32> to vector<4x32xf32>
    %152 = arith.mulf %150, %151 : vector<4x32xf32>
    %153 = vector.broadcast %134 : vector<1x32xf32> to vector<4x32xf32>
    %154 = arith.addf %152, %153 : vector<4x32xf32>
    %c0_107 = arith.constant 0 : index
    %c0_108 = arith.constant 0 : index
    %155 = vector.load %arg14[%c0_107, %c0_108] : memref<32x128xf32, #tpu.memory_space<vmem>>, vector<32x128xf32>
    %cst_109 = arith.constant dense<0.000000e+00> : vector<4x128xf32>
    %156 = tpu.matmul %154, %155, %cst_109 {dimension_numbers = #tpu.dot_dimension_numbers<[1], [0], [0], [1], [0, 0, 1, 1], [], []>} : vector<4x32xf32>, vector<32x128xf32>, vector<4x128xf32> -> vector<4x128xf32>
    %c0_110 = arith.constant 0 : index
    %c0_111 = arith.constant 0 : index
    %157 = vector.load %arg15[%c0_110, %c0_111] : memref<1x128xf32, #tpu.memory_space<vmem>>, vector<1x128xf32>
    %158 = vector.broadcast %157 : vector<1x128xf32> to vector<4x128xf32>
    %159 = arith.addf %156, %158 : vector<4x128xf32>
    %160 = arith.mulf %159, %159 : vector<4x128xf32>
    %161 = arith.mulf %159, %160 : vector<4x128xf32>
    %cst_112 = arith.constant 4.471500e-02 : f32
    %162 = vector.broadcast %cst_112 : f32 to vector<4x128xf32>
    %163 = arith.mulf %162, %161 : vector<4x128xf32>
    %164 = arith.addf %159, %163 : vector<4x128xf32>
    %cst_113 = arith.constant 0.797884583 : f32
    %165 = vector.broadcast %cst_113 : f32 to vector<4x128xf32>
    %166 = arith.mulf %165, %164 : vector<4x128xf32>
    %167 = math.tanh %166 : vector<4x128xf32>
    %cst_114 = arith.constant 1.000000e+00 : f32
    %168 = vector.broadcast %cst_114 : f32 to vector<4x128xf32>
    %169 = arith.addf %168, %167 : vector<4x128xf32>
    %cst_115 = arith.constant 5.000000e-01 : f32
    %170 = vector.broadcast %cst_115 : f32 to vector<4x128xf32>
    %171 = arith.mulf %170, %169 : vector<4x128xf32>
    %172 = arith.mulf %159, %171 : vector<4x128xf32>
    %c0_116 = arith.constant 0 : index
    %c0_117 = arith.constant 0 : index
    %173 = vector.load %arg16[%c0_116, %c0_117] : memref<128x32xf32, #tpu.memory_space<vmem>>, vector<128x32xf32>
    %cst_118 = arith.constant dense<0.000000e+00> : vector<4x32xf32>
    %174 = tpu.matmul %172, %173, %cst_118 {dimension_numbers = #tpu.dot_dimension_numbers<[1], [0], [0], [1], [0, 0, 1, 1], [], []>} : vector<4x128xf32>, vector<128x32xf32>, vector<4x32xf32> -> vector<4x32xf32>
    %175 = arith.addf %154, %174 : vector<4x32xf32>
    %c0_119 = arith.constant 0 : index
    %c0_120 = arith.constant 0 : index
    %176 = vector.load %arg17[%c0_119, %c0_120] : memref<1x32xf32, #tpu.memory_space<vmem>>, vector<1x32xf32>
    %177 = vector.broadcast %176 : vector<1x32xf32> to vector<4x32xf32>
    %178 = arith.addf %175, %177 : vector<4x32xf32>
    %c0_121 = arith.constant 0 : index
    %c0_122 = arith.constant 0 : index
    %179 = vector.load %arg18[%c0_121, %c0_122] : memref<1x32xf32, #tpu.memory_space<vmem>>, vector<1x32xf32>
    %c0_123 = arith.constant 0 : index
    %c0_124 = arith.constant 0 : index
    %180 = vector.load %arg19[%c0_123, %c0_124] : memref<1x32xf32, #tpu.memory_space<vmem>>, vector<1x32xf32>
    %cst_125 = arith.constant dense<0.000000e+00> : vector<4xf32>
    %181 = vector.multi_reduction <add>, %178, %cst_125 [1] : vector<4x32xf32> to vector<4xf32>
    %182 = vector.shape_cast %181 : vector<4xf32> to vector<4x1xf32>
    %cst_126 = arith.constant 3.200000e+01 : f32
    %183 = vector.broadcast %cst_126 : f32 to vector<4x1xf32>
    %184 = arith.divf %182, %183 : vector<4x1xf32>
    %185 = vector.broadcast %184 : vector<4x1xf32> to vector<4x32xf32>
    %186 = arith.subf %178, %185 : vector<4x32xf32>
    %187 = arith.mulf %186, %186 : vector<4x32xf32>
    %cst_127 = arith.constant dense<0.000000e+00> : vector<4xf32>
    %188 = vector.multi_reduction <add>, %187, %cst_127 [1] : vector<4x32xf32> to vector<4xf32>
    %189 = vector.shape_cast %188 : vector<4xf32> to vector<4x1xf32>
    %cst_128 = arith.constant 3.200000e+01 : f32
    %190 = vector.broadcast %cst_128 : f32 to vector<4x1xf32>
    %191 = arith.divf %189, %190 : vector<4x1xf32>
    %cst_129 = arith.constant 9.99999974E-6 : f32
    %192 = vector.broadcast %cst_129 : f32 to vector<4x1xf32>
    %193 = arith.addf %191, %192 : vector<4x1xf32>
    %194 = math.rsqrt %193 : vector<4x1xf32>
    %195 = vector.broadcast %194 : vector<4x1xf32> to vector<4x32xf32>
    %196 = arith.mulf %186, %195 : vector<4x32xf32>
    %197 = vector.broadcast %179 : vector<1x32xf32> to vector<4x32xf32>
    %198 = arith.mulf %196, %197 : vector<4x32xf32>
    %199 = vector.broadcast %180 : vector<1x32xf32> to vector<4x32xf32>
    %200 = arith.addf %198, %199 : vector<4x32xf32>
    %c0_130 = arith.constant 0 : index
    %c0_131 = arith.constant 0 : index
    %c0_132 = arith.constant 0 : index
    %c0_133 = arith.constant 0 : index
    %201 = vector.load %arg20[%c0_130, %c0_131, %c0_132, %c0_133] : memref<1x1x4x32xf32, #tpu.memory_space<vmem>>, vector<1x1x4x32xf32>
    %202 = vector.shape_cast %201 : vector<1x1x4x32xf32> to vector<4x32xf32>
    %203 = vector.shape_cast %200 : vector<4x32xf32> to vector<1x1x4x32xf32>
    tpu.vector_store %arg20[%c0_130, %c0_131, %c0_132, %c0_133], %203 {strides = array<i32>} : memref<1x1x4x32xf32, #tpu.memory_space<vmem>>, vector<1x1x4x32xf32>,
    return
  }
  func.func @transform_0(%arg0: i32, %arg1: i32) -> (i32, i32, i32, i32) {
    %c0_i32 = arith.constant 0 : i32
    %c0_i32_0 = arith.constant 0 : i32
    %c0_i32_1 = arith.constant 0 : i32
    return %arg0, %arg1, %c0_i32, %c0_i32_0 : i32, i32, i32, i32
  }
  func.func @transform_1(%arg0: i32, %arg1: i32) -> (i32, i32, i32, i32) {
    %c0_i32 = arith.constant 0 : i32
    %c0_i32_0 = arith.constant 0 : i32
    %c0_i32_1 = arith.constant 0 : i32
    return %arg0, %arg1, %c0_i32, %c0_i32_0 : i32, i32, i32, i32
  }
  func.func @transform_2(%arg0: i32, %arg1: i32) -> (i32, i32) {
    %c0_i32 = arith.constant 0 : i32
    %c0_i32_0 = arith.constant 0 : i32
    %c0_i32_1 = arith.constant 0 : i32
    return %c0_i32, %c0_i32_0 : i32, i32
  }
  func.func @transform_3(%arg0: i32, %arg1: i32) -> (i32, i32) {
    %c0_i32 = arith.constant 0 : i32
    %c0_i32_0 = arith.constant 0 : i32
    %c0_i32_1 = arith.constant 0 : i32
    return %c0_i32, %c0_i32_0 : i32, i32
  }
  func.func @transform_4(%arg0: i32, %arg1: i32) -> (i32, i32) {
    %c0_i32 = arith.constant 0 : i32
    %c0_i32_0 = arith.constant 0 : i32
    %c0_i32_1 = arith.constant 0 : i32
    return %c0_i32, %c0_i32_0 : i32, i32
  }
  func.func @transform_5(%arg0: i32, %arg1: i32) -> (i32, i32) {
    %c0_i32 = arith.constant 0 : i32
    %c0_i32_0 = arith.constant 0 : i32
    %c0_i32_1 = arith.constant 0 : i32
    return %c0_i32, %c0_i32_0 : i32, i32
  }
  func.func @transform_6(%arg0: i32, %arg1: i32) -> (i32, i32) {
    %c0_i32 = arith.constant 0 : i32
    %c0_i32_0 = arith.constant 0 : i32
    %c0_i32_1 = arith.constant 0 : i32
    return %c0_i32, %c0_i32_0 : i32, i32
  }
  func.func @transform_7(%arg0: i32, %arg1: i32) -> (i32, i32) {
    %c0_i32 = arith.constant 0 : i32
    %c0_i32_0 = arith.constant 0 : i32
    %c0_i32_1 = arith.constant 0 : i32
    return %c0_i32, %c0_i32_0 : i32, i32
  }
  func.func @transform_8(%arg0: i32, %arg1: i32) -> (i32, i32) {
    %c0_i32 = arith.constant 0 : i32
    %c0_i32_0 = arith.constant 0 : i32
    %c0_i32_1 = arith.constant 0 : i32
    return %c0_i32, %c0_i32_0 : i32, i32
  }
  func.func @transform_9(%arg0: i32, %arg1: i32) -> (i32, i32) {
    %c0_i32 = arith.constant 0 : i32
    %c0_i32_0 = arith.constant 0 : i32
    %c0_i32_1 = arith.constant 0 : i32
    return %c0_i32, %c0_i32_0 : i32, i32
  }
  func.func @transform_10(%arg0: i32, %arg1: i32) -> (i32, i32) {
    %c0_i32 = arith.constant 0 : i32
    %c0_i32_0 = arith.constant 0 : i32
    %c0_i32_1 = arith.constant 0 : i32
    return %c0_i32, %c0_i32_0 : i32, i32
  }
  func.func @transform_11(%arg0: i32, %arg1: i32) -> (i32, i32) {
    %c0_i32 = arith.constant 0 : i32
    %c0_i32_0 = arith.constant 0 : i32
    %c0_i32_1 = arith.constant 0 : i32
    return %c0_i32, %c0_i32_0 : i32, i32
  }
  func.func @transform_12(%arg0: i32, %arg1: i32) -> (i32, i32) {
    %c0_i32 = arith.constant 0 : i32
    %c0_i32_0 = arith.constant 0 : i32
    %c0_i32_1 = arith.constant 0 : i32
    return %c0_i32, %c0_i32_0 : i32, i32
  }
  func.func @transform_13(%arg0: i32, %arg1: i32) -> (i32, i32) {
    %c0_i32 = arith.constant 0 : i32
    %c0_i32_0 = arith.constant 0 : i32
    %c0_i32_1 = arith.constant 0 : i32
    return %c0_i32, %c0_i32_0 : i32, i32
  }
  func.func @transform_14(%arg0: i32, %arg1: i32) -> (i32, i32) {
    %c0_i32 = arith.constant 0 : i32
    %c0_i32_0 = arith.constant 0 : i32
    %c0_i32_1 = arith.constant 0 : i32
    return %c0_i32, %c0_i32_0 : i32, i32
  }
  func.func @transform_15(%arg0: i32, %arg1: i32) -> (i32, i32) {
    %c0_i32 = arith.constant 0 : i32
    %c0_i32_0 = arith.constant 0 : i32
    %c0_i32_1 = arith.constant 0 : i32
    return %c0_i32, %c0_i32_0 : i32, i32
  }
  func.func @transform_16(%arg0: i32, %arg1: i32) -> (i32, i32) {
    %c0_i32 = arith.constant 0 : i32
    %c0_i32_0 = arith.constant 0 : i32
    %c0_i32_1 = arith.constant 0 : i32
    return %c0_i32, %c0_i32_0 : i32, i32
  }
  func.func @transform_17(%arg0: i32, %arg1: i32) -> (i32, i32) {
    %c0_i32 = arith.constant 0 : i32
    %c0_i32_0 = arith.constant 0 : i32
    %c0_i32_1 = arith.constant 0 : i32
    return %c0_i32, %c0_i32_0 : i32, i32
  }
  func.func @transform_18(%arg0: i32, %arg1: i32) -> (i32, i32, i32, i32) {
    %c0_i32 = arith.constant 0 : i32
    %c0_i32_0 = arith.constant 0 : i32
    %c0_i32_1 = arith.constant 0 : i32
    return %arg0, %arg1, %c0_i32, %c0_i32_0 : i32, i32, i32, i32
  }
}

</mosaic_0001>

<bundles_post_ra>
// kernel: _lambda_.4
= control target key start
LH: loop header
LB: loop body
LE: loop exit
PB: predicated region body
PF: predicated region fallthrough
CT: control target
= control target key end

     0   :  { %s3151_s13 = smov 0   ;;  %s3153_s14 = smov 0   ;;  %s3551_s0 = inlined_call_operand.vmem [shape: f32[6,3,32], index: 0, kind: input, shape index: {}]   ;;  %s3552_s1 = inlined_call_operand.vmem [shape: f32[2,6,4,32], index: 1, kind: input, shape index: {}]   ;;  %s3553_s2 = inlined_call_operand.vmem [shape: f32[32,32], index: 2, kind: input, shape index: {}]   ;;  %s3554_s3 = inlined_call_operand.vmem [shape: f32[1,32], index: 3, kind: input, shape index: {}]   ;;  %s3555_s4 = inlined_call_operand.vmem [shape: f32[32,32], index: 4, kind: input, shape index: {}]   ;;  %s3556_s5 = inlined_call_operand.vmem [shape: f32[1,32], index: 5, kind: input, shape index: {}]   ;;  %s3557_s6 = inlined_call_operand.vmem [shape: f32[32,32], index: 6, kind: input, shape index: {}]   ;;  %s3558_s7 = inlined_call_operand.vmem [shape: f32[1,32], index: 7, kind: input, shape index: {}]   ;;  %s3559_s8 = inlined_call_operand.vmem [shape: f32[32,32], index: 8, kind: input, shape index: {}]   ;;  %s3560_s9 = inlined_call_operand.vmem [shape: f32[1,32], index: 9, kind: input, shape index: {}]   ;;  %s3561_s10 = inlined_call_operand.vmem [shape: f32[2,6,3,32], index: 10, kind: output, shape index: {}]  }
   0x1   :  { %s3155_s15 = smov 0   ;;  %s3157_s16 = smov 0  }
   0x2   :  { %s3159_s17 = smov 0  }
   0x3 LB: > { %s29_s18 = sadd.s32 1, %s3080_s15  ;;  %s32_s19 = sadd.s32 1, %s3084_s16  ;;  %s3088_s17 = sphi %s3159_s17, %s20_s17   ;;  %s3084_s16 = sphi %s3157_s16, %s3565_s16   ;;  %s3080_s15 = sphi %s3155_s15, %s3564_s15   ;;  %s3076_s14 = sphi %s3153_s14, %s3563_s14   ;;  %s3072_s13 = sphi %s3151_s13, %s3562_s13  }
   0x4   : > { %p30_p0 = scmp.ge.s32.totalorder %s29_s18, 6  ;;  %p2507_p1 = scmp.ge.s32.totalorder %s3088_s17, 1 }
   0x5   : > { %p340_p2 = scmp.lt.s32.totalorder %s3088_s17, 13 }
   0x6   : > { %s3567_s18 = smov (%p30_p0, %s29_s18), 0  ;;  %s3569_s19 = smov (!%p30_p0, %s32_s19), %s3084_s16 }
   0x7   : > { %p341_p3 = pnand %p2507_p1, %p340_p2  ;;  %p34_p4 = scmp.ge.s32.totalorder %s3569_s19, 2 }
   0x8   : > { %v3188_v0 = vld [vmem:[%s3553_s2] sm:$0xff] (!%p341_p3)  ;;  %v3193_v1 = vld [vmem:[%s3553_s2 + $0x8] sm:$0xff] (!%p341_p3)  ;;  %v3090_v3 = vmov (!%p341_p3), 0.0|0.0   ;;  %v3212_v6 = vld [vmem:[%s3553_s2 + $0x10] sm:$0xff] (!%p341_p3)  ;;  %p388_p5 = scmp.lt.s32.totalorder (!%p341_p3), %s3072_s13, 5  ;;  %p392_p6 = scmp.lt.s32.totalorder (!%p341_p3), %s3076_s14, 1 }
   0x9   : > { %s3571_s19 = smov (%p34_p4, %s3569_s19), 0  ;;  %344 = sbr.rel (%p341_p3) target bundleno = 3871 (0xf1f), region = 60 }
   0xa   : > { %v3198_v2 = vld [vmem:[%s3555_s4] sm:$0xff] (!%p341_p3)  ;;  %2825 = vmatprep.subr.bf16.mxu0 (!%p341_p3), %v3090_v3  ;;  %2831 = vmatprep.subr.bf16.mxu1 (!%p341_p3), %v3090_v3  ;;  %v2826_v4 = vpack.c.bf16 (!%p341_p3), %v3193_v1, %v3188_v0  ;;  %v3207_v5 = vld [vmem:[%s3555_s4 + $0x8] sm:$0xff] (!%p341_p3)  ;;  %v3217_v7 = vld [vmem:[%s3553_s2 + $0x18] sm:$0xff] (!%p341_p3)  ;;  %vm3091_vm0 = vmmov (!%p341_p3), 0   ;;  %v3092_v11 = vmov (!%p341_p3), 0.0   ;;  %vm421_vm1 = vcmask (!%p341_p3), 261120  }
   0xb   : > { %v2832_v8 = vpack.c.bf16 (!%p341_p3), %v3207_v5, %v3198_v2  ;;  %v3226_v9 = vld [vmem:[%s3555_s4 + $0x10] sm:$0xff] (!%p341_p3)  ;;  %v3231_v10 = vld [vmem:[%s3555_s4 + $0x18] sm:$0xff] (!%p341_p3)  ;;  %2641 = vmatprep.mubr.msk.f32.mxu0 (!%p341_p3), %vm3091_vm0, %v3092_v11  ;;  %2652 = vmatprep.mubr.msk.f32.mxu1 (!%p341_p3), %vm3091_vm0, %v3092_v11  ;;  %v2829_v12 = vpack.c.bf16 (!%p341_p3), %v3217_v7, %v3212_v6  ;;  %v3275_v16 = vld [vmem:[%s3554_s3] ss:$0 sm:$0xff] (!%p341_p3)  ;;  %vm661_vm2 = vcmask (!%p341_p3), 64512   ;;  %vm738_vm3 = vcmask (!%p341_p3), 26624  }
   0xc   : > { %2827 = vmatpush3.bf16.msra.mxu0 (!%p341_p3), %v2826_v4  ;;  %v2835_v13 = vpack.c.bf16 (!%p341_p3), %v3231_v10, %v3226_v9  ;;  %v3280_v18 = vld [vmem:[%s3556_s5] ss:$0 sm:$0xff] (!%p341_p3)  ;;  %v3297_v26 = vld [vmem:[%s3557_s6 + $0x8] sm:$0xff] (!%p341_p3)  ;;  %v3302_v27 = vld [vmem:[%s3557_s6 + $0x10] sm:$0xff] (!%p341_p3)  ;;  %v3322_v34 = vpack.i.bf16 (!%p341_p3), %v3207_v5, %v3198_v2  ;;  %v3328_v35 = vpack.i.bf16 (!%p341_p3), %v3193_v1, %v3188_v0  ;;  %v3334_v36 = vpack.i.bf16 (!%p341_p3), %v3217_v7, %v3212_v6  ;;  %s3094_s22 = smov (!%p341_p3), 112  }
   0xd   : > { %2833 = vmatpush3.bf16.msra.mxu1 (!%p341_p3), %v2832_v8  ;;  %2828 = vmatprep.subr.bf16.mxu0 (!%p341_p3), %v3090_v3  ;;  %v3292_v25 = vld [vmem:[%s3557_s6] sm:$0xff] (!%p341_p3)  ;;  %v3309_v29 = vld [vmem:[%s3557_s6 + $0x18] sm:$0xff] (!%p341_p3)  ;;  %v3345_v42 = vpack.i.bf16 (!%p341_p3), %v3231_v10, %v3226_v9  ;;  %vm754_vm4 = vcmask (!%p341_p3), 1043456   ;;  %vm750_vm5 = vcmask (!%p341_p3), 31744   ;;  %vm2403_vm6 = vcmask (!%p341_p3), 256000  }
   0xe   : > { %2834 = vmatprep.subr.bf16.mxu1 (!%p341_p3), %v3090_v3  ;;  %v2838_v28 = vpack.c.bf16 (!%p341_p3), %v3297_v26, %v3292_v25  ;;  %v2841_v30 = vpack.c.bf16 (!%p341_p3), %v3309_v29, %v3302_v27  ;;  %v3352_v45 = vld [vmem:[%s3558_s7] ss:$0 sm:$0xff] (!%p341_p3)  ;;  %v3374_v5 = vpack.i.bf16 (!%p341_p3), %v3297_v26, %v3292_v25  ;;  %v3380_v6 = vpack.i.bf16 (!%p341_p3), %v3309_v29, %v3302_v27 }
  0x10   : > { %s3573_s13 = smov (!%p388_p5, %s3072_s13), 5  ;;  %s3575_s14 = smov (!%p392_p6, %s3076_s14), 1  ;;  %2830 = vmatpush3.bf16.msra.mxu0 %v2829_v12 }
  0x11   : > { %s2508_s23 = sshll.u32 %s3573_s13, 2  ;;  %s2897_s27 = smul.u32 6, %s3575_s14  ;;  %2836 = vmatpush3.bf16.msra.mxu1 %v2835_v13  ;;  %2837 = vmatprep.subr.bf16.mxu0 %v3090_v3 }
  0x12   : > { %s391_s26 = scalar_lea.vmem %s3551_s0, %s2508_s23  ;;  %2666 = vmatprep.subr.mxu1 %v3092_v11 }
  0x13   : > { %v3250_v14 = vld [vmem:[%s391_s26] sm:$0x7]  ;;  %s3252_s28 = sadd.s32 %s2897_s27, %s3573_s13  ;;  %s3095_s27 = smov 104  }
  0x14   : > { %s2509_s29 = sshll.u32 %s3252_s28, 2  ;;  %2642 = vmatmul.mubr.msk.f32.vlgmr.msra.gmra.mrb[0].mxu0 %vm421_vm1, %v3250_v14 }
  0x15   : > { %s399_s12 = scalar_lea.vmem %s3552_s1, %s2509_s29  ;;  %2663 = vmatprep.mubr.msk.f32.mxu0 %vm3091_vm0, %v3092_v11  ;;  %2839 = vmatpush3.bf16.msra.mxu0 %v2838_v28  ;;  %s407_s21 = scalar_lea.vmem %s3561_s10, %s2509_s29 }
  0x16   : > { %v3264_v15 = vld [vmem:[%s399_s12] sm:$0xf]  ;;  %2840 = vmatprep.subr.bf16.mxu0 %v3090_v3  ;;  %s3093_s12 = smov 120  }
  0x17   : > { %2653 = vmatmul.mubr.msk.f32.vlgmr.msra.gmra.mrb[0].mxu1 %vm421_vm1, %v3264_v15  ;;  %2945 = vrot.lane.b32.xlu1 %v3322_v34, %s3093_s12 }
  0x18   : > { %2668 = vmatprep.mubr.msk.f32.mxu1 %vm3091_vm0, %v3092_v11 }
  0x19   : > { %2842 = vmatpush3.bf16.msra.mxu0 %v2841_v30 }
  0x1a   : > { %2843 = vmatprep.subr.bf16.mxu0 %v3090_v3 }
  0x1b   : > { %2950 = vrot.lane.b32.xlu1 %v3328_v35, %s3093_s12 }
  0x1c   : > { %2664 = vmatmul.mubr.msk.f32.vlgmr.msra.gmra.mrb[2].mxu0 %vm421_vm1, %v3264_v15 }
  0x1d   : > { %2684 = vmatprep.mubr.msk.f32.mxu0 %vm3091_vm0, %v3092_v11 }
  0x1f   : > { %2960 = vrot.lane.b32.xlu1 %v3334_v36, %s3093_s12 }
  0x23   : > { %935 = vrot.lane.b32.xlu1 %v3280_v18, %s3093_s12 }
  0x27   : > { %845 = vrot.lane.b32.xlu1 %v3275_v16, %s3093_s12 }
  0x2b   : > { %2965 = vrot.lane.b32.xlu1 %v3374_v5, %s3093_s12 }
  0x2f   : > { %2970 = vrot.lane.b32.xlu1 %v3380_v6, %s3093_s12 }
  0x89   : > { %v2946_v43 = vpop.permute.xlu1 %2945 }
  0x8a   : > { %v2948_v58 = vunpack.i.h.bf16 %v2946_v43  ;;  %v2947_v59 = vunpack.i.l.bf16 %v2946_v43  ;;  %v1260_v43 = vld [vmem:[%s3559_s8 + $0x8] sm:$0xff] }
  0x8c   : > { %v2850_v0 = vpack.c.bf16 %v2948_v58, %v2947_v59 }
  0x8d   : > { %v2951_v47 = vpop.permute.xlu1 %2950 }
  0x8e   : > { %v2953_v49 = vunpack.i.h.bf16 %v2951_v47  ;;  %v2952_v50 = vunpack.i.l.bf16 %v2951_v47 }
  0x90   : > { %v2844_v51 = vpack.c.bf16 %v2953_v49, %v2952_v50 }
  0x91   : > { %v2961_v52 = vpop.permute.xlu1 %2960 }
  0x92   : > { %v2963_v53 = vunpack.i.h.bf16 %v2961_v52  ;;  %v2962_v54 = vunpack.i.l.bf16 %v2961_v52  ;;  %2845 = vmatpush3.bf16.msra.mxu0 %v2844_v51 }
  0x93   : > { %2846 = vmatprep.subr.bf16.mxu0 %v3090_v3 }
  0x94   : > { %v2847_v55 = vpack.c.bf16 %v2963_v53, %v2962_v54  ;;  %v828_v53 = vld [vmem:[%s3559_s8] sm:$0xff] }
  0x95   : > { %v936_v7 = vpop.permute.xlu1 %935 }
  0x96   : > { %2848 = vmatpush3.bf16.msra.mxu0 %v2847_v55 }
  0x97   : > { %2855 = vmatprep.subr.bf16.mxu0 %v3090_v3 }
  0x99   : > { %2685 = vmatmul.mubr.msk.f32.vlgmr.msra.gmra.mrb[4].mxu0 %vm421_vm1, %v3250_v14  ;;  %v846_v10 = vpop.permute.xlu1 %845 }
  0x9a   : > { %2706 = vmatprep.mubr.msk.f32.mxu0 %vm3091_vm0, %v3092_v11 }
  0xe7   : > { %v491_v17 = vpop.f32.mrb[0].mxu0 }
  0xe8   : > { %v492_v19 = vadd.f32 %v3275_v16, %v491_v17  ;;  %v2643_v20 = vpop.f32.mrb[1].mxu0 }
  0xea   : > { %v576_v21 = vpop.f32.mrb[0].mxu1  ;;  %v495_v24 = vmul.f32 0.35355338, %v492_v19 }
  0xeb   : > { %v577_v22 = vadd.f32 %v3280_v18, %v576_v21  ;;  %v2654_v23 = vpop.f32.mrb[1].mxu1  ;;  %v2966_v21 = vpop.permute.xlu1 %2965 }
  0xec   : > { %v2967_v23 = vunpack.i.l.bf16 %v2966_v21 }
  0xed   : > { %2667 = vmatpush3.xpose.msk.msra.mxu1 %vm661_vm2, %v577_v22  ;;  %v2968_v22 = vunpack.i.h.bf16 %v2966_v21 }
  0xee   : > { %2671 = vmatprep.subr.mxu1 %v3092_v11 }
  0xef   : > { %v657_v44 = vpop.f32.mrb[2].mxu0  ;;  %v2971_v25 = vpop.permute.xlu1 %2970 }
  0xf0   : > { %2669 = vmatmul.mubr.msk.f32.vlgmr.msra.gmra.mrb[2].mxu1 %vm661_vm2, %v495_v24  ;;  %v2665_v46 = vpop.f32.mrb[3].mxu0  ;;  %v658_v48 = vadd.f32 %v3352_v45, %v657_v44  ;;  %v2856_v24 = vpack.c.bf16 %v2968_v22, %v2967_v23  ;;  %v2973_v26 = vunpack.i.h.bf16 %v2971_v25  ;;  %v2972_v27 = vunpack.i.l.bf16 %v2971_v25 }
  0xf1   : > { %2673 = vmatprep.mubr.msk.f32.mxu1 %vm3091_vm0, %v3092_v11 }
  0xf2   : > { %2672 = vmatpush3.msk.msra.mxu1 %vm754_vm4, %v658_v48  ;;  %2857 = vmatpush3.bf16.msra.mxu0 %v2856_v24  ;;  %v2859_v28 = vpack.c.bf16 %v2973_v26, %v2972_v27 }
  0xf3   : > { %2849 = vmatprep.subr.bf16.mxu1 %v3090_v3  ;;  %2858 = vmatprep.subr.bf16.mxu0 %v3090_v3 }
  0xf6   : > { %2860 = vmatpush3.bf16.msra.mxu0 %v2859_v28 }
  0xf7   : > { %2719 = vmatprep.subr.mxu0 %v3092_v11 }
  0xf9   : > { %2707 = vmatmul.mubr.msk.f32.vlgmr.msra.gmra.mrb[6].mxu0 %vm421_vm1, %v3264_v15 }
  0xfa   : > { %2721 = vmatprep.mubr.msk.f32.mxu0 %vm3091_vm0, %v3092_v11  ;;  %2720 = vmatpush3.msra.mxu0 %v1260_v43 }
  0xfb   : > { %2861 = vmatprep.subr.bf16.mxu0 %v3090_v3 }
 0x16c   : > { %v914_v2 = vpop.f32.mrb[4].mxu0 }
 0x16d   : > { %v2686_v4 = vpop.f32.mrb[5].mxu0  ;;  %v915_v12 = vadd.f32 %v914_v2, %v846_v10 }
 0x16f   : > { %v918_v20 = vmul.f32 0.35355338, %v915_v12 }
 0x1c3   : > { %v734_v31 = vpop.f32.mrb[2].mxu1 }
 0x1c4   : > { %v2670_v32 = vpop.f32.mrb[3].mxu1  ;;  %v739_v33 = vsel %vm738_vm3, %v734_v31, -inf }
 0x1c5   : > { %740 = vmax.xlane.f32.xlu0 %v739_v33 }
 0x252   : > { %v741_v37 = vpop.xlane.xlu0 %740 }
 0x253   : > { %v742_v38 = vsub.f32 %v734_v31, %v741_v37 }
 0x255   : > { %v743_v39 = vmul.f32 1.442695, %v742_v38 }
 0x257   : > { %3034 = vpow2.f32 %v743_v39 }
 0x261   : > { %v3035_v40 = vpop.eup %3034 }
 0x262   : > { %v745_v41 = vsel %vm738_vm3, %v3035_v40, 0.0 }
 0x263   : > { %746 = vadd.xlane.f32.xlu0 %v745_v41 }
 0x279   : > { %2955 = vrot.lane.b32.xlu0 %v3345_v42, %s3093_s12 }
 0x2f0   : > { %v747_v56 = vpop.xlane.xlu0 %746 }
 0x2f1   : > { %3036 = vrcp.f32 %v747_v56 }
 0x2f4   : > { %v2956_v57 = vpop.permute.xlu0 %2955 }
 0x2f5   : > { %v2958_v61 = vunpack.i.h.bf16 %v2956_v57  ;;  %v2957_v62 = vunpack.i.l.bf16 %v2956_v57 }
 0x2f7   : > { %v2853_v1 = vpack.c.bf16 %v2958_v61, %v2957_v62 }
 0x2fb   : > { %v3037_v60 = vpop.eup %3036 }
 0x2fc   : > { %v749_v63 = vmul.f32 %v3037_v60, %v3035_v40  ;;  %v1093_v40 = vpop.f32.mrb[6].mxu0 }
 0x2fd   : > { %v2708_v41 = vpop.f32.mrb[7].mxu0 }
 0x2fe   : > { %2674 = vmatmul.mubr.msk.f32.vlgmr.msra.gmra.mrb[4].mxu1 %vm750_vm5, %v749_v63 }
 0x2ff   : > { %2851 = vmatpush3.bf16.msra.mxu1 %v2850_v0  ;;  %2695 = vmatprep.mubr.msk.f32.mxu1 %vm3091_vm0, %v3092_v11 }
 0x300   : > { %2852 = vmatprep.subr.bf16.mxu1 %v3090_v3 }
 0x303   : > { %2854 = vmatpush3.bf16.msra.mxu1 %v2853_v1 }
 0x304   : > { %2709 = vmatprep.subr.mxu1 %v3092_v11 }
 0x306   : > { %2696 = vmatmul.mubr.msk.f32.vlgmr.msra.gmra.mrb[6].mxu1 %vm421_vm1, %v3264_v15 }
 0x307   : > { %2711 = vmatprep.mubr.msk.f32.mxu1 %vm3091_vm0, %v3092_v11 }
 0x3d1   : > { %v3384_v8 = vpop.f32.mrb[4].mxu1 }
 0x3d2   : > { %v2675_v9 = vpop.f32.mrb[5].mxu1 }
 0x3d9   : > { %v1004_v13 = vpop.f32.mrb[6].mxu1 }
 0x3da   : > { %v1005_v17 = vadd.f32 %v1004_v13, %v936_v7  ;;  %v2697_v19 = vpop.f32.mrb[7].mxu1 }
 0x3dc   : > { %2710 = vmatpush3.xpose.msk.msra.mxu1 %vm661_vm2, %v1005_v17 }
 0x3dd   : > { %2714 = vmatprep.subr.mxu1 %v3092_v11 }
 0x3df   : > { %2712 = vmatmul.mubr.msk.f32.vlgmr.msra.gmra.mrb[8].mxu1 %vm661_vm2, %v918_v20 }
 0x3e0   : > { %2716 = vmatprep.mubr.msk.f32.mxu1 %vm3091_vm0, %v3092_v11 }
 0x4b2   : > { %v1169_v29 = vpop.f32.mrb[8].mxu1 }
 0x4b3   : > { %v2713_v30 = vpop.f32.mrb[9].mxu1  ;;  %v1173_v31 = vsel %vm738_vm3, %v1169_v29, -inf }
 0x4b4   : > { %1174 = vmax.xlane.f32.xlu1 %v1173_v31 }
 0x4c5   : > { %2975 = vrot.lane.b32.xlu1 %v3322_v34, %s3094_s22 }
 0x4c9   : > { %2980 = vrot.lane.b32.xlu1 %v3328_v35, %s3094_s22 }
 0x4cd   : > { %2990 = vrot.lane.b32.xlu1 %v3334_v36, %s3094_s22 }
 0x4d1   : > { %1419 = vrot.lane.b32.xlu1 %v3275_v16, %s3094_s22 }
 0x4d5   : > { %3000 = vrot.lane.b32.xlu1 %v3380_v6, %s3094_s22 }
 0x541   : > { %v1175_v32 = vpop.xlane.xlu1 %1174 }
 0x542   : > { %v1176_v33 = vsub.f32 %v1169_v29, %v1175_v32 }
 0x544   : > { %v1177_v37 = vmul.f32 1.442695, %v1176_v33 }
 0x545   : > { %v2976_v48 = vpop.permute.xlu1 %2975 }
 0x546   : > { %3038 = vpow2.f32 %v1177_v37  ;;  %v2978_v50 = vunpack.i.h.bf16 %v2976_v48  ;;  %v2977_v51 = vunpack.i.l.bf16 %v2976_v48 }
 0x548   : > { %v2868_v55 = vpack.c.bf16 %v2978_v50, %v2977_v51 }
 0x549   : > { %v2981_v59 = vpop.permute.xlu1 %2980 }
 0x54a   : > { %v2983_v60 = vunpack.i.h.bf16 %v2981_v59  ;;  %v2982_v61 = vunpack.i.l.bf16 %v2981_v59 }
 0x54c   : > { %v2862_v63 = vpack.c.bf16 %v2983_v60, %v2982_v61 }
 0x54d   : > { %v2991_v62 = vpop.permute.xlu1 %2990 }
 0x54e   : > { %v2993_v0 = vunpack.i.h.bf16 %v2991_v62  ;;  %v2992_v1 = vunpack.i.l.bf16 %v2991_v62 }
 0x550   : > { %v3039_v38 = vpop.eup %3038  ;;  %v2865_v7 = vpack.c.bf16 %v2993_v0, %v2992_v1 }
 0x551   : > { %v1179_v39 = vsel %vm738_vm3, %v3039_v38, 0.0  ;;  %v1420_v22 = vpop.permute.xlu1 %1419 }
 0x552   : > { %1180 = vadd.xlane.f32.xlu0 %v1179_v39 }
 0x555   : > { %v3001_v28 = vpop.permute.xlu1 %3000 }
 0x556   : > { %v3003_v31 = vunpack.i.h.bf16 %v3001_v28  ;;  %v3002_v32 = vunpack.i.l.bf16 %v3001_v28 }
 0x558   : > { %v2877_v37 = vpack.c.bf16 %v3003_v31, %v3002_v32 }
 0x568   : > { %1024 = vrot.lane.b32.xlu0 %v3352_v45, %s3093_s12 }
 0x56c   : > { %2985 = vrot.lane.b32.xlu0 %v3345_v42, %s3094_s22 }
 0x570   : > { %1505 = vrot.lane.b32.xlu0 %v3280_v18, %s3094_s22 }
 0x574   : > { %2995 = vrot.lane.b32.xlu0 %v3374_v5, %s3094_s22 }
 0x5df   : > { %v1181_v44 = vpop.xlane.xlu0 %1180 }
 0x5e0   : > { %3040 = vrcp.f32 %v1181_v44 }
 0x5e3   : > { %v1025_v46 = vpop.permute.xlu0 %1024 }
 0x5e4   : > { %v1094_v47 = vadd.f32 %v1093_v40, %v1025_v46 }
 0x5e6   : > { %2715 = vmatpush3.msk.msra.mxu1 %vm754_vm4, %v1094_v47 }
 0x5e7   : > { %2724 = vmatprep.subr.mxu1 %v3092_v11  ;;  %v2986_v54 = vpop.permute.xlu0 %2985 }
 0x5e8   : > { %v2988_v56 = vunpack.i.h.bf16 %v2986_v54  ;;  %v2987_v57 = vunpack.i.l.bf16 %v2986_v54 }
 0x5ea   : > { %v3041_v49 = vpop.eup %3040  ;;  %v2871_v58 = vpack.c.bf16 %v2988_v56, %v2987_v57 }
 0x5eb   : > { %v1183_v52 = vmul.f32 %v3041_v49, %v3039_v38  ;;  %v1506_v12 = vpop.permute.xlu0 %1505 }
 0x5ed   : > { %2717 = vmatmul.mubr.msk.f32.vlgmr.msra.gmra.mrb[10].mxu1 %vm750_vm5, %v1183_v52  ;;  %v1826_v52 = vld [vmem:[%s3559_s8 + $0x10] sm:$0xff] }
 0x5ee   : > { %2725 = vmatpush3.msra.mxu1 %v828_v53  ;;  %2726 = vmatprep.mubr.msk.f32.mxu1 %vm3091_vm0, %v3092_v11 }
 0x5ef   : > { %2867 = vmatprep.subr.bf16.mxu1 %v3090_v3  ;;  %v2996_v27 = vpop.permute.xlu0 %2995 }
 0x5f0   : > { %v2998_v29 = vunpack.i.h.bf16 %v2996_v27  ;;  %v2997_v30 = vunpack.i.l.bf16 %v2996_v27 }
 0x5f1   : > { %2727 = vmatmul.mubr.msk.f32.vlgmr.msra.gmra.mrb[12].mxu1 %vm661_vm2, %v3384_v8 }
 0x5f2   : > { %2869 = vmatpush3.bf16.msra.mxu1 %v2868_v55  ;;  %2748 = vmatprep.mubr.msk.f32.mxu1 %vm3091_vm0, %v3092_v11  ;;  %v2874_v33 = vpack.c.bf16 %v2998_v29, %v2997_v30 }
 0x5f3   : > { %2870 = vmatprep.subr.bf16.mxu1 %v3090_v3 }
 0x5f6   : > { %2872 = vmatpush3.bf16.msra.mxu1 %v2871_v58 }
 0x5f7   : > { %2762 = vmatprep.subr.mxu1 %v3092_v11 }
 0x5f9   : > { %2749 = vmatmul.mubr.msk.f32.vlgmr.msra.gmra.mrb[14].mxu1 %vm421_vm1, %v3264_v15 }
 0x5fa   : > { %2764 = vmatprep.mubr.msk.f32.mxu1 %vm3091_vm0, %v3092_v11 }
 0x6c0   : > { %v1256_v2 = vpop.f32.mrb[10].mxu1 }
 0x6c1   : > { %v2718_v4 = vpop.f32.mrb[11].mxu1  ;;  %2722 = vmatmul.mubr.msk.f32.vlgmr.msra.gmra.mrb[8].mxu0 %vm661_vm2, %v1256_v2 }
 0x6c2   : > { %2863 = vmatpush3.bf16.msra.mxu0 %v2862_v63  ;;  %2737 = vmatprep.mubr.msk.f32.mxu0 %vm3091_vm0, %v3092_v11 }
 0x6c3   : > { %2864 = vmatprep.subr.bf16.mxu0 %v3090_v3 }
 0x6c4   : > { %v1403_v8 = vpop.f32.mrb[12].mxu1 }
 0x6c5   : > { %v2728_v9 = vpop.f32.mrb[13].mxu1 }
 0x6c6   : > { %2866 = vmatpush3.bf16.msra.mxu0 %v2865_v7 }
 0x6c7   : > { %2873 = vmatprep.subr.bf16.mxu0 %v3090_v3 }
 0x6c9   : > { %2738 = vmatmul.mubr.msk.f32.vlgmr.msra.gmra.mrb[10].mxu0 %vm421_vm1, %v3250_v14 }
 0x6ca   : > { %2759 = vmatprep.mubr.msk.f32.mxu0 %vm3091_vm0, %v3092_v11  ;;  %2875 = vmatpush3.bf16.msra.mxu0 %v2874_v33 }
 0x6cb   : > { %2876 = vmatprep.subr.bf16.mxu0 %v3090_v3 }
 0x6cc   : > { %v1574_v10 = vpop.f32.mrb[14].mxu1 }
 0x6cd   : > { %v1575_v13 = vadd.f32 %v1574_v10, %v1506_v12  ;;  %v2750_v17 = vpop.f32.mrb[15].mxu1 }
 0x6ce   : > { %2878 = vmatpush3.bf16.msra.mxu0 %v2877_v37 }
 0x6cf   : > { %2763 = vmatpush3.xpose.msk.msra.mxu1 %vm661_vm2, %v1575_v13  ;;  %2772 = vmatprep.subr.mxu0 %v3092_v11 }
 0x6d0   : > { %2767 = vmatprep.subr.mxu1 %v3092_v11 }
 0x6d1   : > { %2760 = vmatmul.mubr.msk.f32.vlgmr.msra.gmra.mrb[12].mxu0 %vm421_vm1, %v3264_v15 }
 0x6d2   : > { %2774 = vmatprep.mubr.msk.f32.mxu0 %vm3091_vm0, %v3092_v11  ;;  %2773 = vmatpush3.msra.mxu0 %v1826_v52 }
 0x6d3   : > { %2885 = vmatprep.subr.bf16.mxu0 %v3090_v3 }
 0x794   : > { %v1330_v19 = vpop.f32.mrb[8].mxu0 }
 0x795   : > { %v3451_v20 = vadd.f32 %v1403_v8, %v1330_v19  ;;  %v2723_v21 = vpop.f32.mrb[9].mxu0 }
 0x79c   : > { %v1488_v23 = vpop.f32.mrb[10].mxu0 }
 0x79d   : > { %v1489_v24 = vadd.f32 %v1488_v23, %v1420_v22  ;;  %v2739_v25 = vpop.f32.mrb[11].mxu0 }
 0x79f   : > { %v1492_v26 = vmul.f32 0.35355338, %v1489_v24 }
 0x7a1   : > { %2765 = vmatmul.mubr.msk.f32.vlgmr.msra.gmra.mrb[16].mxu1 %vm661_vm2, %v1492_v26 }
 0x7a2   : > { %2769 = vmatprep.mubr.msk.f32.mxu1 %vm3091_vm0, %v3092_v11 }
 0x7a4   : > { %v1659_v48 = vpop.f32.mrb[12].mxu0 }
 0x7a5   : > { %v2761_v50 = vpop.f32.mrb[13].mxu0 }
 0x874   : > { %v1735_v38 = vpop.f32.mrb[16].mxu1 }
 0x875   : > { %v2766_v39 = vpop.f32.mrb[17].mxu1  ;;  %v1739_v40 = vsel %vm738_vm3, %v1735_v38, -inf }
 0x876   : > { %1740 = vmax.xlane.f32.xlu0 %v1739_v40 }
 0x88c   : > { %1590 = vrot.lane.b32.xlu0 %v3352_v45, %s3094_s22 }
 0x890   : > { %3010 = vrot.lane.b32.xlu0 %v3328_v35, %s3095_s27 }
 0x894   : > { %3020 = vrot.lane.b32.xlu0 %v3334_v36, %s3095_s27 }
 0x898   : > { %1913 = vrot.lane.b32.xlu0 %v3275_v16, %s3095_s27 }
 0x89c   : > { %3030 = vrot.lane.b32.xlu0 %v3380_v6, %s3095_s27 }
 0x903   : > { %v1741_v41 = vpop.xlane.xlu0 %1740 }
 0x904   : > { %v1742_v43 = vsub.f32 %v1735_v38, %v1741_v41 }
 0x906   : > { %v1743_v44 = vmul.f32 1.442695, %v1742_v43 }
 0x907   : > { %v1591_v49 = vpop.permute.xlu0 %1590 }
 0x908   : > { %3042 = vpow2.f32 %v1743_v44  ;;  %v1660_v51 = vadd.f32 %v1659_v48, %v1591_v49  ;;  %v2546_v49 = vld [vmem:[%s3560_s9] ss:$0 sm:$0xff] }
 0x90a   : > { %2768 = vmatpush3.msk.msra.mxu1 %vm754_vm4, %v1660_v51 }
 0x90b   : > { %2879 = vmatprep.subr.bf16.mxu1 %v3090_v3 }
 0x912   : > { %v3043_v46 = vpop.eup %3042 }
 0x913   : > { %v1745_v47 = vsel %vm738_vm3, %v3043_v46, 0.0 }
 0x914   : > { %1746 = vadd.xlane.f32.xlu1 %v1745_v47 }
 0x925   : > { %3005 = vrot.lane.b32.xlu1 %v3322_v34, %s3095_s27  ;;  %v3011_v34 = vpop.permute.xlu0 %3010 }
 0x926   : > { %v3013_v54 = vunpack.i.h.bf16 %v3011_v34  ;;  %v3012_v55 = vunpack.i.l.bf16 %v3011_v34 }
 0x928   : > { %v2880_v56 = vpack.c.bf16 %v3013_v54, %v3012_v55 }
 0x929   : > { %3015 = vrot.lane.b32.xlu1 %v3345_v42, %s3095_s27 }
 0x92d   : > { %1999 = vrot.lane.b32.xlu1 %v3280_v18, %s3095_s27  ;;  %v3021_v18 = vpop.permute.xlu0 %3020 }
 0x92e   : > { %v3023_v36 = vunpack.i.h.bf16 %v3021_v18  ;;  %v3022_v42 = vunpack.i.l.bf16 %v3021_v18 }
 0x930   : > { %v2883_v16 = vpack.c.bf16 %v3023_v36, %v3022_v42 }
 0x931   : > { %3025 = vrot.lane.b32.xlu1 %v3374_v5, %s3095_s27  ;;  %v1914_v12 = vpop.permute.xlu0 %1913 }
 0x935   : > { %v3031_v6 = vpop.permute.xlu0 %3030 }
 0x936   : > { %v3033_v25 = vunpack.i.h.bf16 %v3031_v6  ;;  %v3032_v26 = vunpack.i.l.bf16 %v3031_v6 }
 0x938   : > { %v2895_v28 = vpack.c.bf16 %v3033_v25, %v3032_v26 }
 0x9a1   : > { %v1747_v53 = vpop.xlane.xlu1 %1746 }
 0x9a2   : > { %3044 = vrcp.f32 %v1747_v53 }
 0x9a5   : > { %v3006_v58 = vpop.permute.xlu1 %3005 }
 0x9a6   : > { %v3008_v59 = vunpack.i.h.bf16 %v3006_v58  ;;  %v3007_v60 = vunpack.i.l.bf16 %v3006_v58 }
 0x9a8   : > { %v2886_v62 = vpack.c.bf16 %v3008_v59, %v3007_v60 }
 0x9a9   : > { %v3016_v61 = vpop.permute.xlu1 %3015 }
 0x9aa   : > { %v3018_v63 = vunpack.i.h.bf16 %v3016_v61  ;;  %v3017_v0 = vunpack.i.l.bf16 %v3016_v61 }
 0x9ac   : > { %v3045_v35 = vpop.eup %3044  ;;  %v2889_v4 = vpack.c.bf16 %v3018_v63, %v3017_v0 }
 0x9ad   : > { %v1749_v57 = vmul.f32 %v3045_v35, %v3043_v46  ;;  %v2000_v13 = vpop.permute.xlu1 %1999 }
 0x9af   : > { %2770 = vmatmul.mubr.msk.f32.vlgmr.msra.gmra.mrb[18].mxu1 %vm750_vm5, %v1749_v57 }
 0x9b0   : > { %2881 = vmatpush3.bf16.msra.mxu1 %v2880_v56  ;;  %2785 = vmatprep.mubr.msk.f32.mxu1 %vm3091_vm0, %v3092_v11 }
 0x9b1   : > { %2882 = vmatprep.subr.bf16.mxu1 %v3090_v3  ;;  %v3026_v5 = vpop.permute.xlu1 %3025 }
 0x9b2   : > { %v3027_v24 = vunpack.i.l.bf16 %v3026_v5 }
 0x9b4   : > { %2884 = vmatpush3.bf16.msra.mxu1 %v2883_v16 }
 0x9b5   : > { %2891 = vmatprep.subr.bf16.mxu1 %v3090_v3 }
 0x9b7   : > { %2786 = vmatmul.mubr.msk.f32.vlgmr.msra.gmra.mrb[20].mxu1 %vm421_vm1, %v3250_v14 }
 0x9b8   : > { %2807 = vmatprep.mubr.msk.f32.mxu1 %vm3091_vm0, %v3092_v11 }
 0xa82   : > { %v1822_v1 = vpop.f32.mrb[18].mxu1 }
 0xa83   : > { %v2771_v2 = vpop.f32.mrb[19].mxu1  ;;  %2775 = vmatmul.mubr.msk.f32.vlgmr.msra.gmra.mrb[14].mxu0 %vm661_vm2, %v1822_v1 }
 0xa84   : > { %2887 = vmatpush3.bf16.msra.mxu0 %v2886_v62  ;;  %2796 = vmatprep.mubr.msk.f32.mxu0 %vm3091_vm0, %v3092_v11 }
 0xa85   : > { %2888 = vmatprep.subr.bf16.mxu0 %v3090_v3 }
 0xa88   : > { %2890 = vmatpush3.bf16.msra.mxu0 %v2889_v4 }
 0xa89   : > { %2810 = vmatprep.subr.mxu0 %v3092_v11 }
 0xa8a   : > { %v1982_v14 = vpop.f32.mrb[20].mxu1 }
 0xa8b   : > { %2797 = vmatmul.mubr.msk.f32.vlgmr.msra.gmra.mrb[16].mxu0 %vm421_vm1, %v3264_v15  ;;  %v2787_v7 = vpop.f32.mrb[21].mxu1  ;;  %v1983_v17 = vadd.f32 %v1982_v14, %v1914_v12 }
 0xa8c   : > { %2812 = vmatprep.mubr.msk.f32.mxu0 %vm3091_vm0, %v3092_v11 }
 0xa8d   : > { %v1986_v23 = vmul.f32 0.35355338, %v1983_v17 }
 0xb56   : > { %v1896_v8 = vpop.f32.mrb[14].mxu0 }
 0xb57   : > { %v1900_v9 = vadd.f32 %v1896_v8, %v3451_v20  ;;  %v2776_v10 = vpop.f32.mrb[15].mxu0  ;;  %v3028_v20 = vunpack.i.h.bf16 %v3026_v5 }
 0xb59   : > { %v2892_v27 = vpack.c.bf16 %v3028_v20, %v3027_v24 }
 0xb5b   : > { %2893 = vmatpush3.bf16.msra.mxu1 %v2892_v27 }
 0xb5c   : > { %2894 = vmatprep.subr.bf16.mxu1 %v3090_v3 }
 0xb5e   : > { %v2068_v19 = vpop.f32.mrb[16].mxu0 }
 0xb5f   : > { %v2069_v21 = vadd.f32 %v2068_v19, %v2000_v13  ;;  %v2798_v22 = vpop.f32.mrb[17].mxu0  ;;  %2896 = vmatpush3.bf16.msra.mxu1 %v2895_v28 }
 0xb60   : > { %2820 = vmatprep.subr.mxu1 %v3092_v11 }
 0xb61   : > { %2811 = vmatpush3.xpose.msk.msra.mxu0 %vm661_vm2, %v2069_v21 }
 0xb62   : > { %2815 = vmatprep.subr.mxu0 %v3092_v11  ;;  %2808 = vmatmul.mubr.msk.f32.vlgmr.msra.gmra.mrb[22].mxu1 %vm421_vm1, %v3264_v15 }
 0xb63   : > { %2822 = vmatprep.mubr.msk.f32.mxu1 %vm3091_vm0, %v3092_v11 }
 0xb64   : > { %2813 = vmatmul.mubr.msk.f32.vlgmr.msra.gmra.mrb[18].mxu0 %vm661_vm2, %v1986_v23 }
 0xb65   : > { %2817 = vmatprep.mubr.msk.f32.mxu0 %vm3091_vm0, %v3092_v11  ;;  %v2320_v11 = vld [vmem:[%s3559_s8 + $0x18] sm:$0xff] }
 0xb66   : > { %2821 = vmatpush3.msra.mxu1 %v2320_v11 }
 0xc35   : > { %v2153_v15 = vpop.f32.mrb[22].mxu1 }
 0xc36   : > { %v2809_v39 = vpop.f32.mrb[23].mxu1 }
 0xc37   : > { %v2229_v29 = vpop.f32.mrb[18].mxu0 }
 0xc38   : > { %v2814_v30 = vpop.f32.mrb[19].mxu0  ;;  %v2233_v31 = vsel %vm738_vm3, %v2229_v29, -inf }
 0xc39   : > { %2234 = vmax.xlane.f32.xlu1 %v2233_v31 }
 0xcc6   : > { %v2235_v32 = vpop.xlane.xlu1 %2234 }
 0xcc7   : > { %v2236_v33 = vsub.f32 %v2229_v29, %v2235_v32 }
 0xcc9   : > { %v2237_v37 = vmul.f32 1.442695, %v2236_v33 }
 0xccb   : > { %3046 = vpow2.f32 %v2237_v37 }
 0xcd5   : > { %v3047_v38 = vpop.eup %3046 }
 0xcd6   : > { %v2239_v3 = vsel %vm738_vm3, %v3047_v38, 0.0 }
 0xcd7   : > { %2240 = vadd.xlane.f32.xlu0 %v2239_v3 }
 0xced   : > { %2084 = vrot.lane.b32.xlu0 %v3352_v45, %s3095_s27 }
 0xd64   : > { %v2241_v40 = vpop.xlane.xlu0 %2240 }
 0xd65   : > { %3048 = vrcp.f32 %v2241_v40 }
 0xd68   : > { %v2085_v41 = vpop.permute.xlu0 %2084 }
 0xd69   : > { %v2154_v43 = vadd.f32 %v2153_v15, %v2085_v41 }
 0xd6b   : > { %2816 = vmatpush3.msk.msra.mxu0 %vm754_vm4, %v2154_v43 }
 0xd6f   : > { %v3049_v44 = vpop.eup %3048 }
 0xd70   : > { %v2243_v46 = vmul.f32 %v3049_v44, %v3047_v38 }
 0xd72   : > { %2818 = vmatmul.mubr.msk.f32.vlgmr.msra.gmra.mrb[20].mxu0 %vm750_vm5, %v2243_v46 }
 0xe45   : > { %v2316_v47 = vpop.f32.mrb[20].mxu0 }
 0xe46   : > { %v2819_v45 = vpop.f32.mrb[21].mxu0  ;;  %2823 = vmatmul.mubr.msk.f32.vlgmr.msra.gmra.mrb[24].mxu1 %vm661_vm2, %v2316_v47 }
 0xf19   : > { %v2390_v48 = vpop.f32.mrb[24].mxu1 }
 0xf1a   : > { %v2394_v50 = vadd.f32 %v2390_v48, %v1900_v9  ;;  %v2824_v51 = vpop.f32.mrb[25].mxu1 }
 0xf1c   : > { %v2402_v52 = vadd.f32 %v2546_v49, %v2394_v50 }
 0xf1e   : > { %2404 = vst.msk [vmem:[%s407_s21] sm:$0x7] %vm2403_vm6, %v2402_v52 }
 0xf1f PF: > { %s20_s17 = sadd.s32 1, %s3088_s17   ;;  %s3562_s13 = smov %s3080_s15 }
 0xf20   : > { %p17_p7 = scmp.ge.s32.totalorder %s20_s17, 14   ;;  %s3563_s14 = smov %s3084_s16 }
 0xf21   : > { %s3564_s15 = smov %s3567_s18  ;;  %s3565_s16 = smov %s3571_s19 }
 0xf22   :  { %19 = sbr.rel (!%p17_p7) target bundleno = 3 (0x3), region = 93 }

// kernel: _lambda_.3
= control target key start
LH: loop header
LB: loop body
LE: loop exit
PB: predicated region body
PF: predicated region fallthrough
CT: control target
= control target key end

     0   :  { %s3701_s24 = smov 0   ;;  %s3703_s25 = smov 0   ;;  %s4185_s0 = inlined_call_operand.vmem [shape: f32[2,4,6,32], index: 0, kind: input, shape index: {}]   ;;  %s4186_s1 = inlined_call_operand.vmem [shape: f32[32,32], index: 1, kind: input, shape index: {}]   ;;  %s4187_s2 = inlined_call_operand.vmem [shape: f32[1,32], index: 2, kind: input, shape index: {}]   ;;  %s4188_s3 = inlined_call_operand.vmem [shape: f32[32,32], index: 3, kind: input, shape index: {}]   ;;  %s4189_s4 = inlined_call_operand.vmem [shape: f32[1,32], index: 4, kind: input, shape index: {}]   ;;  %s4190_s5 = inlined_call_operand.vmem [shape: f32[32,32], index: 5, kind: input, shape index: {}]   ;;  %s4191_s6 = inlined_call_operand.vmem [shape: f32[1,32], index: 6, kind: input, shape index: {}]   ;;  %s4192_s7 = inlined_call_operand.vmem [shape: f32[32,32], index: 7, kind: input, shape index: {}]   ;;  %s4193_s8 = inlined_call_operand.vmem [shape: f32[1,32], index: 8, kind: input, shape index: {}]   ;;  %s4194_s9 = inlined_call_operand.vmem [shape: f32[1,32], index: 9, kind: input, shape index: {}]   ;;  %s4195_s10 = inlined_call_operand.vmem [shape: f32[1,32], index: 10, kind: input, shape index: {}]   ;;  %s4196_s11 = inlined_call_operand.vmem [shape: f32[32,128], index: 11, kind: input, shape index: {}]   ;;  %s4197_s12 = inlined_call_operand.vmem [shape: f32[1,128], index: 12, kind: input, shape index: {}]   ;;  %s4198_s13 = inlined_call_operand.vmem [shape: f32[128,32], index: 13, kind: input, shape index: {}]   ;;  %s4199_s14 = inlined_call_operand.vmem [shape: f32[1,32], index: 14, kind: input, shape index: {}]   ;;  %s4200_s15 = inlined_call_operand.vmem [shape: f32[1,32], index: 15, kind: input, shape index: {}]   ;;  %s4201_s16 = inlined_call_operand.vmem [shape: f32[1,32], index: 16, kind: input, shape index: {}]   ;;  %s4202_s17 = inlined_call_operand.vmem [shape: f32[2,4,6,32], index: 17, kind: output, shape index: {}]  }
   0x1   :  { %4206 = sst [smem:[#allocation5_spill]] %s4185_s0  ;;  %s3705_s26 = smov 0  }
   0x2   :  { %4207 = sst [smem:[#allocation6_spill]] %s4186_s1  ;;  %s3707_s27 = smov 0  }
   0x3   :  { %s3709_s28 = smov 0  }
   0x4 LB: > { %4208 = sst [smem:[#allocation2_spill]] %s3599_s27  ;;  %s36_s29 = sadd.s32 1, %s3595_s26  ;;  %s3603_s28 = sphi %s3709_s28, %s27_s28   ;;  %s3599_s27 = sphi %s3707_s27, %s4215_s27   ;;  %s3595_s26 = sphi %s3705_s26, %s4217_s26   ;;  %s3591_s25 = sphi %s3703_s25, %s4213_s25   ;;  %s3587_s24 = sphi %s3701_s24, %s4216_s24  }
   0x5   : > { %s39_s0 = sadd.s32 1, %s3599_s27  ;;  %p37_p0 = scmp.ge.s32.totalorder %s36_s29, 4 }
   0x6   : > { %p2911_p1 = scmp.ge.s32.totalorder %s3603_s28, 1  ;;  %p506_p2 = scmp.lt.s32.totalorder %s3603_s28, 9 }
   0x7   : > { %s4219_s29 = smov (%p37_p0, %s36_s29), 0  ;;  %s4221_s0 = smov (!%p37_p0, %s39_s0), %s3599_s27 }
   0x8   : > { %4209 = sst [smem:[#allocation3_spill]] %s4219_s29  ;;  %p507_p3 = pnand %p2911_p1, %p506_p2 }
   0x9   : > { %p41_p4 = scmp.ge.s32.totalorder %s4221_s0, 2  ;;  %s4211_s19 = sld [smem:[#allocation6_spill]] (!%p507_p3)  ;;  %v3605_v3 = vmov (!%p507_p3), 0.0|0.0   ;;  %vm3606_vm0 = vmmov (!%p507_p3), 0   ;;  %v3607_v6 = vmov (!%p507_p3), 0.0   ;;  %v667_v8 = vld [vmem:[%s4188_s3] sm:$0xff] (!%p507_p3) }
   0xa   : > { %510 = sbr.rel (%p507_p3) target bundleno = 4966 (0x1366), region = 88  ;;  %3305 = vmatprep.subr.bf16.mxu0 (!%p507_p3), %v3605_v3  ;;  %3075 = vmatprep.mubr.msk.f32.mxu0 (!%p507_p3), %vm3606_vm0, %v3607_v6  ;;  %p564_p5 = scmp.lt.s32.totalorder (!%p507_p3), %s3591_s25, 1  ;;  %v668_v9 = vld [vmem:[%s4188_s3 + $0x8] sm:$0xff] (!%p507_p3)  ;;  %vm592_vm1 = vcmask (!%p507_p3), 261120   ;;  %v3788_v11 = vld [vmem:[%s4188_s3 + $0x10] sm:$0xff] (!%p507_p3)  ;;  %v3793_v12 = vld [vmem:[%s4188_s3 + $0x18] sm:$0xff] (!%p507_p3) }
   0xb   : > { %s4223_s0 = smov (%p41_p4, %s4221_s0), 0  ;;  %p566_p6 = scmp.lt.s32.totalorder (!%p507_p3), %s3587_s24, 3  ;;  %3105 = vmatprep.subr.mxu1 (!%p507_p3), %v3607_v6  ;;  %3107 = vmatprep.mubr.msk.f32.mxu1 (!%p507_p3), %vm3606_vm0, %v3607_v6  ;;  %v3312_v10 = vpack.c.bf16 (!%p507_p3), %v668_v9, %v667_v8  ;;  %v3315_v14 = vpack.c.bf16 (!%p507_p3), %v3793_v12, %v3788_v11  ;;  %v3807_v15 = vld [vmem:[%s4190_s5] sm:$0xff] (!%p507_p3)  ;;  %v3812_v16 = vld [vmem:[%s4190_s5 + $0x8] sm:$0xff] (!%p507_p3)  ;;  %v3825_v18 = vld [vmem:[%s4190_s5 + $0x10] sm:$0xff] (!%p507_p3)  ;;  %vm829_vm2 = vcmask (!%p507_p3), 64512   ;;  %v3865_v37 = vpack.i.bf16 (!%p507_p3), %v668_v9, %v667_v8 }
   0xc   : > { %4210 = sst [smem:[#allocation4_spill]] %s4223_s0  ;;  %s4212_s29 = sld [smem:[#allocation5_spill]] (!%p507_p3)  ;;  %v3318_v17 = vpack.c.bf16 (!%p507_p3), %v3812_v16, %v3807_v15  ;;  %v3830_v19 = vld [vmem:[%s4190_s5 + $0x18] sm:$0xff] (!%p507_p3)  ;;  %v3842_v23 = vld [vmem:[%s4187_s2] ss:$0 sm:$0xff] (!%p507_p3)  ;;  %vm922_vm3 = vcmask (!%p507_p3), 1045504   ;;  %v3888_v46 = vpack.i.bf16 (!%p507_p3), %v3793_v12, %v3788_v11 }
   0xd   : > { %v3321_v20 = vpack.c.bf16 (!%p507_p3), %v3830_v19, %v3825_v18  ;;  %v3847_v24 = vld [vmem:[%s4189_s4] ss:$0 sm:$0xff] (!%p507_p3)  ;;  %vm906_vm4 = vcmask (!%p507_p3), 46080   ;;  %vm918_vm5 = vcmask (!%p507_p3), 48128   ;;  %vm2574_vm6 = vcmask (!%p507_p3), 259072  }
   0xe   : > { %v3859_v30 = vld [vmem:[%s4191_s6] ss:$0 sm:$0xff] (!%p507_p3) }
   0xf   : > { %v3738_v0 = vld [vmem:[%s4211_s19] sm:$0xff] (!%p507_p3)  ;;  %v3743_v1 = vld [vmem:[%s4211_s19 + $0x8] sm:$0xff] (!%p507_p3)  ;;  %v3748_v2 = vld [vmem:[%s4211_s19 + $0x10] sm:$0xff] (!%p507_p3) }
  0x10   : > { %v3306_v4 = vpack.c.bf16 (!%p507_p3), %v3743_v1, %v3738_v0  ;;  %v3756_v5 = vld [vmem:[%s4211_s19 + $0x18] sm:$0xff] (!%p507_p3)  ;;  %v3871_v38 = vpack.i.bf16 (!%p507_p3), %v3743_v1, %v3738_v0 }
  0x11   : > { %v3309_v7 = vpack.c.bf16 %v3756_v5, %v3748_v2  ;;  %s4225_s25 = smov (!%p564_p5, %s3591_s25), 1  ;;  %s4227_s24 = smov (!%p566_p6, %s3587_s24), 3  ;;  %v3877_v39 = vpack.i.bf16 %v3756_v5, %v3748_v2  ;;  %v3915_v5 = vpack.i.bf16 %v3830_v19, %v3825_v18 }
  0x12   : > { %3307 = vmatpush3.bf16.msra.mxu0 %v3306_v4  ;;  %s2912_s22 = sshll.u32 %s4225_s25, 2  ;;  %v3909_v4 = vpack.i.bf16 %v3812_v16, %v3807_v15 }
  0x13   : > { %3308 = vmatprep.subr.bf16.mxu0 %v3605_v3  ;;  %s3776_s23 = sadd.s32 %s2912_s22, %s4227_s24  ;;  %s3609_s22 = smov 112  }
  0x14   : > { %s2913_s30 = sshll.u32 %s3776_s23, 3 }
  0x15   : > { %s571_s27 = scalar_lea.vmem %s4212_s29, %s2913_s30  ;;  %s3610_s29 = smov 104  }
  0x16   : > { %3310 = vmatpush3.bf16.msra.mxu0 %v3309_v7  ;;  %v3795_v13 = vld [vmem:[%s571_s27] sm:$0x3f]  ;;  %s3608_s27 = smov 120   ;;  %s579_s20 = scalar_lea.vmem %s4202_s17, %s2913_s30 }
  0x17   : > { %3311 = vmatprep.subr.bf16.mxu0 %v3605_v3  ;;  %3454 = vrot.lane.b32.xlu1 %v3865_v37, %s3608_s27 }
  0x19   : > { %3076 = vmatmul.mubr.msk.f32.vlgmr.msra.gmra.mrb[0].mxu0 %vm592_vm1, %v3795_v13 }
  0x1a   : > { %3313 = vmatpush3.bf16.msra.mxu0 %v3312_v10  ;;  %3086 = vmatprep.mubr.msk.f32.mxu0 %vm3606_vm0, %v3607_v6 }
  0x1b   : > { %3314 = vmatprep.subr.bf16.mxu0 %v3605_v3  ;;  %3459 = vrot.lane.b32.xlu1 %v3871_v38, %s3608_s27 }
  0x1e   : > { %3316 = vmatpush3.bf16.msra.mxu0 %v3315_v14 }
  0x1f   : > { %3317 = vmatprep.subr.bf16.mxu0 %v3605_v3  ;;  %3469 = vrot.lane.b32.xlu1 %v3877_v39, %s3608_s27 }
  0x21   : > { %3087 = vmatmul.mubr.msk.f32.vlgmr.msra.gmra.mrb[2].mxu0 %vm592_vm1, %v3795_v13 }
  0x22   : > { %3319 = vmatpush3.bf16.msra.mxu0 %v3318_v17  ;;  %3097 = vmatprep.mubr.msk.f32.mxu0 %vm3606_vm0, %v3607_v6 }
  0x23   : > { %3320 = vmatprep.subr.bf16.mxu0 %v3605_v3  ;;  %1103 = vrot.lane.b32.xlu1 %v3847_v24, %s3608_s27 }
  0x26   : > { %3322 = vmatpush3.bf16.msra.mxu0 %v3321_v20 }
  0x27   : > { %3100 = vmatprep.subr.mxu0 %v3607_v6  ;;  %1013 = vrot.lane.b32.xlu1 %v3842_v23, %s3608_s27 }
  0x29   : > { %3098 = vmatmul.mubr.msk.f32.vlgmr.msra.gmra.mrb[4].mxu0 %vm592_vm1, %v3795_v13 }
  0x2a   : > { %3102 = vmatprep.mubr.msk.f32.mxu0 %vm3606_vm0, %v3607_v6 }
  0x2b   : > { %3474 = vrot.lane.b32.xlu1 %v3909_v4, %s3608_s27 }
  0x2f   : > { %3479 = vrot.lane.b32.xlu1 %v3915_v5, %s3608_s27 }
  0x89   : > { %v3455_v45 = vpop.permute.xlu1 %3454 }
  0x8a   : > { %v3457_v57 = vunpack.i.h.bf16 %v3455_v45  ;;  %v3456_v58 = vunpack.i.l.bf16 %v3455_v45 }
  0x8c   : > { %v3330_v63 = vpack.c.bf16 %v3457_v57, %v3456_v58 }
  0x8d   : > { %v3460_v47 = vpop.permute.xlu1 %3459 }
  0x8e   : > { %v3462_v48 = vunpack.i.h.bf16 %v3460_v47  ;;  %v3461_v49 = vunpack.i.l.bf16 %v3460_v47 }
  0x90   : > { %v3324_v50 = vpack.c.bf16 %v3462_v48, %v3461_v49 }
  0x91   : > { %v3470_v51 = vpop.permute.xlu1 %3469 }
  0x92   : > { %v3472_v52 = vunpack.i.h.bf16 %v3470_v51  ;;  %v3471_v53 = vunpack.i.l.bf16 %v3470_v51  ;;  %v996_v51 = vld [vmem:[%s4192_s7] sm:$0xff] }
  0x94   : > { %v3327_v54 = vpack.c.bf16 %v3472_v52, %v3471_v53 }
  0x95   : > { %v1104_v7 = vpop.permute.xlu1 %1103 }
  0x99   : > { %v1014_v10 = vpop.permute.xlu1 %1013 }
  0x9d   : > { %v3475_v17 = vpop.permute.xlu1 %3474 }
  0x9e   : > { %v3477_v18 = vunpack.i.h.bf16 %v3475_v17  ;;  %v3476_v19 = vunpack.i.l.bf16 %v3475_v17 }
  0xa0   : > { %v3336_v20 = vpack.c.bf16 %v3477_v18, %v3476_v19 }
  0xec   : > { %v662_v21 = vpop.f32.mrb[0].mxu0 }
  0xed   : > { %v3077_v22 = vpop.f32.mrb[1].mxu0  ;;  %v663_v25 = vadd.f32 %v3842_v23, %v662_v21  ;;  %v3480_v21 = vpop.permute.xlu1 %3479 }
  0xee   : > { %v3482_v22 = vunpack.i.h.bf16 %v3480_v21 }
  0xef   : > { %v666_v29 = vmul.f32 0.35355338, %v663_v25  ;;  %v3481_v25 = vunpack.i.l.bf16 %v3480_v21 }
  0xf4   : > { %v744_v26 = vpop.f32.mrb[2].mxu0 }
  0xf5   : > { %v745_v27 = vadd.f32 %v3847_v24, %v744_v26  ;;  %v3088_v28 = vpop.f32.mrb[3].mxu0  ;;  %v3339_v26 = vpack.c.bf16 %v3482_v22, %v3481_v25 }
  0xf7   : > { %3101 = vmatpush3.xpose.msk.msra.mxu0 %vm829_vm2, %v745_v27 }
  0xf8   : > { %3323 = vmatprep.subr.bf16.mxu0 %v3605_v3 }
  0xfa   : > { %3103 = vmatmul.mubr.msk.f32.vlgmr.msra.gmra.mrb[6].mxu0 %vm829_vm2, %v666_v29 }
  0xfb   : > { %3118 = vmatprep.mubr.msk.f32.mxu0 %vm3606_vm0, %v3607_v6  ;;  %3325 = vmatpush3.bf16.msra.mxu0 %v3324_v50 }
  0xfc   : > { %v825_v31 = vpop.f32.mrb[4].mxu0  ;;  %3326 = vmatprep.subr.bf16.mxu0 %v3605_v3 }
  0xfd   : > { %v826_v32 = vadd.f32 %v3859_v30, %v825_v31  ;;  %v3099_v33 = vpop.f32.mrb[5].mxu0 }
  0xff   : > { %3106 = vmatpush3.msk.msra.mxu1 %vm922_vm3, %v826_v32  ;;  %3328 = vmatpush3.bf16.msra.mxu0 %v3327_v54 }
 0x100   : > { %3329 = vmatprep.subr.bf16.mxu1 %v3605_v3  ;;  %3335 = vmatprep.subr.bf16.mxu0 %v3605_v3 }
 0x102   : > { %3119 = vmatmul.mubr.msk.f32.vlgmr.msra.gmra.mrb[8].mxu0 %vm592_vm1, %v3795_v13 }
 0x103   : > { %3140 = vmatprep.mubr.msk.f32.mxu0 %vm3606_vm0, %v3607_v6  ;;  %3337 = vmatpush3.bf16.msra.mxu0 %v3336_v20 }
 0x104   : > { %3338 = vmatprep.subr.bf16.mxu0 %v3605_v3 }
 0x107   : > { %3340 = vmatpush3.bf16.msra.mxu0 %v3339_v26 }
 0x108   : > { %3153 = vmatprep.subr.mxu0 %v3607_v6 }
 0x10a   : > { %3141 = vmatmul.mubr.msk.f32.vlgmr.msra.gmra.mrb[10].mxu0 %vm592_vm1, %v3795_v13 }
 0x10b   : > { %3155 = vmatprep.mubr.msk.f32.mxu0 %vm3606_vm0, %v3607_v6 }
 0x1cd   : > { %v902_v34 = vpop.f32.mrb[6].mxu0 }
 0x1ce   : > { %v3104_v35 = vpop.f32.mrb[7].mxu0  ;;  %v907_v36 = vsel %vm906_vm4, %v902_v34, -inf }
 0x1cf   : > { %908 = vmax.xlane.f32.xlu0 %v907_v36 }
 0x1d5   : > { %v1082_v1 = vpop.f32.mrb[8].mxu0 }
 0x1d6   : > { %v3120_v2 = vpop.f32.mrb[9].mxu0  ;;  %v1083_v11 = vadd.f32 %v1082_v1, %v1014_v10 }
 0x1d8   : > { %v1086_v16 = vmul.f32 0.35355338, %v1083_v11 }
 0x1dd   : > { %v1261_v36 = vpop.f32.mrb[10].mxu0 }
 0x25c   : > { %v909_v40 = vpop.xlane.xlu0 %908 }
 0x25d   : > { %v910_v41 = vsub.f32 %v902_v34, %v909_v40  ;;  %v3142_v40 = vpop.f32.mrb[11].mxu0 }
 0x25f   : > { %v911_v42 = vmul.f32 1.442695, %v910_v41  ;;  %v1428_v41 = vld [vmem:[%s4192_s7 + $0x8] sm:$0xff] }
 0x260   : > { %3154 = vmatpush3.msra.mxu0 %v1428_v41 }
 0x261   : > { %3543 = vpow2.f32 %v911_v42  ;;  %3341 = vmatprep.subr.bf16.mxu0 %v3605_v3 }
 0x26b   : > { %v3544_v43 = vpop.eup %3543 }
 0x26c   : > { %v913_v44 = vsel %vm906_vm4, %v3544_v43, 0.0 }
 0x26d   : > { %914 = vadd.xlane.f32.xlu0 %v913_v44 }
 0x283   : > { %3464 = vrot.lane.b32.xlu0 %v3888_v46, %s3608_s27 }
 0x2fa   : > { %v915_v55 = vpop.xlane.xlu0 %914 }
 0x2fb   : > { %3545 = vrcp.f32 %v915_v55 }
 0x2fe   : > { %v3465_v56 = vpop.permute.xlu0 %3464 }
 0x2ff   : > { %v3467_v60 = vunpack.i.h.bf16 %v3465_v56  ;;  %v3466_v61 = vunpack.i.l.bf16 %v3465_v56 }
 0x301   : > { %v3333_v0 = vpack.c.bf16 %v3467_v60, %v3466_v61 }
 0x305   : > { %v3546_v59 = vpop.eup %3545 }
 0x306   : > { %v917_v62 = vmul.f32 %v3546_v59, %v3544_v43 }
 0x308   : > { %3108 = vmatmul.mubr.msk.f32.vlgmr.msra.gmra.mrb[0].mxu1 %vm918_vm5, %v917_v62 }
 0x309   : > { %3331 = vmatpush3.bf16.msra.mxu1 %v3330_v63  ;;  %3129 = vmatprep.mubr.msk.f32.mxu1 %vm3606_vm0, %v3607_v6 }
 0x30a   : > { %3332 = vmatprep.subr.bf16.mxu1 %v3605_v3 }
 0x30d   : > { %3334 = vmatpush3.bf16.msra.mxu1 %v3333_v0 }
 0x30e   : > { %3143 = vmatprep.subr.mxu1 %v3607_v6 }
 0x310   : > { %3130 = vmatmul.mubr.msk.f32.vlgmr.msra.gmra.mrb[2].mxu1 %vm592_vm1, %v3795_v13 }
 0x311   : > { %3145 = vmatprep.mubr.msk.f32.mxu1 %vm3606_vm0, %v3607_v6 }
 0x3db   : > { %v3919_v8 = vpop.f32.mrb[0].mxu1 }
 0x3dc   : > { %v3109_v9 = vpop.f32.mrb[1].mxu1 }
 0x3e3   : > { %v1172_v12 = vpop.f32.mrb[2].mxu1 }
 0x3e4   : > { %v1173_v14 = vadd.f32 %v1172_v12, %v1104_v7  ;;  %v3131_v15 = vpop.f32.mrb[3].mxu1 }
 0x3e6   : > { %3144 = vmatpush3.xpose.msk.msra.mxu1 %vm829_vm2, %v1173_v14 }
 0x3e7   : > { %3148 = vmatprep.subr.mxu1 %v3607_v6 }
 0x3e9   : > { %3146 = vmatmul.mubr.msk.f32.vlgmr.msra.gmra.mrb[4].mxu1 %vm829_vm2, %v1086_v16 }
 0x3ea   : > { %3150 = vmatprep.mubr.msk.f32.mxu1 %vm3606_vm0, %v3607_v6 }
 0x4bc   : > { %v1337_v27 = vpop.f32.mrb[4].mxu1 }
 0x4bd   : > { %v3147_v28 = vpop.f32.mrb[5].mxu1  ;;  %v1341_v29 = vsel %vm906_vm4, %v1337_v27, -inf }
 0x4be   : > { %1342 = vmax.xlane.f32.xlu1 %v1341_v29 }
 0x4cf   : > { %3484 = vrot.lane.b32.xlu1 %v3865_v37, %s3609_s22 }
 0x4d3   : > { %3489 = vrot.lane.b32.xlu1 %v3871_v38, %s3609_s22 }
 0x4d7   : > { %3499 = vrot.lane.b32.xlu1 %v3877_v39, %s3609_s22 }
 0x4db   : > { %1587 = vrot.lane.b32.xlu1 %v3842_v23, %s3609_s22 }
 0x4df   : > { %3509 = vrot.lane.b32.xlu1 %v3915_v5, %s3609_s22 }
 0x54b   : > { %v1343_v31 = vpop.xlane.xlu1 %1342 }
 0x54c   : > { %v1344_v32 = vsub.f32 %v1337_v27, %v1343_v31 }
 0x54e   : > { %v1345_v33 = vmul.f32 1.442695, %v1344_v32 }
 0x54f   : > { %v3485_v45 = vpop.permute.xlu1 %3484 }
 0x550   : > { %3547 = vpow2.f32 %v1345_v33  ;;  %v3487_v48 = vunpack.i.h.bf16 %v3485_v45  ;;  %v3486_v49 = vunpack.i.l.bf16 %v3485_v45 }
 0x552   : > { %v3348_v53 = vpack.c.bf16 %v3487_v48, %v3486_v49  ;;  %v1994_v49 = vld [vmem:[%s4192_s7 + $0x10] sm:$0xff] }
 0x553   : > { %v3490_v57 = vpop.permute.xlu1 %3489 }
 0x554   : > { %v3492_v58 = vunpack.i.h.bf16 %v3490_v57  ;;  %v3491_v59 = vunpack.i.l.bf16 %v3490_v57 }
 0x556   : > { %v3342_v61 = vpack.c.bf16 %v3492_v58, %v3491_v59 }
 0x557   : > { %v3500_v60 = vpop.permute.xlu1 %3499 }
 0x558   : > { %v3502_v62 = vunpack.i.h.bf16 %v3500_v60  ;;  %v3501_v63 = vunpack.i.l.bf16 %v3500_v60 }
 0x55a   : > { %v3548_v34 = vpop.eup %3547  ;;  %v3345_v2 = vpack.c.bf16 %v3502_v62, %v3501_v63 }
 0x55b   : > { %v1347_v35 = vsel %vm906_vm4, %v3548_v34, 0.0  ;;  %v1588_v17 = vpop.permute.xlu1 %1587 }
 0x55c   : > { %1348 = vadd.xlane.f32.xlu0 %v1347_v35 }
 0x55f   : > { %v3510_v25 = vpop.permute.xlu1 %3509 }
 0x560   : > { %v3512_v28 = vunpack.i.h.bf16 %v3510_v25  ;;  %v3511_v29 = vunpack.i.l.bf16 %v3510_v25 }
 0x562   : > { %v3357_v32 = vpack.c.bf16 %v3512_v28, %v3511_v29 }
 0x572   : > { %1192 = vrot.lane.b32.xlu0 %v3859_v30, %s3608_s27 }
 0x576   : > { %3494 = vrot.lane.b32.xlu0 %v3888_v46, %s3609_s22 }
 0x57a   : > { %1673 = vrot.lane.b32.xlu0 %v3847_v24, %s3609_s22 }
 0x57e   : > { %3504 = vrot.lane.b32.xlu0 %v3909_v4, %s3609_s22 }
 0x5e9   : > { %v1349_v42 = vpop.xlane.xlu0 %1348 }
 0x5ea   : > { %3549 = vrcp.f32 %v1349_v42 }
 0x5ed   : > { %v1193_v43 = vpop.permute.xlu0 %1192 }
 0x5ee   : > { %v1262_v44 = vadd.f32 %v1261_v36, %v1193_v43 }
 0x5f0   : > { %3149 = vmatpush3.msk.msra.mxu1 %vm922_vm3, %v1262_v44 }
 0x5f1   : > { %3158 = vmatprep.subr.mxu1 %v3607_v6  ;;  %v3495_v52 = vpop.permute.xlu0 %3494 }
 0x5f2   : > { %v3497_v54 = vunpack.i.h.bf16 %v3495_v52  ;;  %v3496_v55 = vunpack.i.l.bf16 %v3495_v52 }
 0x5f4   : > { %v3550_v47 = vpop.eup %3549  ;;  %v3351_v56 = vpack.c.bf16 %v3497_v54, %v3496_v55 }
 0x5f5   : > { %v1351_v50 = vmul.f32 %v3550_v47, %v3548_v34  ;;  %v1674_v10 = vpop.permute.xlu0 %1673 }
 0x5f7   : > { %3151 = vmatmul.mubr.msk.f32.vlgmr.msra.gmra.mrb[6].mxu1 %vm918_vm5, %v1351_v50 }
 0x5f8   : > { %3159 = vmatpush3.msra.mxu1 %v996_v51  ;;  %3160 = vmatprep.mubr.msk.f32.mxu1 %vm3606_vm0, %v3607_v6 }
 0x5f9   : > { %3347 = vmatprep.subr.bf16.mxu1 %v3605_v3  ;;  %v3505_v22 = vpop.permute.xlu0 %3504 }
 0x5fa   : > { %v3507_v26 = vunpack.i.h.bf16 %v3505_v22  ;;  %v3506_v27 = vunpack.i.l.bf16 %v3505_v22 }
 0x5fb   : > { %3161 = vmatmul.mubr.msk.f32.vlgmr.msra.gmra.mrb[8].mxu1 %vm829_vm2, %v3919_v8 }
 0x5fc   : > { %3349 = vmatpush3.bf16.msra.mxu1 %v3348_v53  ;;  %3182 = vmatprep.mubr.msk.f32.mxu1 %vm3606_vm0, %v3607_v6  ;;  %v3354_v31 = vpack.c.bf16 %v3507_v26, %v3506_v27 }
 0x5fd   : > { %3350 = vmatprep.subr.bf16.mxu1 %v3605_v3 }
 0x600   : > { %3352 = vmatpush3.bf16.msra.mxu1 %v3351_v56 }
 0x601   : > { %3196 = vmatprep.subr.mxu1 %v3607_v6 }
 0x603   : > { %3183 = vmatmul.mubr.msk.f32.vlgmr.msra.gmra.mrb[10].mxu1 %vm592_vm1, %v3795_v13 }
 0x604   : > { %3198 = vmatprep.mubr.msk.f32.mxu1 %vm3606_vm0, %v3607_v6 }
 0x6ca   : > { %v1424_v0 = vpop.f32.mrb[6].mxu1 }
 0x6cb   : > { %v3152_v1 = vpop.f32.mrb[7].mxu1  ;;  %3156 = vmatmul.mubr.msk.f32.vlgmr.msra.gmra.mrb[12].mxu0 %vm829_vm2, %v1424_v0 }
 0x6cc   : > { %3343 = vmatpush3.bf16.msra.mxu0 %v3342_v61  ;;  %3171 = vmatprep.mubr.msk.f32.mxu0 %vm3606_vm0, %v3607_v6 }
 0x6cd   : > { %3344 = vmatprep.subr.bf16.mxu0 %v3605_v3 }
 0x6ce   : > { %v1571_v7 = vpop.f32.mrb[8].mxu1 }
 0x6cf   : > { %v3162_v8 = vpop.f32.mrb[9].mxu1 }
 0x6d0   : > { %3346 = vmatpush3.bf16.msra.mxu0 %v3345_v2 }
 0x6d1   : > { %3353 = vmatprep.subr.bf16.mxu0 %v3605_v3 }
 0x6d3   : > { %3172 = vmatmul.mubr.msk.f32.vlgmr.msra.gmra.mrb[14].mxu0 %vm592_vm1, %v3795_v13 }
 0x6d4   : > { %3193 = vmatprep.mubr.msk.f32.mxu0 %vm3606_vm0, %v3607_v6  ;;  %3355 = vmatpush3.bf16.msra.mxu0 %v3354_v31 }
 0x6d5   : > { %3356 = vmatprep.subr.bf16.mxu0 %v3605_v3 }
 0x6d6   : > { %v1742_v9 = vpop.f32.mrb[10].mxu1 }
 0x6d7   : > { %v1743_v11 = vadd.f32 %v1742_v9, %v1674_v10  ;;  %v3184_v12 = vpop.f32.mrb[11].mxu1 }
 0x6d8   : > { %3358 = vmatpush3.bf16.msra.mxu0 %v3357_v32 }
 0x6d9   : > { %3197 = vmatpush3.xpose.msk.msra.mxu1 %vm829_vm2, %v1743_v11  ;;  %3206 = vmatprep.subr.mxu0 %v3607_v6 }
 0x6da   : > { %3201 = vmatprep.subr.mxu1 %v3607_v6 }
 0x6db   : > { %3194 = vmatmul.mubr.msk.f32.vlgmr.msra.gmra.mrb[16].mxu0 %vm592_vm1, %v3795_v13 }
 0x6dc   : > { %3208 = vmatprep.mubr.msk.f32.mxu0 %vm3606_vm0, %v3607_v6  ;;  %3207 = vmatpush3.msra.mxu0 %v1994_v49  ;;  %v2951_v49 = vld [vmem:[%s4193_s8] ss:$0 sm:$0xff] }
 0x6dd   : > { %3365 = vmatprep.subr.bf16.mxu0 %v3605_v3 }
 0x79e   : > { %v1498_v14 = vpop.f32.mrb[12].mxu0 }
 0x79f   : > { %v3986_v15 = vadd.f32 %v1571_v7, %v1498_v14  ;;  %v3157_v16 = vpop.f32.mrb[13].mxu0 }
 0x7a6   : > { %v1656_v18 = vpop.f32.mrb[14].mxu0 }
 0x7a7   : > { %v1657_v19 = vadd.f32 %v1656_v18, %v1588_v17  ;;  %v3173_v20 = vpop.f32.mrb[15].mxu0 }
 0x7a9   : > { %v1660_v21 = vmul.f32 0.35355338, %v1657_v19 }
 0x7ab   : > { %3199 = vmatmul.mubr.msk.f32.vlgmr.msra.gmra.mrb[12].mxu1 %vm829_vm2, %v1660_v21 }
 0x7ac   : > { %3203 = vmatprep.mubr.msk.f32.mxu1 %vm3606_vm0, %v3607_v6 }
 0x7ae   : > { %v1827_v44 = vpop.f32.mrb[16].mxu0 }
 0x7af   : > { %v3195_v47 = vpop.f32.mrb[17].mxu0 }
 0x87e   : > { %v1903_v33 = vpop.f32.mrb[12].mxu1 }
 0x87f   : > { %v3200_v34 = vpop.f32.mrb[13].mxu1  ;;  %v1907_v35 = vsel %vm906_vm4, %v1903_v33, -inf }
 0x880   : > { %1908 = vmax.xlane.f32.xlu0 %v1907_v35 }
 0x896   : > { %1758 = vrot.lane.b32.xlu0 %v3859_v30, %s3609_s22 }
 0x89a   : > { %3519 = vrot.lane.b32.xlu0 %v3871_v38, %s3610_s29 }
 0x89e   : > { %3529 = vrot.lane.b32.xlu0 %v3877_v39, %s3610_s29 }
 0x8a2   : > { %2081 = vrot.lane.b32.xlu0 %v3842_v23, %s3610_s29 }
 0x8a6   : > { %3539 = vrot.lane.b32.xlu0 %v3915_v5, %s3610_s29 }
 0x90d   : > { %v1909_v36 = vpop.xlane.xlu0 %1908 }
 0x90e   : > { %v1910_v40 = vsub.f32 %v1903_v33, %v1909_v36 }
 0x910   : > { %v1911_v41 = vmul.f32 1.442695, %v1910_v40  ;;  %v2488_v40 = vld [vmem:[%s4192_s7 + $0x18] sm:$0xff] }
 0x911   : > { %v1759_v45 = vpop.permute.xlu0 %1758 }
 0x912   : > { %3551 = vpow2.f32 %v1911_v41  ;;  %v1828_v48 = vadd.f32 %v1827_v44, %v1759_v45 }
 0x914   : > { %3202 = vmatpush3.msk.msra.mxu1 %vm922_vm3, %v1828_v48 }
 0x915   : > { %3359 = vmatprep.subr.bf16.mxu1 %v3605_v3 }
 0x91c   : > { %v3552_v42 = vpop.eup %3551 }
 0x91d   : > { %v1913_v43 = vsel %vm906_vm4, %v3552_v42, 0.0 }
 0x91e   : > { %1914 = vadd.xlane.f32.xlu1 %v1913_v43 }
 0x92f   : > { %3514 = vrot.lane.b32.xlu1 %v3865_v37, %s3610_s29  ;;  %v3520_v37 = vpop.permute.xlu0 %3519 }
 0x930   : > { %v3522_v51 = vunpack.i.h.bf16 %v3520_v37  ;;  %v3521_v52 = vunpack.i.l.bf16 %v3520_v37 }
 0x932   : > { %v3360_v53 = vpack.c.bf16 %v3522_v51, %v3521_v52 }
 0x933   : > { %3524 = vrot.lane.b32.xlu1 %v3888_v46, %s3610_s29 }
 0x937   : > { %2167 = vrot.lane.b32.xlu1 %v3847_v24, %s3610_s29  ;;  %v3530_v24 = vpop.permute.xlu0 %3529 }
 0x938   : > { %v3532_v39 = vunpack.i.h.bf16 %v3530_v24  ;;  %v3531_v46 = vunpack.i.l.bf16 %v3530_v24 }
 0x93a   : > { %v3363_v23 = vpack.c.bf16 %v3532_v39, %v3531_v46  ;;  %v2603_v46 = vld [vmem:[%s4196_s11] sm:$0xff] }
 0x93b   : > { %3534 = vrot.lane.b32.xlu1 %v3909_v4, %s3610_s29  ;;  %v2082_v10 = vpop.permute.xlu0 %2081 }
 0x93f   : > { %v3540_v5 = vpop.permute.xlu0 %3539 }
 0x940   : > { %v3542_v20 = vunpack.i.h.bf16 %v3540_v5  ;;  %v3541_v21 = vunpack.i.l.bf16 %v3540_v5 }
 0x942   : > { %v3375_v25 = vpack.c.bf16 %v3542_v20, %v3541_v21  ;;  %v2706_v21 = vld [vmem:[%s4198_s13 + $0x50] sm:$0xff] }
 0x9ab   : > { %v1915_v50 = vpop.xlane.xlu1 %1914 }
 0x9ac   : > { %3553 = vrcp.f32 %v1915_v50 }
 0x9af   : > { %v3515_v55 = vpop.permute.xlu1 %3514 }
 0x9b0   : > { %v3517_v56 = vunpack.i.h.bf16 %v3515_v55  ;;  %v3516_v57 = vunpack.i.l.bf16 %v3515_v55 }
 0x9b2   : > { %v3366_v59 = vpack.c.bf16 %v3517_v56, %v3516_v57  ;;  %v2606_v56 = vld [vmem:[%s4196_s11 + $0x18] sm:$0xff] }
 0x9b3   : > { %v3525_v58 = vpop.permute.xlu1 %3524 }
 0x9b4   : > { %v3527_v60 = vunpack.i.h.bf16 %v3525_v58  ;;  %v3526_v61 = vunpack.i.l.bf16 %v3525_v58  ;;  %v2696_v58 = vld [vmem:[%s4198_s13] sm:$0xff] }
 0x9b6   : > { %v3554_v38 = vpop.eup %3553  ;;  %v3369_v0 = vpack.c.bf16 %v3527_v60, %v3526_v61 }
 0x9b7   : > { %v1917_v54 = vmul.f32 %v3554_v38, %v3552_v42  ;;  %v2168_v11 = vpop.permute.xlu1 %2167 }
 0x9b9   : > { %3204 = vmatmul.mubr.msk.f32.vlgmr.msra.gmra.mrb[14].mxu1 %vm918_vm5, %v1917_v54 }
 0x9ba   : > { %3361 = vmatpush3.bf16.msra.mxu1 %v3360_v53  ;;  %3219 = vmatprep.mubr.msk.f32.mxu1 %vm3606_vm0, %v3607_v6 }
 0x9bb   : > { %3362 = vmatprep.subr.bf16.mxu1 %v3605_v3  ;;  %v3535_v4 = vpop.permute.xlu1 %3534 }
 0x9bc   : > { %v3536_v19 = vunpack.i.l.bf16 %v3535_v4 }
 0x9be   : > { %3364 = vmatpush3.bf16.msra.mxu1 %v3363_v23  ;;  %v2604_v23 = vld [vmem:[%s4196_s11 + $0x8] sm:$0xff] }
 0x9bf   : > { %3371 = vmatprep.subr.bf16.mxu1 %v3605_v3  ;;  %v3378_v55 = vpack.c.bf16 %v2604_v23, %v2603_v46 }
 0x9c1   : > { %3220 = vmatmul.mubr.msk.f32.vlgmr.msra.gmra.mrb[16].mxu1 %vm592_vm1, %v3795_v13 }
 0x9c2   : > { %3241 = vmatprep.mubr.msk.f32.mxu1 %vm3606_vm0, %v3607_v6 }
 0xa8c   : > { %v1990_v62 = vpop.f32.mrb[14].mxu1 }
 0xa8d   : > { %v3205_v63 = vpop.f32.mrb[15].mxu1  ;;  %3209 = vmatmul.mubr.msk.f32.vlgmr.msra.gmra.mrb[18].mxu0 %vm829_vm2, %v1990_v62 }
 0xa8e   : > { %3367 = vmatpush3.bf16.msra.mxu0 %v3366_v59  ;;  %3230 = vmatprep.mubr.msk.f32.mxu0 %vm3606_vm0, %v3607_v6  ;;  %v2697_v59 = vld [vmem:[%s4198_s13 + $0x8] sm:$0xff] }
 0xa8f   : > { %3368 = vmatprep.subr.bf16.mxu0 %v3605_v3  ;;  %v3384_v60 = vpack.c.bf16 %v2697_v59, %v2696_v58 }
 0xa92   : > { %3370 = vmatpush3.bf16.msra.mxu0 %v3369_v0 }
 0xa93   : > { %3244 = vmatprep.subr.mxu0 %v3607_v6 }
 0xa94   : > { %v2150_v1 = vpop.f32.mrb[16].mxu1 }
 0xa95   : > { %3231 = vmatmul.mubr.msk.f32.vlgmr.msra.gmra.mrb[20].mxu0 %vm592_vm1, %v3795_v13  ;;  %v3221_v2 = vpop.f32.mrb[17].mxu1  ;;  %v2151_v12 = vadd.f32 %v2150_v1, %v2082_v10  ;;  %v2952_v1 = vld [vmem:[%s4194_s9] ss:$0 sm:$0xff]  ;;  %v2698_v10 = vld [vmem:[%s4198_s13 + $0x10] sm:$0xff] }
 0xa96   : > { %3246 = vmatprep.mubr.msk.f32.mxu0 %vm3606_vm0, %v3607_v6 }
 0xa97   : > { %v2154_v18 = vmul.f32 0.35355338, %v2151_v12 }
 0xb60   : > { %v2064_v7 = vpop.f32.mrb[18].mxu0 }
 0xb61   : > { %v2068_v8 = vadd.f32 %v2064_v7, %v3986_v15  ;;  %v3210_v9 = vpop.f32.mrb[19].mxu0  ;;  %v3537_v15 = vunpack.i.h.bf16 %v3535_v4  ;;  %v2953_v7 = vld [vmem:[%s4195_s10] ss:$0 sm:$0xff]  ;;  %v2703_v4 = vld [vmem:[%s4198_s13 + $0x38] sm:$0xff] }
 0xb63   : > { %v3372_v22 = vpack.c.bf16 %v3537_v15, %v3536_v19  ;;  %v2704_v15 = vld [vmem:[%s4198_s13 + $0x40] sm:$0xff]  ;;  %v2705_v19 = vld [vmem:[%s4198_s13 + $0x48] sm:$0xff] }
 0xb64   : > { %v3396_v20 = vpack.c.bf16 %v2705_v19, %v2704_v15 }
 0xb65   : > { %3373 = vmatpush3.bf16.msra.mxu1 %v3372_v22  ;;  %v2707_v22 = vld [vmem:[%s4198_s13 + $0x58] sm:$0xff] }
 0xb66   : > { %3374 = vmatprep.subr.bf16.mxu1 %v3605_v3 }
 0xb68   : > { %v2236_v14 = vpop.f32.mrb[20].mxu0 }
 0xb69   : > { %v2237_v16 = vadd.f32 %v2236_v14, %v2168_v11  ;;  %v3232_v17 = vpop.f32.mrb[21].mxu0  ;;  %3376 = vmatpush3.bf16.msra.mxu1 %v3375_v25  ;;  %v2699_v11 = vld [vmem:[%s4198_s13 + $0x18] sm:$0xff]  ;;  %v2700_v14 = vld [vmem:[%s4198_s13 + $0x20] sm:$0xff]  ;;  %v3399_v25 = vpack.c.bf16 %v2707_v22, %v2706_v21 }
 0xb6a   : > { %3254 = vmatprep.subr.mxu1 %v3607_v6  ;;  %v3387_v12 = vpack.c.bf16 %v2699_v11, %v2698_v10 }
 0xb6b   : > { %3245 = vmatpush3.xpose.msk.msra.mxu0 %vm829_vm2, %v2237_v16  ;;  %v2701_v16 = vld [vmem:[%s4198_s13 + $0x28] sm:$0xff] }
 0xb6c   : > { %3249 = vmatprep.subr.mxu0 %v3607_v6  ;;  %3242 = vmatmul.mubr.msk.f32.vlgmr.msra.gmra.mrb[18].mxu1 %vm592_vm1, %v3795_v13  ;;  %v3390_v17 = vpack.c.bf16 %v2701_v16, %v2700_v14 }
 0xb6d   : > { %3256 = vmatprep.mubr.msk.f32.mxu1 %vm3606_vm0, %v3607_v6  ;;  %3255 = vmatpush3.msra.mxu1 %v2488_v40 }
 0xb6e   : > { %3247 = vmatmul.mubr.msk.f32.vlgmr.msra.gmra.mrb[22].mxu0 %vm829_vm2, %v2154_v18  ;;  %3383 = vmatprep.subr.bf16.mxu1 %v3605_v3  ;;  %v2702_v18 = vld [vmem:[%s4198_s13 + $0x30] sm:$0xff] }
 0xb6f   : > { %3251 = vmatprep.mubr.msk.f32.mxu0 %vm3606_vm0, %v3607_v6  ;;  %v3393_v5 = vpack.c.bf16 %v2703_v4, %v2702_v18 }
 0xc3f   : > { %v2321_v35 = vpop.f32.mrb[18].mxu1 }
 0xc40   : > { %v3243_v36 = vpop.f32.mrb[19].mxu1 }
 0xc41   : > { %v2397_v26 = vpop.f32.mrb[22].mxu0 }
 0xc42   : > { %v3248_v27 = vpop.f32.mrb[23].mxu0  ;;  %v2401_v28 = vsel %vm906_vm4, %v2397_v26, -inf }
 0xc43   : > { %2402 = vmax.xlane.f32.xlu1 %v2401_v28  ;;  %v2709_v27 = vld [vmem:[%s4198_s13 + $0x68] sm:$0xff] }
 0xcd0   : > { %v2403_v29 = vpop.xlane.xlu1 %2402 }
 0xcd1   : > { %v2404_v31 = vsub.f32 %v2397_v26, %v2403_v29  ;;  %v2708_v26 = vld [vmem:[%s4198_s13 + $0x60] sm:$0xff]  ;;  %v2710_v29 = vld [vmem:[%s4198_s13 + $0x70] sm:$0xff] }
 0xcd2   : > { %v3402_v28 = vpack.c.bf16 %v2709_v27, %v2708_v26 }
 0xcd3   : > { %v2405_v32 = vmul.f32 1.442695, %v2404_v31  ;;  %v2711_v31 = vld [vmem:[%s4198_s13 + $0x78] sm:$0xff] }
 0xcd5   : > { %3555 = vpow2.f32 %v2405_v32  ;;  %v3405_v32 = vpack.c.bf16 %v2711_v31, %v2710_v29 }
 0xcdf   : > { %v3556_v33 = vpop.eup %3555 }
 0xce0   : > { %v2407_v34 = vsel %vm906_vm4, %v3556_v33, 0.0 }
 0xce1   : > { %2408 = vadd.xlane.f32.xlu0 %v2407_v34 }
 0xcf7   : > { %2252 = vrot.lane.b32.xlu0 %v3859_v30, %s3610_s29 }
 0xd6e   : > { %v2409_v41 = vpop.xlane.xlu0 %2408 }
 0xd6f   : > { %3557 = vrcp.f32 %v2409_v41 }
 0xd72   : > { %v2253_v42 = vpop.permute.xlu0 %2252 }
 0xd73   : > { %v2322_v43 = vadd.f32 %v2321_v35, %v2253_v42 }
 0xd75   : > { %3250 = vmatpush3.msk.msra.mxu0 %vm922_vm3, %v2322_v43 }
 0xd76   : > { %3377 = vmatprep.subr.bf16.mxu0 %v3605_v3 }
 0xd79   : > { %v3558_v44 = vpop.eup %3557 }
 0xd7a   : > { %v2411_v45 = vmul.f32 %v3558_v44, %v3556_v33  ;;  %v2954_v33 = vld [vmem:[%s4197_s12] ss:$0 sm:$0xff] }
 0xd7c   : > { %3252 = vmatmul.mubr.msk.f32.vlgmr.msra.gmra.mrb[24].mxu0 %vm918_vm5, %v2411_v45 }
 0xd7d   : > { %3267 = vmatprep.mubr.msk.f32.mxu0 %vm3606_vm0, %v3607_v6  ;;  %3379 = vmatpush3.bf16.msra.mxu0 %v3378_v55 }
 0xd7e   : > { %3380 = vmatprep.subr.bf16.mxu0 %v3605_v3 }
 0xe4f   : > { %v2484_v30 = vpop.f32.mrb[24].mxu0 }
 0xe50   : > { %v3253_v47 = vpop.f32.mrb[25].mxu0  ;;  %3257 = vmatmul.mubr.msk.f32.vlgmr.msra.gmra.mrb[20].mxu1 %vm829_vm2, %v2484_v30 }
 0xe51   : > { %3302 = vmatprep.mubr.msk.f32.mxu1 %vm3606_vm0, %v3607_v6  ;;  %3385 = vmatpush3.bf16.msra.mxu1 %v3384_v60 }
 0xe52   : > { %3386 = vmatprep.subr.bf16.mxu1 %v3605_v3 }
 0xe55   : > { %3388 = vmatpush3.bf16.msra.mxu1 %v3387_v12 }
 0xe56   : > { %3389 = vmatprep.subr.bf16.mxu1 %v3605_v3 }
 0xe59   : > { %3391 = vmatpush3.bf16.msra.mxu1 %v3390_v17 }
 0xe5a   : > { %3392 = vmatprep.subr.bf16.mxu1 %v3605_v3 }
 0xe5d   : > { %3394 = vmatpush3.bf16.msra.mxu1 %v3393_v5 }
 0xe5e   : > { %3395 = vmatprep.subr.bf16.mxu1 %v3605_v3 }
 0xe61   : > { %3397 = vmatpush3.bf16.msra.mxu1 %v3396_v20 }
 0xe62   : > { %3398 = vmatprep.subr.bf16.mxu1 %v3605_v3 }
 0xe65   : > { %3400 = vmatpush3.bf16.msra.mxu1 %v3399_v25 }
 0xe66   : > { %3401 = vmatprep.subr.bf16.mxu1 %v3605_v3 }
 0xe69   : > { %3403 = vmatpush3.bf16.msra.mxu1 %v3402_v28 }
 0xe6a   : > { %3404 = vmatprep.subr.bf16.mxu1 %v3605_v3 }
 0xe6d   : > { %3406 = vmatpush3.bf16.msra.mxu1 %v3405_v32 }
 0xf23   : > { %v2558_v48 = vpop.f32.mrb[20].mxu1 }
 0xf24   : > { %v2562_v50 = vadd.f32 %v2558_v48, %v2068_v8  ;;  %v3258_v37 = vpop.f32.mrb[21].mxu1 }
 0xf26   : > { %v2570_v51 = vadd.f32 %v2951_v49, %v2562_v50  ;;  %v2956_v49 = vld [vmem:[%s4199_s14] ss:$0 sm:$0xff] }
 0xf28   : > { %v2571_v52 = vadd.f32 %v2570_v51, %v3795_v13  ;;  %v2605_v13 = vld [vmem:[%s4196_s11 + $0x10] sm:$0xff] }
 0xf29   : > { %v3381_v57 = vpack.c.bf16 %v2606_v56, %v2605_v13  ;;  %v2957_v13 = vld [vmem:[%s4200_s15] ss:$0 sm:$0xff] }
 0xf2a   : > { %v2575_v38 = vsel %vm2574_vm6, %v2571_v52, 0.0 }
 0xf2b   : > { %2576 = vadd.xlane.f32.xlu1 %v2575_v38  ;;  %3382 = vmatpush3.bf16.msra.mxu0 %v3381_v57  ;;  %v2958_v57 = vld [vmem:[%s4201_s16] ss:$0 sm:$0xff] }
 0xfb8   : > { %v2577_v53 = vpop.xlane.xlu1 %2576 }
 0xfb9   : > { %v2579_v54 = vmul.f32 0.03125, %v2577_v53 }
 0xfbb   : > { %v2580_v24 = vsub.f32 %v2571_v52, %v2579_v54 }
 0xfbd   : > { %v2581_v39 = vmul.f32 %v2580_v24, %v2580_v24 }
 0xfbf   : > { %v2582_v6 = vsel %vm2574_vm6, %v2581_v39, 0.0 }
 0xfc0   : > { %2583 = vadd.xlane.f32.xlu1 %v2582_v6 }
0x104d   : > { %v2584_v61 = vpop.xlane.xlu1 %2583 }
0x104e   : > { %v2585_v62 = vmul.f32 0.03125, %v2584_v61 }
0x1050   : > { %v2586_v63 = vadd.f32 1e-05, %v2585_v62 }
0x1052   : > { %3559 = vrsqrt.f32 %v2586_v63 }
0x105c   : > { %v3560_v0 = vpop.eup %3559 }
0x105d   : > { %v2588_v2 = vmul.f32 %v3560_v0, %v2580_v24 }
0x105f   : > { %v2595_v8 = vmul.f32 %v2952_v1, %v2588_v2 }
0x1061   : > { %v2602_v9 = vadd.f32 %v2953_v7, %v2595_v8 }
0x1063   : > { %3268 = vmatmul.mubr.msk.f32.vlgmr.msra.gmra.mrb[26].mxu0 %vm592_vm1, %v2602_v9 }
0x1136   : > { %v2683_v34 = vpop.f32.mrb[26].mxu0 }
0x1137   : > { %v2684_v35 = vadd.f32 %v2954_v33, %v2683_v34  ;;  %v3269_v36 = vpop.f32.mrb[27].mxu0 }
0x1139   : > { %v2687_v40 = vmul.f32 %v2684_v35, %v2684_v35 }
0x113b   : > { %v2688_v41 = vmul.f32 %v2687_v40, %v2684_v35 }
0x113d   : > { %v2689_v42 = vmul.f32 0.044715, %v2688_v41 }
0x113f   : > { %v2690_v43 = vadd.f32 %v2689_v42, %v2684_v35 }
0x1141   : > { %v2691_v44 = vmul.f32 0.7978846, %v2690_v43 }
0x1143   : > { %3561 = vtanh.f32 %v2691_v44 }
0x114d   : > { %v3562_v45 = vpop.eup %3561 }
0x114e   : > { %v2693_v30 = vadd.f32 1.0, %v3562_v45 }
0x1150   : > { %v2694_v47 = vmul.f32 0.5, %v2693_v30 }
0x1152   : > { %v2695_v48 = vmul.f32 %v2694_v47, %v2684_v35 }
0x1154   : > { %3303 = vmatmul.mubr.f32.vlgmr.msra.gmra.mrb[22].mxu1 %v2695_v48 }
0x1227   : > { %v2778_v3 = vpop.f32.mrb[22].mxu1 }
0x1228   : > { %v2782_v50 = vadd.f32 %v2778_v3, %v2602_v9  ;;  %v3304_v37 = vpop.f32.mrb[23].mxu1 }
0x122a   : > { %v2790_v51 = vadd.f32 %v2956_v49, %v2782_v50 }
0x122c   : > { %v2793_v52 = vsel %vm2574_vm6, %v2790_v51, 0.0 }
0x122d   : > { %2794 = vadd.xlane.f32.xlu1 %v2793_v52 }
0x12ba   : > { %v2795_v38 = vpop.xlane.xlu1 %2794 }
0x12bb   : > { %v2796_v53 = vmul.f32 0.03125, %v2795_v38 }
0x12bd   : > { %v2797_v54 = vsub.f32 %v2790_v51, %v2796_v53 }
0x12bf   : > { %v2798_v24 = vmul.f32 %v2797_v54, %v2797_v54 }
0x12c1   : > { %v2799_v39 = vsel %vm2574_vm6, %v2798_v24, 0.0 }
0x12c2   : > { %2800 = vadd.xlane.f32.xlu1 %v2799_v39 }
0x134f   : > { %v2801_v6 = vpop.xlane.xlu1 %2800 }
0x1350   : > { %v2802_v46 = vmul.f32 0.03125, %v2801_v6 }
0x1352   : > { %v2803_v23 = vadd.f32 1e-05, %v2802_v46 }
0x1354   : > { %3563 = vrsqrt.f32 %v2803_v23 }
0x135e   : > { %v3564_v55 = vpop.eup %3563 }
0x135f   : > { %v2805_v56 = vmul.f32 %v3564_v55, %v2797_v54 }
0x1361   : > { %v2812_v58 = vmul.f32 %v2957_v13, %v2805_v56 }
0x1363   : > { %v2819_v59 = vadd.f32 %v2958_v57, %v2812_v58 }
0x1365   : > { %2820 = vst.msk [vmem:[%s579_s20] sm:$0x3f] %vm2574_vm6, %v2819_v59 }
0x1366 PF: > { %s27_s28 = sadd.s32 1, %s3603_s28   ;;  %s4213_s25 = sld [smem:[#allocation2_spill]] }
0x1367   : > { %p24_p7 = scmp.ge.s32.totalorder %s27_s28, 10   ;;  %s4214_s21 = sld [smem:[#allocation3_spill]] }
0x1368   : > { %s4215_s27 = sld [smem:[#allocation4_spill]]  ;;  %s4216_s24 = smov %s3595_s26 }
0x1369   :  { %26 = sbr.rel (!%p24_p7) target bundleno = 4 (0x4), region = 118 }
0x136d   : > { %s4217_s26 = smov %s4214_s21 }

// kernel: _lambda_.5
= control target key start
LH: loop header
LB: loop body
LE: loop exit
PB: predicated region body
PF: predicated region fallthrough
CT: control target
= control target key end

     0   :  { %s4437_s0 = inlined_call_operand.vmem [shape: f32[2,6,4,32], index: 0, kind: input, shape index: {}]   ;;  %s4438_s1 = inlined_call_operand.vmem [shape: f32[2,6,3,32], index: 1, kind: input, shape index: {}]   ;;  %s4439_s2 = inlined_call_operand.vmem [shape: f32[32,32], index: 2, kind: input, shape index: {}]   ;;  %s4440_s3 = inlined_call_operand.vmem [shape: f32[1,32], index: 3, kind: input, shape index: {}]   ;;  %s4441_s4 = inlined_call_operand.vmem [shape: f32[32,32], index: 4, kind: input, shape index: {}]   ;;  %s4442_s5 = inlined_call_operand.vmem [shape: f32[1,32], index: 5, kind: input, shape index: {}]   ;;  %s4443_s6 = inlined_call_operand.vmem [shape: f32[32,32], index: 6, kind: input, shape index: {}]   ;;  %s4444_s7 = inlined_call_operand.vmem [shape: f32[1,32], index: 7, kind: input, shape index: {}]   ;;  %s4445_s8 = inlined_call_operand.vmem [shape: f32[32,32], index: 8, kind: input, shape index: {}]   ;;  %s4446_s9 = inlined_call_operand.vmem [shape: f32[1,32], index: 9, kind: input, shape index: {}]   ;;  %s4447_s10 = inlined_call_operand.vmem [shape: f32[1,32], index: 10, kind: input, shape index: {}]   ;;  %s4448_s11 = inlined_call_operand.vmem [shape: f32[1,32], index: 11, kind: input, shape index: {}]   ;;  %s4449_s12 = inlined_call_operand.vmem [shape: f32[32,128], index: 12, kind: input, shape index: {}]   ;;  %s4450_s13 = inlined_call_operand.vmem [shape: f32[1,128], index: 13, kind: input, shape index: {}]   ;;  %s4451_s14 = inlined_call_operand.vmem [shape: f32[128,32], index: 14, kind: input, shape index: {}]   ;;  %s4452_s15 = inlined_call_operand.vmem [shape: f32[1,32], index: 15, kind: input, shape index: {}]   ;;  %s4453_s16 = inlined_call_operand.vmem [shape: f32[1,32], index: 16, kind: input, shape index: {}]   ;;  %s4454_s17 = inlined_call_operand.vmem [shape: f32[1,32], index: 17, kind: input, shape index: {}]   ;;  %s4455_s18 = inlined_call_operand.hbm [shape: f32[2,6,4,32], index: 18, kind: output, shape index: {}]  }
   0x1   :  { %4468 = sst [smem:[#allocation14_spill]] %s4437_s0 }
   0x2   :  { %4469 = sst [smem:[#allocation15_spill]] %s4438_s1 }
   0x3   :  { %4470 = sst [smem:[#allocation16_spill]] %s4439_s2 }
   0x4   :  { %4471 = sst [smem:[#allocation17_spill]] %s4440_s3 }
   0x5   :  { %4472 = sst [smem:[#allocation18_spill]] %s4441_s4 }
   0x6   :  { %4473 = sst [smem:[#allocation19_spill]] %s4453_s16 }
   0x7   :  { %4474 = sst [smem:[#allocation20_spill]] %s4454_s17 }
   0x8   :  { %4475 = sst [smem:[#allocation21_spill]] %s4455_s18 }
   0x9   :  { %23 = vsyncpa [#allocation3], 0 }
   0xa   :  { %25 = vsyncpa [#allocation3 + $0x1], 0  ;;  %s3877_s27 = smov 0   ;;  %s3879_s28 = smov 0  }
   0xb   :  { %s3881_s29 = smov 0   ;;  %s3883_s30 = smov 0  }
   0xc   :  { %s3885_s0 = smov 0   ;;  %s3887_s19 = smov 0  }
   0xd   :  { %s3889_s1 = smov 0   ;;  %s3891_s20 = smov 0  }
   0xe LB: > { %4476 = sst [smem:[#allocation5_spill]] %s3745_s27  ;;  %s2987_s21 = sadd.s32 4294967295, %s3773_s20   ;;  %s3773_s20 = sphi %s3891_s20, %s31_s20   ;;  %s3769_s1 = sphi %s3889_s1, %s4503_s1   ;;  %s3765_s19 = sphi %s3887_s19, %s4502_s19   ;;  %s3761_s0 = sphi %s3885_s0, %s4501_s0   ;;  %s3757_s30 = sphi %s3883_s30, %s4500_s30   ;;  %s3753_s29 = sphi %s3881_s29, %s4499_s29   ;;  %s3749_s28 = sphi %s3879_s28, %s4505_s28   ;;  %s3745_s27 = sphi %s3877_s27, %s4504_s27  }
   0xf   : > { %4477 = sst [smem:[#allocation6_spill]] %s3753_s29  ;;  %s2988_s22 = sadd.s32 4294967294, %s3773_s20  }
  0x10   : > { %4478 = sst [smem:[#allocation7_spill]] %s3765_s19  ;;  %s40_s2 = sadd.s32 1, %s3765_s19 }
  0x11   : > { %4479 = sst [smem:[#allocation8_spill]] %s3769_s1  ;;  %p41_p0 = scmp.ge.s32.totalorder %s40_s2, 6 }
  0x12   : > { %s43_s23 = sadd.s32 1, %s3769_s1  ;;  %p454_p1 = scmp.ne.s32.totalorder %s3753_s29, %s3749_s28 }
  0x13   : > { %p455_p2 = scmp.eq.s32.totalorder %s2987_s21, 11  ;;  %s4507_s2 = smov (%p41_p0, %s40_s2), 0 }
  0x14   : > { %4480 = sst [smem:[#allocation9_spill]] %s4507_s2  ;;  %s4509_s23 = smov (!%p41_p0, %s43_s23), %s3769_s1 }
  0x15   : > { %s440_s24 = ssub.s32 %s3765_s19, %s4507_s2  ;;  %p3928_p3 = por %p455_p2, %p454_p1 }
  0x16   : > { %p45_p4 = scmp.ge.s32.totalorder %s4509_s23, 2  ;;  %p460_p5 = scmp.ne.s32.totalorder %s3749_s28, %s3745_s27 }
  0x17   : > { %s4481_s25 = scalar_select %p3928_p3, 1, 0 }
  0x18   : > { %p461_p6 = scmp.eq.s32.totalorder %s2988_s22, 11  ;;  %p2991_p7 = scmp.ge.s32.totalorder %s3773_s20, 1 }
  0x19   : > { %4482 = sst [smem:[#allocation10_spill]] %s4481_s25  ;;  %s4511_s23 = smov (%p45_p4, %s4509_s23), 0 }
  0x1a   : > { %4483 = sst [smem:[#allocation11_spill]] %s4511_s23  ;;  %p3937_p8 = por %p461_p6, %p460_p5 }
  0x1b   : > { %p549_p9 = scmp.lt.s32.totalorder %s3773_s20, 13  ;;  %s439_s21 = ssub.s32 %s3769_s1, %s4511_s23 }
  0x1c   : > { %s4484_s26 = scalar_select %p3937_p8, 1, 0 }
  0x1d   : > { %s444_s18 = sadd.s32 1, %s3753_s29  ;;  %s441_s17 = sor.u32 %s440_s24, %s439_s21 }
  0x1e   : > { %4485 = sst [smem:[#allocation12_spill]] %s4484_s26  ;;  %p550_p10 = pnand %p2991_p7, %p549_p9 }
  0x1f   : > { %p442_p11 = scmp.eq.s32.totalorder %s441_s17, 0  ;;  %s4487_s22 = sld [smem:[#allocation16_spill]] (!%p550_p10)  ;;  %v3775_v3 = vmov (!%p550_p10), 0.0|0.0   ;;  %vm3776_vm0 = vmmov (!%p550_p10), 0   ;;  %v3777_v6 = vmov (!%p550_p10), 0.0   ;;  %vm643_vm1 = vcmask (!%p550_p10), 261120  }
  0x20   : > { %553 = sbr.rel (%p550_p10) target bundleno = 5001 (0x1389), region = 92  ;;  %3386 = vmatprep.subr.bf16.mxu0 (!%p550_p10), %v3775_v3  ;;  %3156 = vmatprep.mubr.msk.f32.mxu0 (!%p550_p10), %vm3776_vm0, %v3777_v6  ;;  %p614_p12 = scmp.lt.s32.totalorder (!%p550_p10), %s3761_s0, 1  ;;  %v4018_v15 = vld [vmem:[%s4443_s6] sm:$0xff] (!%p550_p10)  ;;  %v4023_v16 = vld [vmem:[%s4443_s6 + $0x8] sm:$0xff] (!%p550_p10)  ;;  %v4038_v19 = vld [vmem:[%s4443_s6 + $0x10] sm:$0xff] (!%p550_p10)  ;;  %vm883_vm2 = vcmask (!%p550_p10), 64512  }
  0x21   : > { %s3946_s2 = scalar_select %p442_p11, %s3753_s29, %s444_s18  }
  0x22   : > { %p616_p13 = scmp.lt.s32.totalorder (!%p550_p10), %s3757_s30, 5  ;;  %3186 = vmatprep.subr.mxu1 (!%p550_p10), %v3777_v6  ;;  %3188 = vmatprep.mubr.msk.f32.mxu1 (!%p550_p10), %vm3776_vm0, %v3777_v6  ;;  %s4488_s4 = sld [smem:[#allocation18_spill]] (!%p550_p10)  ;;  %v3399_v18 = vpack.c.bf16 (!%p550_p10), %v4023_v16, %v4018_v15  ;;  %v4043_v20 = vld [vmem:[%s4443_s6 + $0x18] sm:$0xff] (!%p550_p10)  ;;  %v4060_v25 = vld [vmem:[%s4442_s5] ss:$0 sm:$0xff] (!%p550_p10)  ;;  %vm976_vm3 = vcmask (!%p550_p10), 1042432  }
  0x23   : > { %4486 = sst [smem:[#allocation13_spill]] %s3946_s2  ;;  %s4489_s2 = sld [smem:[#allocation14_spill]] (!%p550_p10)  ;;  %v3402_v21 = vpack.c.bf16 (!%p550_p10), %v4043_v20, %v4038_v19  ;;  %v4072_v31 = vld [vmem:[%s4444_s7] ss:$0 sm:$0xff] (!%p550_p10)  ;;  %vm960_vm4 = vcmask (!%p550_p10), 19456   ;;  %vm972_vm5 = vcmask (!%p550_p10), 23552  }
  0x24   : > { %s4490_s26 = sld [smem:[#allocation15_spill]] (!%p550_p10)  ;;  %s4491_s3 = sld [smem:[#allocation17_spill]] (!%p550_p10)  ;;  %vm2628_vm6 = vcmask (!%p550_p10), 257024  }
  0x25   : > { %v3951_v0 = vld [vmem:[%s4487_s22] sm:$0xff] (!%p550_p10)  ;;  %v3956_v1 = vld [vmem:[%s4487_s22 + $0x8] sm:$0xff] (!%p550_p10)  ;;  %v3961_v2 = vld [vmem:[%s4487_s22 + $0x10] sm:$0xff] (!%p550_p10)  ;;  %s3779_s21 = smov (!%p550_p10), 112   ;;  %s3780_s23 = smov (!%p550_p10), 104  }
  0x26   : > { %v3387_v4 = vpack.c.bf16 (!%p550_p10), %v3956_v1, %v3951_v0  ;;  %v3969_v5 = vld [vmem:[%s4487_s22 + $0x18] sm:$0xff] (!%p550_p10)  ;;  %v4084_v39 = vpack.i.bf16 (!%p550_p10), %v3956_v1, %v3951_v0 }
  0x27   : > { %v3390_v7 = vpack.c.bf16 %v3969_v5, %v3961_v2  ;;  %s615_s16 = scalar_select %p614_p12, %s3761_s0, 1  ;;  %v4090_v40 = vpack.i.bf16 %v3969_v5, %v3961_v2  ;;  %v4122_v5 = vpack.i.bf16 %v4023_v16, %v4018_v15 }
  0x28   : > { %3388 = vmatpush3.bf16.msra.mxu0 %v3387_v4  ;;  %s617_s27 = scalar_select %p616_p13, %s3757_s30, 5  ;;  %v718_v8 = vld [vmem:[%s4488_s4] sm:$0xff]  ;;  %v719_v9 = vld [vmem:[%s4488_s4 + $0x8] sm:$0xff]  ;;  %v3996_v11 = vld [vmem:[%s4488_s4 + $0x10] sm:$0xff] }
  0x29   : > { %3389 = vmatprep.subr.bf16.mxu0 %v3775_v3  ;;  %s3488_s19 = smul.u32 6, %s615_s16  ;;  %v3393_v10 = vpack.c.bf16 %v719_v9, %v718_v8  ;;  %v4001_v12 = vld [vmem:[%s4488_s4 + $0x18] sm:$0xff]  ;;  %v4078_v38 = vpack.i.bf16 %v719_v9, %v718_v8  ;;  %s4495_s4 = sld [smem:[#allocation21_spill]] }
  0x2a   : > { %v3396_v14 = vpack.c.bf16 %v4001_v12, %v3996_v11  ;;  %v4055_v24 = vld [vmem:[%s4491_s3] ss:$0 sm:$0xff]  ;;  %v4101_v47 = vpack.i.bf16 %v4001_v12, %v3996_v11 }
  0x2b   : > { %s619_s17 = sadd.s32 %s3488_s19, %s617_s27  ;;  %s3778_s27 = smov 120  }
  0x2c   : > { %3391 = vmatpush3.bf16.msra.mxu0 %v3390_v7  ;;  %s2993_s18 = sshll.u32 %s619_s17, 2  ;;  %3568 = vrot.lane.b32.xlu1 %v4078_v38, %s3778_s27  ;;  %v4128_v7 = vpack.i.bf16 %v4043_v20, %v4038_v19  ;;  %s611_s17 = sand.u32 1, %s3749_s28  }
  0x2d   : > { %3392 = vmatprep.subr.bf16.mxu0 %v3775_v3  ;;  %s621_s29 = scalar_lea.vmem %s4489_s2, %s2993_s18  ;;  %s629_s22 = scalar_lea.vmem %s4490_s26, %s2993_s18 }
  0x2e   : > { %v4003_v13 = vld [vmem:[%s621_s29] sm:$0xf]  ;;  %s3489_s18 = smul.u32 6, %s3761_s0  ;;  %s2992_s16 = sshll.u32 %s611_s17, 2 }
  0x2f   : > { %3157 = vmatmul.mubr.msk.f32.vlgmr.msra.gmra.mrb[0].mxu0 %vm643_vm1, %v4003_v13  ;;  %v4025_v17 = vld [vmem:[%s629_s22] sm:$0x7]  ;;  %s4493_s26 = sld [smem:[#allocation19_spill]]  ;;  %s4494_s19 = sld [smem:[#allocation20_spill]] }
  0x30   : > { %3394 = vmatpush3.bf16.msra.mxu0 %v3393_v10  ;;  %3167 = vmatprep.mubr.msk.f32.mxu0 %vm3776_vm0, %v3777_v6 }
  0x31   : > { %3395 = vmatprep.subr.bf16.mxu0 %v3775_v3  ;;  %3573 = vrot.lane.b32.xlu1 %v4084_v39, %s3778_s27 }
  0x34   : > { %3397 = vmatpush3.bf16.msra.mxu0 %v3396_v14 }
  0x35   : > { %3398 = vmatprep.subr.bf16.mxu0 %v3775_v3  ;;  %3583 = vrot.lane.b32.xlu1 %v4090_v40, %s3778_s27 }
  0x37   : > { %3168 = vmatmul.mubr.msk.f32.vlgmr.msra.gmra.mrb[2].mxu0 %vm643_vm1, %v4025_v17 }
  0x38   : > { %3400 = vmatpush3.bf16.msra.mxu0 %v3399_v18  ;;  %3178 = vmatprep.mubr.msk.f32.mxu0 %vm3776_vm0, %v3777_v6 }
  0x39   : > { %3401 = vmatprep.subr.bf16.mxu0 %v3775_v3  ;;  %1157 = vrot.lane.b32.xlu1 %v4060_v25, %s3778_s27 }
  0x3c   : > { %3403 = vmatpush3.bf16.msra.mxu0 %v3402_v21 }
  0x3d   : > { %3181 = vmatprep.subr.mxu0 %v3777_v6  ;;  %1067 = vrot.lane.b32.xlu1 %v4055_v24, %s3778_s27 }
  0x3f   : > { %3179 = vmatmul.mubr.msk.f32.vlgmr.msra.gmra.mrb[4].mxu0 %vm643_vm1, %v4025_v17 }
  0x40   : > { %3183 = vmatprep.mubr.msk.f32.mxu0 %vm3776_vm0, %v3777_v6 }
  0x41   : > { %3588 = vrot.lane.b32.xlu1 %v4122_v5, %s3778_s27 }
  0x45   : > { %3593 = vrot.lane.b32.xlu1 %v4128_v7, %s3778_s27 }
  0x9e   : > { %v3569_v46 = vpop.permute.xlu1 %3568 }
  0x9f   : > { %v3571_v58 = vunpack.i.h.bf16 %v3569_v46  ;;  %v3570_v59 = vunpack.i.l.bf16 %v3569_v46 }
  0xa1   : > { %v3411_v0 = vpack.c.bf16 %v3571_v58, %v3570_v59 }
  0xa3   : > { %v3574_v48 = vpop.permute.xlu1 %3573 }
  0xa4   : > { %v3576_v49 = vunpack.i.h.bf16 %v3574_v48  ;;  %v3575_v50 = vunpack.i.l.bf16 %v3574_v48 }
  0xa6   : > { %v3405_v51 = vpack.c.bf16 %v3576_v49, %v3575_v50 }
  0xa7   : > { %v3584_v52 = vpop.permute.xlu1 %3583 }
  0xa8   : > { %v3586_v53 = vunpack.i.h.bf16 %v3584_v52  ;;  %v3585_v54 = vunpack.i.l.bf16 %v3584_v52 }
  0xaa   : > { %v3408_v55 = vpack.c.bf16 %v3586_v53, %v3585_v54  ;;  %v1050_v53 = vld [vmem:[%s4445_s8] sm:$0xff] }
  0xab   : > { %v1158_v8 = vpop.permute.xlu1 %1157 }
  0xaf   : > { %v1068_v11 = vpop.permute.xlu1 %1067 }
  0xb3   : > { %v3589_v19 = vpop.permute.xlu1 %3588 }
  0xb4   : > { %v3591_v20 = vunpack.i.h.bf16 %v3589_v19  ;;  %v3590_v21 = vunpack.i.l.bf16 %v3589_v19 }
 0x102   : > { %v713_v22 = vpop.f32.mrb[0].mxu0 }
 0x103   : > { %v3158_v23 = vpop.f32.mrb[1].mxu0  ;;  %v714_v26 = vadd.f32 %v4055_v24, %v713_v22  ;;  %v3417_v22 = vpack.c.bf16 %v3591_v20, %v3590_v21 }
 0x104   : > { %v3594_v23 = vpop.permute.xlu1 %3593 }
 0x105   : > { %v717_v30 = vmul.f32 0.35355338, %v714_v26  ;;  %v3596_v26 = vunpack.i.h.bf16 %v3594_v23 }
 0x10a   : > { %v798_v27 = vpop.f32.mrb[2].mxu0 }
 0x10b   : > { %v799_v28 = vadd.f32 %v4060_v25, %v798_v27  ;;  %v3169_v29 = vpop.f32.mrb[3].mxu0  ;;  %v3595_v27 = vunpack.i.l.bf16 %v3594_v23 }
 0x10d   : > { %3182 = vmatpush3.xpose.msk.msra.mxu0 %vm883_vm2, %v799_v28  ;;  %v3420_v28 = vpack.c.bf16 %v3596_v26, %v3595_v27 }
 0x10e   : > { %3404 = vmatprep.subr.bf16.mxu0 %v3775_v3 }
 0x110   : > { %3184 = vmatmul.mubr.msk.f32.vlgmr.msra.gmra.mrb[6].mxu0 %vm883_vm2, %v717_v30 }
 0x111   : > { %3199 = vmatprep.mubr.msk.f32.mxu0 %vm3776_vm0, %v3777_v6  ;;  %3406 = vmatpush3.bf16.msra.mxu0 %v3405_v51 }
 0x112   : > { %v879_v32 = vpop.f32.mrb[4].mxu0  ;;  %3407 = vmatprep.subr.bf16.mxu0 %v3775_v3 }
 0x113   : > { %v880_v33 = vadd.f32 %v4072_v31, %v879_v32  ;;  %v3180_v34 = vpop.f32.mrb[5].mxu0 }
 0x115   : > { %3187 = vmatpush3.msk.msra.mxu1 %vm976_vm3, %v880_v33  ;;  %3409 = vmatpush3.bf16.msra.mxu0 %v3408_v55 }
 0x116   : > { %3410 = vmatprep.subr.bf16.mxu1 %v3775_v3  ;;  %3416 = vmatprep.subr.bf16.mxu0 %v3775_v3 }
 0x118   : > { %3200 = vmatmul.mubr.msk.f32.vlgmr.msra.gmra.mrb[8].mxu0 %vm643_vm1, %v4003_v13 }
 0x119   : > { %3221 = vmatprep.mubr.msk.f32.mxu0 %vm3776_vm0, %v3777_v6  ;;  %3418 = vmatpush3.bf16.msra.mxu0 %v3417_v22 }
 0x11a   : > { %3419 = vmatprep.subr.bf16.mxu0 %v3775_v3 }
 0x11d   : > { %3421 = vmatpush3.bf16.msra.mxu0 %v3420_v28 }
 0x11e   : > { %3234 = vmatprep.subr.mxu0 %v3777_v6 }
 0x120   : > { %3222 = vmatmul.mubr.msk.f32.vlgmr.msra.gmra.mrb[10].mxu0 %vm643_vm1, %v4025_v17 }
 0x121   : > { %3236 = vmatprep.mubr.msk.f32.mxu0 %vm3776_vm0, %v3777_v6 }
 0x1e3   : > { %v956_v35 = vpop.f32.mrb[6].mxu0 }
 0x1e4   : > { %v3185_v36 = vpop.f32.mrb[7].mxu0  ;;  %v961_v37 = vsel %vm960_vm4, %v956_v35, -inf }
 0x1e5   : > { %962 = vmax.xlane.f32.xlu0 %v961_v37 }
 0x1eb   : > { %v1136_v2 = vpop.f32.mrb[8].mxu0 }
 0x1ec   : > { %v3201_v4 = vpop.f32.mrb[9].mxu0  ;;  %v1137_v12 = vadd.f32 %v1136_v2, %v1068_v11 }
 0x1ee   : > { %v1140_v16 = vmul.f32 0.35355338, %v1137_v12 }
 0x272   : > { %v963_v41 = vpop.xlane.xlu0 %962 }
 0x273   : > { %v964_v42 = vsub.f32 %v956_v35, %v963_v41  ;;  %v1315_v41 = vpop.f32.mrb[10].mxu0 }
 0x275   : > { %v965_v43 = vmul.f32 1.442695, %v964_v42  ;;  %v3223_v42 = vpop.f32.mrb[11].mxu0 }
 0x277   : > { %3657 = vpow2.f32 %v965_v43  ;;  %v1482_v43 = vld [vmem:[%s4445_s8 + $0x8] sm:$0xff] }
 0x278   : > { %3235 = vmatpush3.msra.mxu0 %v1482_v43 }
 0x279   : > { %3422 = vmatprep.subr.bf16.mxu0 %v3775_v3 }
 0x281   : > { %v3658_v44 = vpop.eup %3657 }
 0x282   : > { %v967_v45 = vsel %vm960_vm4, %v3658_v44, 0.0 }
 0x283   : > { %968 = vadd.xlane.f32.xlu0 %v967_v45 }
 0x299   : > { %3578 = vrot.lane.b32.xlu0 %v4101_v47, %s3778_s27 }
 0x310   : > { %v969_v56 = vpop.xlane.xlu0 %968 }
 0x311   : > { %3659 = vrcp.f32 %v969_v56 }
 0x314   : > { %v3579_v57 = vpop.permute.xlu0 %3578 }
 0x315   : > { %v3581_v61 = vunpack.i.h.bf16 %v3579_v57  ;;  %v3580_v62 = vunpack.i.l.bf16 %v3579_v57 }
 0x317   : > { %v3414_v1 = vpack.c.bf16 %v3581_v61, %v3580_v62 }
 0x31b   : > { %v3660_v60 = vpop.eup %3659 }
 0x31c   : > { %v971_v63 = vmul.f32 %v3660_v60, %v3658_v44 }
 0x31e   : > { %3189 = vmatmul.mubr.msk.f32.vlgmr.msra.gmra.mrb[0].mxu1 %vm972_vm5, %v971_v63 }
 0x31f   : > { %3412 = vmatpush3.bf16.msra.mxu1 %v3411_v0  ;;  %3210 = vmatprep.mubr.msk.f32.mxu1 %vm3776_vm0, %v3777_v6 }
 0x320   : > { %3413 = vmatprep.subr.bf16.mxu1 %v3775_v3 }
 0x323   : > { %3415 = vmatpush3.bf16.msra.mxu1 %v3414_v1 }
 0x324   : > { %3224 = vmatprep.subr.mxu1 %v3777_v6 }
 0x326   : > { %3211 = vmatmul.mubr.msk.f32.vlgmr.msra.gmra.mrb[2].mxu1 %vm643_vm1, %v4025_v17 }
 0x327   : > { %3226 = vmatprep.mubr.msk.f32.mxu1 %vm3776_vm0, %v3777_v6 }
 0x3f1   : > { %v4132_v9 = vpop.f32.mrb[0].mxu1 }
 0x3f2   : > { %v3190_v10 = vpop.f32.mrb[1].mxu1 }
 0x3f9   : > { %v1226_v14 = vpop.f32.mrb[2].mxu1 }
 0x3fa   : > { %v1227_v18 = vadd.f32 %v1226_v14, %v1158_v8  ;;  %v3212_v15 = vpop.f32.mrb[3].mxu1 }
 0x3fc   : > { %3225 = vmatpush3.xpose.msk.msra.mxu1 %vm883_vm2, %v1227_v18 }
 0x3fd   : > { %3229 = vmatprep.subr.mxu1 %v3777_v6 }
 0x3ff   : > { %3227 = vmatmul.mubr.msk.f32.vlgmr.msra.gmra.mrb[4].mxu1 %vm883_vm2, %v1140_v16 }
 0x400   : > { %3231 = vmatprep.mubr.msk.f32.mxu1 %vm3776_vm0, %v3777_v6 }
 0x4d2   : > { %v1391_v29 = vpop.f32.mrb[4].mxu1 }
 0x4d3   : > { %v3228_v30 = vpop.f32.mrb[5].mxu1  ;;  %v1395_v32 = vsel %vm960_vm4, %v1391_v29, -inf }
 0x4d4   : > { %1396 = vmax.xlane.f32.xlu1 %v1395_v32 }
 0x4e5   : > { %3598 = vrot.lane.b32.xlu1 %v4078_v38, %s3779_s21 }
 0x4e9   : > { %3603 = vrot.lane.b32.xlu1 %v4084_v39, %s3779_s21 }
 0x4ed   : > { %3613 = vrot.lane.b32.xlu1 %v4090_v40, %s3779_s21 }
 0x4f1   : > { %1641 = vrot.lane.b32.xlu1 %v4055_v24, %s3779_s21 }
 0x4f5   : > { %3623 = vrot.lane.b32.xlu1 %v4128_v7, %s3779_s21 }
 0x561   : > { %v1397_v33 = vpop.xlane.xlu1 %1396 }
 0x562   : > { %v1398_v34 = vsub.f32 %v1391_v29, %v1397_v33 }
 0x564   : > { %v1399_v35 = vmul.f32 1.442695, %v1398_v34 }
 0x565   : > { %v3599_v48 = vpop.permute.xlu1 %3598 }
 0x566   : > { %3661 = vpow2.f32 %v1399_v35  ;;  %v3601_v50 = vunpack.i.h.bf16 %v3599_v48  ;;  %v3600_v51 = vunpack.i.l.bf16 %v3599_v48 }
 0x568   : > { %v3429_v55 = vpack.c.bf16 %v3601_v50, %v3600_v51 }
 0x569   : > { %v3604_v59 = vpop.permute.xlu1 %3603 }
 0x56a   : > { %v3606_v60 = vunpack.i.h.bf16 %v3604_v59  ;;  %v3605_v61 = vunpack.i.l.bf16 %v3604_v59 }
 0x56c   : > { %v3423_v63 = vpack.c.bf16 %v3606_v60, %v3605_v61 }
 0x56d   : > { %v3614_v62 = vpop.permute.xlu1 %3613 }
 0x56e   : > { %v3616_v0 = vunpack.i.h.bf16 %v3614_v62  ;;  %v3615_v1 = vunpack.i.l.bf16 %v3614_v62 }
 0x570   : > { %v3662_v36 = vpop.eup %3661  ;;  %v3426_v8 = vpack.c.bf16 %v3616_v0, %v3615_v1 }
 0x571   : > { %v1401_v37 = vsel %vm960_vm4, %v3662_v36, 0.0  ;;  %v1642_v20 = vpop.permute.xlu1 %1641 }
 0x572   : > { %1402 = vadd.xlane.f32.xlu0 %v1401_v37 }
 0x575   : > { %v3624_v28 = vpop.permute.xlu1 %3623 }
 0x576   : > { %v3626_v32 = vunpack.i.h.bf16 %v3624_v28  ;;  %v3625_v33 = vunpack.i.l.bf16 %v3624_v28 }
 0x578   : > { %v3438_v35 = vpack.c.bf16 %v3626_v32, %v3625_v33 }
 0x588   : > { %1246 = vrot.lane.b32.xlu0 %v4072_v31, %s3778_s27 }
 0x58c   : > { %3608 = vrot.lane.b32.xlu0 %v4101_v47, %s3779_s21 }
 0x590   : > { %1727 = vrot.lane.b32.xlu0 %v4060_v25, %s3779_s21 }
 0x594   : > { %3618 = vrot.lane.b32.xlu0 %v4122_v5, %s3779_s21 }
 0x5ff   : > { %v1403_v44 = vpop.xlane.xlu0 %1402 }
 0x600   : > { %3663 = vrcp.f32 %v1403_v44 }
 0x603   : > { %v1247_v45 = vpop.permute.xlu0 %1246 }
 0x604   : > { %v1316_v46 = vadd.f32 %v1315_v41, %v1247_v45 }
 0x606   : > { %3230 = vmatpush3.msk.msra.mxu1 %vm976_vm3, %v1316_v46 }
 0x607   : > { %3239 = vmatprep.subr.mxu1 %v3777_v6  ;;  %v3609_v54 = vpop.permute.xlu0 %3608 }
 0x608   : > { %v3611_v56 = vunpack.i.h.bf16 %v3609_v54  ;;  %v3610_v57 = vunpack.i.l.bf16 %v3609_v54 }
 0x60a   : > { %v3664_v49 = vpop.eup %3663  ;;  %v3432_v58 = vpack.c.bf16 %v3611_v56, %v3610_v57 }
 0x60b   : > { %v1405_v52 = vmul.f32 %v3664_v49, %v3662_v36  ;;  %v1728_v12 = vpop.permute.xlu0 %1727 }
 0x60d   : > { %3232 = vmatmul.mubr.msk.f32.vlgmr.msra.gmra.mrb[6].mxu1 %vm972_vm5, %v1405_v52  ;;  %v2048_v52 = vld [vmem:[%s4445_s8 + $0x10] sm:$0xff] }
 0x60e   : > { %3240 = vmatpush3.msra.mxu1 %v1050_v53  ;;  %3241 = vmatprep.mubr.msk.f32.mxu1 %vm3776_vm0, %v3777_v6 }
 0x60f   : > { %3428 = vmatprep.subr.bf16.mxu1 %v3775_v3  ;;  %v3619_v27 = vpop.permute.xlu0 %3618 }
 0x610   : > { %v3621_v29 = vunpack.i.h.bf16 %v3619_v27  ;;  %v3620_v30 = vunpack.i.l.bf16 %v3619_v27 }
 0x611   : > { %3242 = vmatmul.mubr.msk.f32.vlgmr.msra.gmra.mrb[8].mxu1 %vm883_vm2, %v4132_v9 }
 0x612   : > { %3430 = vmatpush3.bf16.msra.mxu1 %v3429_v55  ;;  %3263 = vmatprep.mubr.msk.f32.mxu1 %vm3776_vm0, %v3777_v6  ;;  %v3435_v34 = vpack.c.bf16 %v3621_v29, %v3620_v30 }
 0x613   : > { %3431 = vmatprep.subr.bf16.mxu1 %v3775_v3 }
 0x616   : > { %3433 = vmatpush3.bf16.msra.mxu1 %v3432_v58 }
 0x617   : > { %3277 = vmatprep.subr.mxu1 %v3777_v6 }
 0x619   : > { %3264 = vmatmul.mubr.msk.f32.vlgmr.msra.gmra.mrb[10].mxu1 %vm643_vm1, %v4025_v17 }
 0x61a   : > { %3279 = vmatprep.mubr.msk.f32.mxu1 %vm3776_vm0, %v3777_v6 }
 0x6e0   : > { %v1478_v2 = vpop.f32.mrb[6].mxu1 }
 0x6e1   : > { %v3233_v4 = vpop.f32.mrb[7].mxu1  ;;  %3237 = vmatmul.mubr.msk.f32.vlgmr.msra.gmra.mrb[12].mxu0 %vm883_vm2, %v1478_v2 }
 0x6e2   : > { %3424 = vmatpush3.bf16.msra.mxu0 %v3423_v63  ;;  %3252 = vmatprep.mubr.msk.f32.mxu0 %vm3776_vm0, %v3777_v6 }
 0x6e3   : > { %3425 = vmatprep.subr.bf16.mxu0 %v3775_v3 }
 0x6e4   : > { %v1625_v9 = vpop.f32.mrb[8].mxu1 }
 0x6e5   : > { %v3243_v10 = vpop.f32.mrb[9].mxu1 }
 0x6e6   : > { %3427 = vmatpush3.bf16.msra.mxu0 %v3426_v8 }
 0x6e7   : > { %3434 = vmatprep.subr.bf16.mxu0 %v3775_v3 }
 0x6e9   : > { %3253 = vmatmul.mubr.msk.f32.vlgmr.msra.gmra.mrb[14].mxu0 %vm643_vm1, %v4003_v13 }
 0x6ea   : > { %3274 = vmatprep.mubr.msk.f32.mxu0 %vm3776_vm0, %v3777_v6  ;;  %3436 = vmatpush3.bf16.msra.mxu0 %v3435_v34 }
 0x6eb   : > { %3437 = vmatprep.subr.bf16.mxu0 %v3775_v3 }
 0x6ec   : > { %v1796_v11 = vpop.f32.mrb[10].mxu1 }
 0x6ed   : > { %v1797_v14 = vadd.f32 %v1796_v11, %v1728_v12  ;;  %v3265_v18 = vpop.f32.mrb[11].mxu1 }
 0x6ee   : > { %3439 = vmatpush3.bf16.msra.mxu0 %v3438_v35 }
 0x6ef   : > { %3278 = vmatpush3.xpose.msk.msra.mxu1 %vm883_vm2, %v1797_v14  ;;  %3287 = vmatprep.subr.mxu0 %v3777_v6 }
 0x6f0   : > { %3282 = vmatprep.subr.mxu1 %v3777_v6 }
 0x6f1   : > { %3275 = vmatmul.mubr.msk.f32.vlgmr.msra.gmra.mrb[16].mxu0 %vm643_vm1, %v4025_v17 }
 0x6f2   : > { %3289 = vmatprep.mubr.msk.f32.mxu0 %vm3776_vm0, %v3777_v6  ;;  %3288 = vmatpush3.msra.mxu0 %v2048_v52  ;;  %v3030_v52 = vld [vmem:[%s4446_s9] ss:$0 sm:$0xff] }
 0x6f3   : > { %3446 = vmatprep.subr.bf16.mxu0 %v3775_v3 }
 0x7b4   : > { %v1552_v15 = vpop.f32.mrb[12].mxu0 }
 0x7b5   : > { %v4199_v16 = vadd.f32 %v1625_v9, %v1552_v15  ;;  %v3238_v19 = vpop.f32.mrb[13].mxu0 }
 0x7bc   : > { %v1710_v21 = vpop.f32.mrb[14].mxu0 }
 0x7bd   : > { %v1711_v22 = vadd.f32 %v1710_v21, %v1642_v20  ;;  %v3254_v23 = vpop.f32.mrb[15].mxu0 }
 0x7bf   : > { %v1714_v26 = vmul.f32 0.35355338, %v1711_v22 }
 0x7c1   : > { %3280 = vmatmul.mubr.msk.f32.vlgmr.msra.gmra.mrb[12].mxu1 %vm883_vm2, %v1714_v26 }
 0x7c2   : > { %3284 = vmatprep.mubr.msk.f32.mxu1 %vm3776_vm0, %v3777_v6 }
 0x7c4   : > { %v1881_v48 = vpop.f32.mrb[16].mxu0 }
 0x7c5   : > { %v3276_v50 = vpop.f32.mrb[17].mxu0 }
 0x894   : > { %v1957_v36 = vpop.f32.mrb[12].mxu1 }
 0x895   : > { %v3281_v37 = vpop.f32.mrb[13].mxu1  ;;  %v1961_v41 = vsel %vm960_vm4, %v1957_v36, -inf }
 0x896   : > { %1962 = vmax.xlane.f32.xlu0 %v1961_v41 }
 0x8ac   : > { %1812 = vrot.lane.b32.xlu0 %v4072_v31, %s3779_s21  ;;  %s613_s21 = scalar_lea.vmem [#allocation2], %s2992_s16  ;;  %s3781_s16 = smov [#allocation2]  }
 0x8ad   : > { %s2891_s24 = sshll.u32 %s613_s21, 4  ;;  %s4385_s24 = int_to_ptr.vmem [resolvable:$true] %s2891_s24 }
 0x8ae   : > { %s3679_s1 = scalar_lea.vmem %s4385_s24, 64 }
 0x8af   : > { %p3680_p0 = scmp.ne.s32.totalorder %s4385_s24, %s3679_s1 }
 0x8b0   : > { %3633 = vrot.lane.b32.xlu0 %v4084_v39, %s3780_s23 }
 0x8b1   : > { %p3681_p1 = pnand %p3680_p0, %p3928_p3 }
 0x8b3   : > { %p3682_p2 = pneg %p3681_p1 }
 0x8b4   : > { %3643 = vrot.lane.b32.xlu0 %v4090_v40, %s3780_s23 }
 0x8b8   : > { %2135 = vrot.lane.b32.xlu0 %v4055_v24, %s3780_s23 }
 0x8bc   : > { %3653 = vrot.lane.b32.xlu0 %v4128_v7, %s3780_s23 }
 0x923   : > { %v1963_v42 = vpop.xlane.xlu0 %1962 }
 0x924   : > { %v1964_v43 = vsub.f32 %v1957_v36, %v1963_v42 }
 0x926   : > { %v1965_v44 = vmul.f32 1.442695, %v1964_v43  ;;  %v2542_v43 = vld [vmem:[%s4445_s8 + $0x18] sm:$0xff] }
 0x927   : > { %v1813_v49 = vpop.permute.xlu0 %1812 }
 0x928   : > { %3665 = vpow2.f32 %v1965_v44  ;;  %v1882_v51 = vadd.f32 %v1881_v48, %v1813_v49 }
 0x92a   : > { %3283 = vmatpush3.msk.msra.mxu1 %vm976_vm3, %v1882_v51 }
 0x92b   : > { %3440 = vmatprep.subr.bf16.mxu1 %v3775_v3 }
 0x932   : > { %v3666_v45 = vpop.eup %3665 }
 0x933   : > { %v1967_v46 = vsel %vm960_vm4, %v3666_v45, 0.0 }
 0x934   : > { %1968 = vadd.xlane.f32.xlu1 %v1967_v46 }
 0x945   : > { %3628 = vrot.lane.b32.xlu1 %v4078_v38, %s3780_s23  ;;  %v3634_v38 = vpop.permute.xlu0 %3633 }
 0x946   : > { %v3636_v54 = vunpack.i.h.bf16 %v3634_v38  ;;  %v3635_v55 = vunpack.i.l.bf16 %v3634_v38 }
 0x948   : > { %v3441_v56 = vpack.c.bf16 %v3636_v54, %v3635_v55 }
 0x949   : > { %3638 = vrot.lane.b32.xlu1 %v4101_v47, %s3780_s23 }
 0x94d   : > { %2221 = vrot.lane.b32.xlu1 %v4060_v25, %s3780_s23  ;;  %v3644_v25 = vpop.permute.xlu0 %3643 }
 0x94e   : > { %v3646_v40 = vunpack.i.h.bf16 %v3644_v25  ;;  %v3645_v47 = vunpack.i.l.bf16 %v3644_v25 }
 0x950   : > { %v3444_v24 = vpack.c.bf16 %v3646_v40, %v3645_v47  ;;  %v2657_v47 = vld [vmem:[%s4449_s12] sm:$0xff] }
 0x951   : > { %3648 = vrot.lane.b32.xlu1 %v4122_v5, %s3780_s23  ;;  %v2136_v14 = vpop.permute.xlu0 %2135 }
 0x955   : > { %v3654_v7 = vpop.permute.xlu0 %3653 }
 0x956   : > { %v3656_v26 = vunpack.i.h.bf16 %v3654_v7  ;;  %v3655_v27 = vunpack.i.l.bf16 %v3654_v7 }
 0x958   : > { %v3456_v29 = vpack.c.bf16 %v3656_v26, %v3655_v27  ;;  %v2760_v27 = vld [vmem:[%s4451_s14 + $0x50] sm:$0xff] }
 0x9c1   : > { %v1969_v53 = vpop.xlane.xlu1 %1968 }
 0x9c2   : > { %3667 = vrcp.f32 %v1969_v53 }
 0x9c5   : > { %v3629_v58 = vpop.permute.xlu1 %3628 }
 0x9c6   : > { %v3631_v59 = vunpack.i.h.bf16 %v3629_v58  ;;  %v3630_v60 = vunpack.i.l.bf16 %v3629_v58 }
 0x9c8   : > { %v3447_v62 = vpack.c.bf16 %v3631_v59, %v3630_v60  ;;  %v2660_v59 = vld [vmem:[%s4449_s12 + $0x18] sm:$0xff] }
 0x9c9   : > { %v3639_v61 = vpop.permute.xlu1 %3638 }
 0x9ca   : > { %v3641_v63 = vunpack.i.h.bf16 %v3639_v61  ;;  %v3640_v0 = vunpack.i.l.bf16 %v3639_v61  ;;  %v2750_v61 = vld [vmem:[%s4451_s14] sm:$0xff] }
 0x9cc   : > { %v3668_v39 = vpop.eup %3667  ;;  %v3450_v4 = vpack.c.bf16 %v3641_v63, %v3640_v0 }
 0x9cd   : > { %v1971_v57 = vmul.f32 %v3668_v39, %v3666_v45  ;;  %v2222_v18 = vpop.permute.xlu1 %2221 }
 0x9cf   : > { %3285 = vmatmul.mubr.msk.f32.vlgmr.msra.gmra.mrb[14].mxu1 %vm972_vm5, %v1971_v57 }
 0x9d0   : > { %3442 = vmatpush3.bf16.msra.mxu1 %v3441_v56  ;;  %3300 = vmatprep.mubr.msk.f32.mxu1 %vm3776_vm0, %v3777_v6 }
 0x9d1   : > { %3443 = vmatprep.subr.bf16.mxu1 %v3775_v3  ;;  %v3649_v5 = vpop.permute.xlu1 %3648 }
 0x9d2   : > { %v3650_v23 = vunpack.i.l.bf16 %v3649_v5 }
 0x9d4   : > { %3445 = vmatpush3.bf16.msra.mxu1 %v3444_v24  ;;  %v2658_v24 = vld [vmem:[%s4449_s12 + $0x8] sm:$0xff] }
 0x9d5   : > { %3452 = vmatprep.subr.bf16.mxu1 %v3775_v3  ;;  %v3459_v58 = vpack.c.bf16 %v2658_v24, %v2657_v47 }
 0x9d7   : > { %3301 = vmatmul.mubr.msk.f32.vlgmr.msra.gmra.mrb[16].mxu1 %vm643_vm1, %v4003_v13 }
 0x9d8   : > { %3322 = vmatprep.mubr.msk.f32.mxu1 %vm3776_vm0, %v3777_v6 }
 0xaa2   : > { %v2044_v1 = vpop.f32.mrb[14].mxu1 }
 0xaa3   : > { %v3286_v2 = vpop.f32.mrb[15].mxu1  ;;  %3290 = vmatmul.mubr.msk.f32.vlgmr.msra.gmra.mrb[18].mxu0 %vm883_vm2, %v2044_v1 }
 0xaa4   : > { %3448 = vmatpush3.bf16.msra.mxu0 %v3447_v62  ;;  %3311 = vmatprep.mubr.msk.f32.mxu0 %vm3776_vm0, %v3777_v6  ;;  %v2751_v62 = vld [vmem:[%s4451_s14 + $0x8] sm:$0xff] }
 0xaa5   : > { %3449 = vmatprep.subr.bf16.mxu0 %v3775_v3  ;;  %v3465_v63 = vpack.c.bf16 %v2751_v62, %v2750_v61 }
 0xaa8   : > { %3451 = vmatpush3.bf16.msra.mxu0 %v3450_v4 }
 0xaa9   : > { %3325 = vmatprep.subr.mxu0 %v3777_v6 }
 0xaaa   : > { %v2204_v8 = vpop.f32.mrb[16].mxu1 }
 0xaab   : > { %3312 = vmatmul.mubr.msk.f32.vlgmr.msra.gmra.mrb[20].mxu0 %vm643_vm1, %v4025_v17  ;;  %v3302_v9 = vpop.f32.mrb[17].mxu1  ;;  %v2205_v15 = vadd.f32 %v2204_v8, %v2136_v14  ;;  %v3031_v8 = vld [vmem:[%s4447_s10] ss:$0 sm:$0xff]  ;;  %v2752_v14 = vld [vmem:[%s4451_s14 + $0x10] sm:$0xff] }
 0xaac   : > { %3327 = vmatprep.mubr.msk.f32.mxu0 %vm3776_vm0, %v3777_v6 }
 0xaad   : > { %v2208_v22 = vmul.f32 0.35355338, %v2205_v15 }
 0xb76   : > { %v2118_v10 = vpop.f32.mrb[18].mxu0 }
 0xb77   : > { %v2122_v11 = vadd.f32 %v2118_v10, %v4199_v16  ;;  %v3291_v12 = vpop.f32.mrb[19].mxu0  ;;  %v3651_v16 = vunpack.i.h.bf16 %v3649_v5  ;;  %v3032_v10 = vld [vmem:[%s4448_s11] ss:$0 sm:$0xff]  ;;  %v2757_v5 = vld [vmem:[%s4451_s14 + $0x38] sm:$0xff] }
 0xb79   : > { %v3453_v28 = vpack.c.bf16 %v3651_v16, %v3650_v23  ;;  %v2758_v16 = vld [vmem:[%s4451_s14 + $0x40] sm:$0xff]  ;;  %v2759_v23 = vld [vmem:[%s4451_s14 + $0x48] sm:$0xff] }
 0xb7a   : > { %v3477_v26 = vpack.c.bf16 %v2759_v23, %v2758_v16 }
 0xb7b   : > { %3454 = vmatpush3.bf16.msra.mxu1 %v3453_v28  ;;  %v2761_v28 = vld [vmem:[%s4451_s14 + $0x58] sm:$0xff] }
 0xb7c   : > { %3455 = vmatprep.subr.bf16.mxu1 %v3775_v3 }
 0xb7e   : > { %v2290_v19 = vpop.f32.mrb[20].mxu0 }
 0xb7f   : > { %v2291_v20 = vadd.f32 %v2290_v19, %v2222_v18  ;;  %v3313_v21 = vpop.f32.mrb[21].mxu0  ;;  %3457 = vmatpush3.bf16.msra.mxu1 %v3456_v29  ;;  %v2753_v18 = vld [vmem:[%s4451_s14 + $0x18] sm:$0xff]  ;;  %v2754_v19 = vld [vmem:[%s4451_s14 + $0x20] sm:$0xff]  ;;  %v3480_v29 = vpack.c.bf16 %v2761_v28, %v2760_v27 }
 0xb80   : > { %3335 = vmatprep.subr.mxu1 %v3777_v6  ;;  %v3468_v15 = vpack.c.bf16 %v2753_v18, %v2752_v14 }
 0xb81   : > { %3326 = vmatpush3.xpose.msk.msra.mxu0 %vm883_vm2, %v2291_v20  ;;  %v2755_v20 = vld [vmem:[%s4451_s14 + $0x28] sm:$0xff] }
 0xb82   : > { %3330 = vmatprep.subr.mxu0 %v3777_v6  ;;  %3323 = vmatmul.mubr.msk.f32.vlgmr.msra.gmra.mrb[18].mxu1 %vm643_vm1, %v4025_v17  ;;  %v3471_v21 = vpack.c.bf16 %v2755_v20, %v2754_v19 }
 0xb83   : > { %3337 = vmatprep.mubr.msk.f32.mxu1 %vm3776_vm0, %v3777_v6  ;;  %3336 = vmatpush3.msra.mxu1 %v2542_v43 }
 0xb84   : > { %3328 = vmatmul.mubr.msk.f32.vlgmr.msra.gmra.mrb[22].mxu0 %vm883_vm2, %v2208_v22  ;;  %3464 = vmatprep.subr.bf16.mxu1 %v3775_v3  ;;  %v2756_v22 = vld [vmem:[%s4451_s14 + $0x30] sm:$0xff] }
 0xb85   : > { %3332 = vmatprep.mubr.msk.f32.mxu0 %vm3776_vm0, %v3777_v6  ;;  %v3474_v7 = vpack.c.bf16 %v2757_v5, %v2756_v22 }
 0xc55   : > { %v2375_v17 = vpop.f32.mrb[18].mxu1 }
 0xc56   : > { %v3324_v42 = vpop.f32.mrb[19].mxu1 }
 0xc57   : > { %v2451_v30 = vpop.f32.mrb[22].mxu0 }
 0xc58   : > { %v3329_v32 = vpop.f32.mrb[23].mxu0  ;;  %v2455_v33 = vsel %vm960_vm4, %v2451_v30, -inf }
 0xc59   : > { %2456 = vmax.xlane.f32.xlu1 %v2455_v33  ;;  %v2763_v32 = vld [vmem:[%s4451_s14 + $0x68] sm:$0xff] }
 0xce6   : > { %v2457_v34 = vpop.xlane.xlu1 %2456 }
 0xce7   : > { %v2458_v35 = vsub.f32 %v2451_v30, %v2457_v34  ;;  %v2762_v30 = vld [vmem:[%s4451_s14 + $0x60] sm:$0xff]  ;;  %v2764_v34 = vld [vmem:[%s4451_s14 + $0x70] sm:$0xff] }
 0xce8   : > { %v3483_v33 = vpack.c.bf16 %v2763_v32, %v2762_v30 }
 0xce9   : > { %v2459_v36 = vmul.f32 1.442695, %v2458_v35  ;;  %v2765_v35 = vld [vmem:[%s4451_s14 + $0x78] sm:$0xff] }
 0xceb   : > { %3669 = vpow2.f32 %v2459_v36  ;;  %v3486_v36 = vpack.c.bf16 %v2765_v35, %v2764_v34 }
 0xcf5   : > { %v3670_v37 = vpop.eup %3669 }
 0xcf6   : > { %v2461_v41 = vsel %vm960_vm4, %v3670_v37, 0.0 }
 0xcf7   : > { %2462 = vadd.xlane.f32.xlu0 %v2461_v41 }
 0xd0d   : > { %2306 = vrot.lane.b32.xlu0 %v4072_v31, %s3780_s23  ;;  %s2887_s23 = sadd.s32 %s3757_s30, %s3489_s18  ;;  %s2876_s18 = scalar_lea.sflag [#allocation3], %s611_s17 }
 0xd0e   : > { %s3039_s29 = sshll.u32 %s2887_s23, 6  ;;  %s3683_s23 = sshll.u32 %s3781_s16, 4  ;;  %s3684_s23 = int_to_ptr.vmem [resolvable:$false] %s3683_s23 }
 0xd0f   : > { %s4383_s30 = scalar_lea.hbm %s4495_s4, %s3039_s29  ;;  %s3685_s2 = scalar_lea.vmem %s3684_s23, 128 }
 0xd10   : > { %p3686_p4 = scmp.lt.s32.totalorder %s4385_s24, %s3684_s23  ;;  %p3687_p5 = scmp.lt.s32.totalorder %s3685_s2, %s3679_s1 }
 0xd12   : > { %p3688_p6 = por %p3687_p5, %p3686_p4 }
 0xd14   : > { %p3689_p7 = pnand %p3688_p6, %p3682_p2 }
 0xd84   : > { %v2463_v44 = vpop.xlane.xlu0 %2462 }
 0xd85   : > { %3671 = vrcp.f32 %v2463_v44 }
 0xd88   : > { %v2307_v45 = vpop.permute.xlu0 %2306 }
 0xd89   : > { %v2376_v46 = vadd.f32 %v2375_v17, %v2307_v45 }
 0xd8b   : > { %3331 = vmatpush3.msk.msra.mxu0 %vm976_vm3, %v2376_v46 }
 0xd8c   : > { %3458 = vmatprep.subr.bf16.mxu0 %v3775_v3 }
 0xd8f   : > { %v3672_v48 = vpop.eup %3671 }
 0xd90   : > { %v2465_v49 = vmul.f32 %v3672_v48, %v3670_v37  ;;  %v3033_v37 = vld [vmem:[%s4450_s13] ss:$0 sm:$0xff] }
 0xd92   : > { %3333 = vmatmul.mubr.msk.f32.vlgmr.msra.gmra.mrb[24].mxu0 %vm972_vm5, %v2465_v49 }
 0xd93   : > { %3348 = vmatprep.mubr.msk.f32.mxu0 %vm3776_vm0, %v3777_v6  ;;  %3460 = vmatpush3.bf16.msra.mxu0 %v3459_v58 }
 0xd94   : > { %3461 = vmatprep.subr.bf16.mxu0 %v3775_v3 }
 0xe65   : > { %v2538_v31 = vpop.f32.mrb[24].mxu0 }
 0xe66   : > { %v3334_v50 = vpop.f32.mrb[25].mxu0  ;;  %3338 = vmatmul.mubr.msk.f32.vlgmr.msra.gmra.mrb[20].mxu1 %vm883_vm2, %v2538_v31 }
 0xe67   : > { %3383 = vmatprep.mubr.msk.f32.mxu1 %vm3776_vm0, %v3777_v6  ;;  %3466 = vmatpush3.bf16.msra.mxu1 %v3465_v63 }
 0xe68   : > { %3467 = vmatprep.subr.bf16.mxu1 %v3775_v3 }
 0xe6b   : > { %3469 = vmatpush3.bf16.msra.mxu1 %v3468_v15 }
 0xe6c   : > { %3470 = vmatprep.subr.bf16.mxu1 %v3775_v3 }
 0xe6f   : > { %3472 = vmatpush3.bf16.msra.mxu1 %v3471_v21 }
 0xe70   : > { %3473 = vmatprep.subr.bf16.mxu1 %v3775_v3 }
 0xe73   : > { %3475 = vmatpush3.bf16.msra.mxu1 %v3474_v7 }
 0xe74   : > { %3476 = vmatprep.subr.bf16.mxu1 %v3775_v3 }
 0xe77   : > { %3478 = vmatpush3.bf16.msra.mxu1 %v3477_v26 }
 0xe78   : > { %3479 = vmatprep.subr.bf16.mxu1 %v3775_v3 }
 0xe7b   : > { %3481 = vmatpush3.bf16.msra.mxu1 %v3480_v29 }
 0xe7c   : > { %3482 = vmatprep.subr.bf16.mxu1 %v3775_v3 }
 0xe7f   : > { %3484 = vmatpush3.bf16.msra.mxu1 %v3483_v33 }
 0xe80   : > { %3485 = vmatprep.subr.bf16.mxu1 %v3775_v3 }
 0xe83   : > { %3487 = vmatpush3.bf16.msra.mxu1 %v3486_v36 }
 0xf39   : > { %v2612_v51 = vpop.f32.mrb[20].mxu1 }
 0xf3a   : > { %v2616_v53 = vadd.f32 %v2612_v51, %v2122_v11  ;;  %v3339_v38 = vpop.f32.mrb[21].mxu1 }
 0xf3c   : > { %v2624_v54 = vadd.f32 %v3030_v52, %v2616_v53  ;;  %v3035_v52 = vld [vmem:[%s4452_s15] ss:$0 sm:$0xff] }
 0xf3e   : > { %v2625_v55 = vadd.f32 %v2624_v54, %v4003_v13  ;;  %v2659_v13 = vld [vmem:[%s4449_s12 + $0x10] sm:$0xff] }
 0xf3f   : > { %v3462_v60 = vpack.c.bf16 %v2660_v59, %v2659_v13  ;;  %v3036_v13 = vld [vmem:[%s4493_s26] ss:$0 sm:$0xff] }
 0xf40   : > { %v2629_v39 = vsel %vm2628_vm6, %v2625_v55, 0.0 }
 0xf41   : > { %2630 = vadd.xlane.f32.xlu1 %v2629_v39  ;;  %3463 = vmatpush3.bf16.msra.mxu0 %v3462_v60  ;;  %v3037_v60 = vld [vmem:[%s4494_s19] ss:$0 sm:$0xff] }
 0xfce   : > { %v2631_v56 = vpop.xlane.xlu1 %2630 }
 0xfcf   : > { %v2633_v57 = vmul.f32 0.03125, %v2631_v56 }
 0xfd1   : > { %v2634_v25 = vsub.f32 %v2625_v55, %v2633_v57 }
 0xfd3   : > { %v2635_v40 = vmul.f32 %v2634_v25, %v2634_v25 }
 0xfd5   : > { %v2636_v6 = vsel %vm2628_vm6, %v2635_v40, 0.0 }
 0xfd6   : > { %2637 = vadd.xlane.f32.xlu1 %v2636_v6 }
0x1063   : > { %v2638_v0 = vpop.xlane.xlu1 %2637 }
0x1064   : > { %v2639_v1 = vmul.f32 0.03125, %v2638_v0 }
0x1066   : > { %v2640_v2 = vadd.f32 1e-05, %v2639_v1 }
0x1068   : > { %3673 = vrsqrt.f32 %v2640_v2 }
0x1072   : > { %v3674_v4 = vpop.eup %3673 }
0x1073   : > { %v2642_v9 = vmul.f32 %v3674_v4, %v2634_v25 }
0x1075   : > { %v2649_v11 = vmul.f32 %v3031_v8, %v2642_v9 }
0x1077   : > { %v2656_v12 = vadd.f32 %v3032_v10, %v2649_v11 }
0x1079   : > { %3349 = vmatmul.mubr.msk.f32.vlgmr.msra.gmra.mrb[26].mxu0 %vm643_vm1, %v2656_v12 }
0x114c   : > { %v2737_v41 = vpop.f32.mrb[26].mxu0 }
0x114d   : > { %v2738_v17 = vadd.f32 %v3033_v37, %v2737_v41  ;;  %v3350_v42 = vpop.f32.mrb[27].mxu0 }
0x114f   : > { %v2741_v43 = vmul.f32 %v2738_v17, %v2738_v17 }
0x1151   : > { %v2742_v44 = vmul.f32 %v2741_v43, %v2738_v17 }
0x1153   : > { %v2743_v45 = vmul.f32 0.044715, %v2742_v44 }
0x1155   : > { %v2744_v46 = vadd.f32 %v2743_v45, %v2738_v17 }
0x1157   : > { %v2745_v48 = vmul.f32 0.7978846, %v2744_v46 }
0x1159   : > { %3675 = vtanh.f32 %v2745_v48 }
0x1163   : > { %v3676_v49 = vpop.eup %3675 }
0x1164   : > { %v2747_v31 = vadd.f32 1.0, %v3676_v49 }
0x1166   : > { %v2748_v50 = vmul.f32 0.5, %v2747_v31 }
0x1168   : > { %v2749_v51 = vmul.f32 %v2748_v50, %v2738_v17 }
0x116a   : > { %3384 = vmatmul.mubr.f32.vlgmr.msra.gmra.mrb[22].mxu1 %v2749_v51 }
0x123d   : > { %v2832_v3 = vpop.f32.mrb[22].mxu1 }
0x123e   : > { %v2836_v53 = vadd.f32 %v2832_v3, %v2656_v12  ;;  %v3385_v38 = vpop.f32.mrb[23].mxu1 }
0x1240   : > { %v2844_v54 = vadd.f32 %v3035_v52, %v2836_v53 }
0x1242   : > { %v2847_v55 = vsel %vm2628_vm6, %v2844_v54, 0.0 }
0x1243   : > { %2848 = vadd.xlane.f32.xlu1 %v2847_v55 }
0x12d0   : > { %v2849_v39 = vpop.xlane.xlu1 %2848 }
0x12d1   : > { %v2850_v56 = vmul.f32 0.03125, %v2849_v39 }
0x12d3   : > { %v2851_v57 = vsub.f32 %v2844_v54, %v2850_v56 }
0x12d5   : > { %v2852_v25 = vmul.f32 %v2851_v57, %v2851_v57 }
0x12d7   : > { %v2853_v40 = vsel %vm2628_vm6, %v2852_v25, 0.0 }
0x12d8   : > { %2854 = vadd.xlane.f32.xlu1 %v2853_v40 }
0x1365   : > { %v2855_v6 = vpop.xlane.xlu1 %2854 }
0x1366   : > { %v2856_v47 = vmul.f32 0.03125, %v2855_v6 }
0x1368   : > { %v2857_v24 = vadd.f32 1e-05, %v2856_v47 }
0x136a   : > { %3677 = vrsqrt.f32 %v2857_v24 }
0x1374   : > { %v3678_v58 = vpop.eup %3677 }
0x1375   : > { %v2859_v59 = vmul.f32 %v3678_v58, %v2851_v57 }
0x1377   : > { %v2866_v61 = vmul.f32 %v3036_v13, %v2859_v59 }
0x1379   : > { %v2873_v62 = vadd.f32 %v3037_v60, %v2866_v61 }
0x137b   : > { %2874 = vst.msk [vmem:[%s613_s21] sm:$0xf] %vm2628_vm6, %v2873_v62 }
0x137c   : > { %3692 = shalt.err (!%p3689_p7)
}
0x137d   : > { %s3693_s3 = scalar_lea.hbm %s4383_s30, 64  ;;  %s3697_s22 = scalar_lea.hbm %s4495_s4, 768 }
0x137e   : > { %p3694_p9 = scmp.ne.s32.totalorder %s4383_s30, %s3693_s3  ;;  %p3698_p12 = scmp.lt.u32.totalorder %s4383_s30, %s4495_s4 }
0x137f   : > { %p3699_p13 = scmp.lt.u32.totalorder %s3697_s22, %s3693_s3  ;;  %p3701_p1 = scmp.lt.u32.totalorder %s3693_s3, %s4383_s30 }
0x1380   : > { %p3695_p10 = pnand %p3694_p9, %p3928_p3 }
0x1381   : > { %p3700_p0 = por %p3699_p13, %p3698_p12 }
0x1382   : > { %p3696_p11 = pneg %p3695_p10 }
0x1383   : > { %p3702_p2 = por %p3701_p1, %p3700_p0 }
0x1385   : > { %p3703_p4 = pnand %p3702_p2, %p3696_p11 }
0x1387   : > { %3706 = shalt.err (!%p3703_p4)
}
0x1388   : > { %3490 = dma.vmem_to_hbm [thread:$0]  (%p3928_p3), %s4385_s24, 64, %s4383_s30, %s2876_s18  }
0x1389 PF: > { %s4496_s29 = sld [smem:[#allocation5_spill]]  ;;  %p3496_p5 = scmp.ge.s32.totalorder %s3773_s20, 2 }
0x138b   : > { %p3493_p6 = pnand %p3496_p5, %p3937_p8 }
0x138f   : > { %s2903_s0 = sand.u32 1, %s4496_s29  }
0x1390   : > { %s2904_s1 = scalar_lea.sflag [#allocation3], %s2903_s0 }
0x1391   : > { %3740 = dma.done.wait (!%p3493_p6), %s2904_s1, 64  }
0x1392   : > { %3742 = vsyncadd (!%p3493_p6), %s2904_s1, 4294967232  ;;  %s31_s20 = sadd.s32 1, %s3773_s20   ;;  %s4498_s16 = sld [smem:[#allocation6_spill]] }
0x1393   : > { %p28_p7 = scmp.ge.s32.totalorder %s31_s20, 14   ;;  %s4499_s29 = sld [smem:[#allocation13_spill]] }
0x1394   : > { %s4500_s30 = sld [smem:[#allocation7_spill]]  ;;  %s4501_s0 = sld [smem:[#allocation8_spill]] }
0x1395   : > { %s4502_s19 = sld [smem:[#allocation9_spill]]  ;;  %s4503_s1 = sld [smem:[#allocation11_spill]] }
0x1396   : > { %s4504_s27 = smov %s3749_s28  ;;  %30 = sbr.rel (!%p28_p7) target bundleno = 14 (0xe), region = 130 }
0x1398   : > { %s4505_s28 = smov %s4498_s16 }
0x139d   :  { %2909 = vsyncpa [#allocation3], 1 }
0x139e   :  { %2911 = vsyncpa [#allocation3 + $0x1], 1 }

</bundles_post_ra>
